<compile_context>
chip_gen: v7x
topology: tpu7x:2x2x1
jax: 0.10.0
libtpu: 0.0.40
codegen_flags: <defaults>
</compile_context>

<pallas_src>
import functools

import jax
import jax.numpy as jnp
from jax.experimental import pallas as pl
from jax.experimental.pallas import tpu as pltpu


def _round_up(x, m):
  return ((x + m - 1) // m) * m


def encoder_classifier_kernel(
    vals_ref, mask_ref,
    pos_ref, wq_ref, bq_ref, wkv_ref, bkv_ref, wo_ref, bo_ref,
    ln1g_ref, ln1b_ref, ln2g_ref, ln2b_ref,
    w1_ref, b1_ref, w2_ref, b2_ref, wc_ref, bc_ref,
    out_ref, *, num_heads):
  """One grid step processes TB examples entirely in VMEM (CLS-row-only path)."""
  vals = vals_ref[...]                              # (TB, S, D+1)
  x = vals[:, :, 1:] + pos_ref[...]                 # drop time channel in-kernel
  TB, S, D = x.shape
  dh = D // num_heads
  scale = 1.0 / (dh ** 0.5)

  mask = mask_ref[...]                              # (TB, S), 1 = attend
  attn_bias = (1.0 - mask) * (-1e9)                 # additive key mask

  # ---- fused K|V projection for all S rows (single MXU stream over TB*S rows) ----
  x2 = x.reshape(TB * S, D)
  kv = jnp.dot(x2, wkv_ref[...], preferred_element_type=jnp.float32) + bkv_ref[...]
  k = kv[:, :D].reshape(TB, S, D)
  v = kv[:, D:].reshape(TB, S, D)

  # ---- Q / attention only for the CLS row (only h[:, 0, :] is consumed) ----
  x_cls = x[:, 0, :]                                # (TB, D)
  q = jnp.dot(x_cls, wq_ref[...], preferred_element_type=jnp.float32) + bq_ref[...]

  acc = jnp.zeros((TB, D), jnp.float32)
  for h in range(num_heads):                        # static unroll (H is small)
    sl = slice(h * dh, (h + 1) * dh)
    qh = q[:, sl]                                   # (TB, dh)
    kh = k[:, :, sl]                                # (TB, S, dh)
    vh = v[:, :, sl]                                # (TB, S, dh)
    s = jnp.sum(qh[:, None, :] * kh, axis=-1) * scale + attn_bias   # (TB, S)
    s = s - jnp.max(s, axis=-1, keepdims=True)
    p = jnp.exp(s)
    p = p * pl.reciprocal(jnp.sum(p, axis=-1, keepdims=True), approx=True)
    ctx = jnp.sum(p[:, :, None] * vh, axis=1)       # (TB, dh)
    # head-major output projection: accumulate, no lane concatenate.
    acc = acc + jnp.dot(ctx, wo_ref[h], preferred_element_type=jnp.float32)
  attn = acc + bo_ref[...]

  def layernorm(hh, g, b):
    mu = jnp.mean(hh, axis=-1, keepdims=True)
    var = jnp.mean((hh - mu) ** 2, axis=-1, keepdims=True)
    return (hh - mu) * jax.lax.rsqrt(var + 1e-5) * g + b

  h1 = layernorm(x_cls + attn, ln1g_ref[...], ln1b_ref[...])

  # ---- feed-forward block (CLS rows only) ----
  f = jnp.dot(h1, w1_ref[...], preferred_element_type=jnp.float32) + b1_ref[...]
  f = jax.nn.gelu(f, approximate=True)              # tanh-approx GELU (EUP)
  f = jnp.dot(f, w2_ref[...], preferred_element_type=jnp.float32) + b2_ref[...]
  h2 = layernorm(h1 + f, ln2g_ref[...], ln2b_ref[...])

  # ---- classifier; lane-dense (TB, C_pad=128) output slab ----
  logits = jnp.dot(h2, wc_ref[...], preferred_element_type=jnp.float32) + bc_ref[...]
  out_ref[...] = logits


def make_params(key, seq_len, d_model, d_ff, num_classes):
  ks = jax.random.split(key, 8)
  n = lambda k, sh: 0.02 * jax.random.normal(k, sh, jnp.float32)
  zeros = lambda sh: jnp.zeros(sh, jnp.float32)
  ones = lambda sh: jnp.ones(sh, jnp.float32)
  return {
      "pos": n(ks[0], (seq_len, d_model)),
      "wq": n(ks[1], (d_model, d_model)), "bq": zeros((1, d_model)),
      "wk": n(ks[2], (d_model, d_model)), "bk": zeros((1, d_model)),
      "wv": n(ks[3], (d_model, d_model)), "bv": zeros((1, d_model)),
      "wo": n(ks[4], (d_model, d_model)), "bo": zeros((1, d_model)),
      "ln1g": ones((1, d_model)), "ln1b": zeros((1, d_model)),
      "ln2g": ones((1, d_model)), "ln2b": zeros((1, d_model)),
      "w1": n(ks[5], (d_model, d_ff)), "b1": zeros((1, d_ff)),
      "w2": n(ks[6], (d_ff, d_model)), "b2": zeros((1, d_model)),
      "wc": n(ks[7], (d_model, num_classes)), "bc": zeros((1, num_classes)),
  }


# Grid-invariant index maps for full-array weight blocks (DMA'd once, reused).
_FULL_IDX_MAPS = {
    2: lambda b: (0, 0),
    3: lambda b: (0, 0, 0),
}


def _full_spec(a):
  return pl.BlockSpec(a.shape, _FULL_IDX_MAPS[a.ndim])


@functools.partial(jax.jit, static_argnames=("num_heads", "block_b"))
def classification_forward(values, mask, params, *, num_heads, block_b=128):
  """logits = Linear(encoder(values[:, :, 1:], mask).last_hidden_state[:, 0, :])."""
  values = values.astype(jnp.float32)               # (B, S, D+1); channel 0 dropped in-kernel
  mask = mask.astype(jnp.float32)                   # (B, S)
  B, S, Dp1 = values.shape
  D = Dp1 - 1
  assert D % num_heads == 0
  dh = D // num_heads
  C = params["wc"].shape[1]
  C_pad = _round_up(C, 128)

  # Batch tiling: TB examples per grid step (multiple of 8 to satisfy the
  # (8, 128) block-layout rule on the 2-D mask/output tiles).
  TB = min(block_b, _round_up(B, 8))
  B_pad = _round_up(B, TB)
  if B_pad != B:
    values = jnp.pad(values, ((0, B_pad - B), (0, 0), (0, 0)))
    mask = jnp.pad(mask, ((0, B_pad - B), (0, 0)))  # padded rows fully masked

  # Host-side weight packing: fused K|V projection, head-major W_O, padded classifier.
  f32 = lambda a: a.astype(jnp.float32)
  wkv = jnp.concatenate([f32(params["wk"]), f32(params["wv"])], axis=1)   # (D, 2D)
  bkv = jnp.concatenate([f32(params["bk"]), f32(params["bv"])], axis=1)   # (1, 2D)
  wo_h = f32(params["wo"]).reshape(num_heads, dh, D)                      # (H, dh, D)
  wc_pad = jnp.pad(f32(params["wc"]), ((0, 0), (0, C_pad - C)))           # (D, 128)
  bc_pad = jnp.pad(f32(params["bc"]), ((0, 0), (0, C_pad - C)))           # (1, 128)

  weights = (
      f32(params["pos"]),
      f32(params["wq"]), f32(params["bq"]),
      wkv, bkv, wo_h, f32(params["bo"]),
      f32(params["ln1g"]), f32(params["ln1b"]),
      f32(params["ln2g"]), f32(params["ln2b"]),
      f32(params["w1"]), f32(params["b1"]),
      f32(params["w2"]), f32(params["b2"]),
      wc_pad, bc_pad,
  )

  grid = (B_pad // TB,)
  out = pl.pallas_call(
      functools.partial(encoder_classifier_kernel, num_heads=num_heads),
      out_shape=jax.ShapeDtypeStruct((B_pad, C_pad), jnp.float32),
      grid=grid,
      in_specs=[
          pl.BlockSpec((TB, S, Dp1), lambda b: (b, 0, 0)),   # per-step batch tile of raw values
          pl.BlockSpec((TB, S), lambda b: (b, 0)),           # per-step mask tile
      ] + [_full_spec(w) for w in weights],
      out_specs=pl.BlockSpec((TB, C_pad), lambda b: (b, 0)),
      compiler_params=pltpu.CompilerParams(
          dimension_semantics=("parallel",)),                # batch tiles are independent
  )(values, mask, *weights)
  return out[:B, :C]


def reference_forward(values, mask, params, num_heads):
  """Pure-JAX reference of the same 1-layer encoder + classifier (full sequence)."""
  x = values[:, :, 1:].astype(jnp.float32) + params["pos"][None]
  B, S, D = x.shape
  dh = D // num_heads

  def proj(w, b):
    return jnp.einsum("bsd,de->bse", x, w) + b

  q = proj(params["wq"], params["bq"])
  k = proj(params["wk"], params["bk"])
  v = proj(params["wv"], params["bv"])

  def split(t):
    return t.reshape(B, S, num_heads, dh).transpose(0, 2, 1, 3)   # (B, H, S, dh)

  qh, kh, vh = split(q), split(k), split(v)
  bias = (1.0 - mask.astype(jnp.float32))[:, None, None, :] * (-1e9)
  s = jnp.einsum("bhqd,bhkd->bhqk", qh, kh) / (dh ** 0.5) + bias
  p = jax.nn.softmax(s, axis=-1)
  ctx = jnp.einsum("bhqk,bhkd->bhqd", p, vh).transpose(0, 2, 1, 3).reshape(B, S, D)
  attn = ctx @ params["wo"] + params["bo"]

  def ln(h, g, b):
    mu = h.mean(-1, keepdims=True)
    var = ((h - mu) ** 2).mean(-1, keepdims=True)
    return (h - mu) * jax.lax.rsqrt(var + 1e-5) * g + b

  h1 = ln(x + attn, params["ln1g"], params["ln1b"])
  f = jax.nn.gelu(h1 @ params["w1"] + params["b1"], approximate=True)
  h2 = ln(h1 + f @ params["w2"] + params["b2"], params["ln2g"], params["ln2b"])
  return h2[:, 0, :] @ params["wc"] + params["bc"]


if __name__ == "__main__":
  B, S, D, H, DFF, C = 2, 8, 32, 4, 64, 5            # d_model=32, num_classes=5
  key = jax.random.PRNGKey(0)
  k_vals, k_params = jax.random.split(key, 2)
  # values carries d_model+1 features; channel 0 is the (dropped) time channel.
  values = jax.random.normal(k_vals, (B, S, D + 1), jnp.float32)
  # attention mask: last two positions of batch element 1 are padding.
  mask = jnp.ones((B, S), jnp.float32).at[1, S - 2:].set(0.0)
  params = make_params(k_params, S, D, DFF, C)

  logits = classification_forward(values, mask, params, num_heads=H)
  jax.block_until_ready(logits)
  assert logits.shape == (B, C) and bool(jnp.all(jnp.isfinite(logits)))

  ref = reference_forward(values, mask, params, H)
  max_err = float(jnp.max(jnp.abs(logits - ref)))
  assert bool(jnp.allclose(logits, ref, atol=1e-3, rtol=1e-2)), max_err
  print("KERNEL_OK")
</pallas_src>

<mosaic_0001>
module attributes {stable_mosaic.version = 11 : i64} {
  func.func @encoder_classifier_kernel(%arg0: i32, %arg1: memref<8x8x33xf32, #tpu.memory_space<vmem>>, %arg2: memref<8x8xf32, #tpu.memory_space<vmem>>, %arg3: memref<8x32xf32, #tpu.memory_space<vmem>>, %arg4: memref<32x32xf32, #tpu.memory_space<vmem>>, %arg5: memref<1x32xf32, #tpu.memory_space<vmem>>, %arg6: memref<32x64xf32, #tpu.memory_space<vmem>>, %arg7: memref<1x64xf32, #tpu.memory_space<vmem>>, %arg8: memref<4x8x32xf32, #tpu.memory_space<vmem>>, %arg9: memref<1x32xf32, #tpu.memory_space<vmem>>, %arg10: memref<1x32xf32, #tpu.memory_space<vmem>>, %arg11: memref<1x32xf32, #tpu.memory_space<vmem>>, %arg12: memref<1x32xf32, #tpu.memory_space<vmem>>, %arg13: memref<1x32xf32, #tpu.memory_space<vmem>>, %arg14: memref<32x64xf32, #tpu.memory_space<vmem>>, %arg15: memref<1x64xf32, #tpu.memory_space<vmem>>, %arg16: memref<64x32xf32, #tpu.memory_space<vmem>>, %arg17: memref<1x32xf32, #tpu.memory_space<vmem>>, %arg18: memref<32x128xf32, #tpu.memory_space<vmem>>, %arg19: memref<1x128xf32, #tpu.memory_space<vmem>>, %arg20: memref<8x128xf32, #tpu.memory_space<vmem>>) attributes {dimension_semantics = [#tpu.dimension_semantics<parallel>], iteration_bounds = array<i64: 1>, scalar_prefetch = 0 : i64, scratch_operands = 0 : i64, tpu.core_type = #tpu.core_type<tc>, window_params = [{transform_indices = @transform_0, window_bounds = array<i64: 8, 8, 33>}, {transform_indices = @transform_1, window_bounds = array<i64: 8, 8>}, {pipeline_mode = #tpu.pipeline_mode<synchronous>, transform_indices = @transform_2, window_bounds = array<i64: 8, 32>}, {pipeline_mode = #tpu.pipeline_mode<synchronous>, transform_indices = @transform_3, window_bounds = array<i64: 32, 32>}, {pipeline_mode = #tpu.pipeline_mode<synchronous>, transform_indices = @transform_4, window_bounds = array<i64: 1, 32>}, {pipeline_mode = #tpu.pipeline_mode<synchronous>, transform_indices = @transform_5, window_bounds = array<i64: 32, 64>}, {pipeline_mode = #tpu.pipeline_mode<synchronous>, transform_indices = @transform_6, window_bounds = array<i64: 1, 64>}, {pipeline_mode = #tpu.pipeline_mode<synchronous>, transform_indices = @transform_7, window_bounds = array<i64: 4, 8, 32>}, {pipeline_mode = #tpu.pipeline_mode<synchronous>, transform_indices = @transform_8, window_bounds = array<i64: 1, 32>}, {pipeline_mode = #tpu.pipeline_mode<synchronous>, transform_indices = @transform_9, window_bounds = array<i64: 1, 32>}, {pipeline_mode = #tpu.pipeline_mode<synchronous>, transform_indices = @transform_10, window_bounds = array<i64: 1, 32>}, {pipeline_mode = #tpu.pipeline_mode<synchronous>, transform_indices = @transform_11, window_bounds = array<i64: 1, 32>}, {pipeline_mode = #tpu.pipeline_mode<synchronous>, transform_indices = @transform_12, window_bounds = array<i64: 1, 32>}, {pipeline_mode = #tpu.pipeline_mode<synchronous>, transform_indices = @transform_13, window_bounds = array<i64: 32, 64>}, {pipeline_mode = #tpu.pipeline_mode<synchronous>, transform_indices = @transform_14, window_bounds = array<i64: 1, 64>}, {pipeline_mode = #tpu.pipeline_mode<synchronous>, transform_indices = @transform_15, window_bounds = array<i64: 64, 32>}, {pipeline_mode = #tpu.pipeline_mode<synchronous>, transform_indices = @transform_16, window_bounds = array<i64: 1, 32>}, {pipeline_mode = #tpu.pipeline_mode<synchronous>, transform_indices = @transform_17, window_bounds = array<i64: 32, 128>}, {pipeline_mode = #tpu.pipeline_mode<synchronous>, transform_indices = @transform_18, window_bounds = array<i64: 1, 128>}, {transform_indices = @transform_19, window_bounds = array<i64: 8, 128>}]} {
    %c0 = arith.constant 0 : index
    %c0_0 = arith.constant 0 : index
    %c0_1 = arith.constant 0 : index
    %0 = vector.load %arg1[%c0, %c0_0, %c0_1] : memref<8x8x33xf32, #tpu.memory_space<vmem>>, vector<8x8x33xf32>
    %1 = vector.extract_strided_slice %0 {offsets = [0, 0, 1], sizes = [8, 8, 32], strides = [1, 1, 1]} : vector<8x8x33xf32> to vector<8x8x32xf32>
    %c0_2 = arith.constant 0 : index
    %c0_3 = arith.constant 0 : index
    %2 = vector.load %arg3[%c0_2, %c0_3] : memref<8x32xf32, #tpu.memory_space<vmem>>, vector<8x32xf32>
    %3 = vector.shape_cast %2 : vector<8x32xf32> to vector<1x8x32xf32>
    %4 = vector.broadcast %3 : vector<1x8x32xf32> to vector<8x8x32xf32>
    %5 = arith.addf %1, %4 : vector<8x8x32xf32>
    %c0_4 = arith.constant 0 : index
    %c0_5 = arith.constant 0 : index
    %6 = vector.load %arg2[%c0_4, %c0_5] : memref<8x8xf32, #tpu.memory_space<vmem>>, vector<8x8xf32>
    %cst = arith.constant 1.000000e+00 : f32
    %7 = vector.broadcast %cst : f32 to vector<8x8xf32>
    %8 = arith.subf %7, %6 : vector<8x8xf32>
    %cst_6 = arith.constant -1.000000e+09 : f32
    %9 = vector.broadcast %cst_6 : f32 to vector<8x8xf32>
    %10 = arith.mulf %8, %9 : vector<8x8xf32>
    %11 = vector.shape_cast %5 : vector<8x8x32xf32> to vector<64x32xf32>
    %c0_7 = arith.constant 0 : index
    %c0_8 = arith.constant 0 : index
    %12 = vector.load %arg6[%c0_7, %c0_8] : memref<32x64xf32, #tpu.memory_space<vmem>>, vector<32x64xf32>
    %cst_9 = arith.constant dense<0.000000e+00> : vector<64x64xf32>
    %13 = tpu.matmul %11, %12, %cst_9 {dimension_numbers = #tpu.dot_dimension_numbers<[1], [0], [0], [1], [0, 0, 1, 1], [], []>} : vector<64x32xf32>, vector<32x64xf32>, vector<64x64xf32> -> vector<64x64xf32>
    %c0_10 = arith.constant 0 : index
    %c0_11 = arith.constant 0 : index
    %14 = vector.load %arg7[%c0_10, %c0_11] : memref<1x64xf32, #tpu.memory_space<vmem>>, vector<1x64xf32>
    %15 = vector.broadcast %14 : vector<1x64xf32> to vector<64x64xf32>
    %16 = arith.addf %13, %15 : vector<64x64xf32>
    %17 = vector.extract_strided_slice %16 {offsets = [0, 0], sizes = [64, 32], strides = [1, 1]} : vector<64x64xf32> to vector<64x32xf32>
    %18 = vector.shape_cast %17 : vector<64x32xf32> to vector<8x8x32xf32>
    %19 = vector.extract_strided_slice %16 {offsets = [0, 32], sizes = [64, 32], strides = [1, 1]} : vector<64x64xf32> to vector<64x32xf32>
    %20 = vector.shape_cast %19 : vector<64x32xf32> to vector<8x8x32xf32>
    %21 = vector.extract_strided_slice %5 {offsets = [0, 0, 0], sizes = [8, 1, 32], strides = [1, 1, 1]} : vector<8x8x32xf32> to vector<8x1x32xf32>
    %22 = vector.shape_cast %21 : vector<8x1x32xf32> to vector<8x32xf32>
    %c0_12 = arith.constant 0 : index
    %c0_13 = arith.constant 0 : index
    %23 = vector.load %arg4[%c0_12, %c0_13] : memref<32x32xf32, #tpu.memory_space<vmem>>, vector<32x32xf32>
    %cst_14 = arith.constant dense<0.000000e+00> : vector<8x32xf32>
    %24 = tpu.matmul %22, %23, %cst_14 {dimension_numbers = #tpu.dot_dimension_numbers<[1], [0], [0], [1], [0, 0, 1, 1], [], []>} : vector<8x32xf32>, vector<32x32xf32>, vector<8x32xf32> -> vector<8x32xf32>
    %c0_15 = arith.constant 0 : index
    %c0_16 = arith.constant 0 : index
    %25 = vector.load %arg5[%c0_15, %c0_16] : memref<1x32xf32, #tpu.memory_space<vmem>>, vector<1x32xf32>
    %26 = vector.broadcast %25 : vector<1x32xf32> to vector<8x32xf32>
    %27 = arith.addf %24, %26 : vector<8x32xf32>
    %cst_17 = arith.constant 0.000000e+00 : f32
    %28 = vector.broadcast %cst_17 : f32 to vector<8x32xf32>
    %29 = vector.extract_strided_slice %27 {offsets = [0, 0], sizes = [8, 8], strides = [1, 1]} : vector<8x32xf32> to vector<8x8xf32>
    %30 = vector.extract_strided_slice %18 {offsets = [0, 0, 0], sizes = [8, 8, 8], strides = [1, 1, 1]} : vector<8x8x32xf32> to vector<8x8x8xf32>
    %31 = vector.extract_strided_slice %20 {offsets = [0, 0, 0], sizes = [8, 8, 8], strides = [1, 1, 1]} : vector<8x8x32xf32> to vector<8x8x8xf32>
    %32 = vector.shape_cast %29 : vector<8x8xf32> to vector<8x1x8xf32>
    %33 = vector.broadcast %32 : vector<8x1x8xf32> to vector<8x8x8xf32>
    %34 = arith.mulf %33, %30 : vector<8x8x8xf32>
    %cst_18 = arith.constant dense<0.000000e+00> : vector<8x8xf32>
    %35 = vector.multi_reduction <add>, %34, %cst_18 [2] : vector<8x8x8xf32> to vector<8x8xf32>
    %cst_19 = arith.constant 0.353553385 : f32
    %36 = vector.broadcast %cst_19 : f32 to vector<8x8xf32>
    %37 = arith.mulf %35, %36 : vector<8x8xf32>
    %38 = arith.addf %37, %10 : vector<8x8xf32>
    %cst_20 = arith.constant dense<0xFF800000> : vector<8xf32>
    %39 = vector.multi_reduction <maximumf>, %38, %cst_20 [1] : vector<8x8xf32> to vector<8xf32>
    %40 = vector.shape_cast %39 : vector<8xf32> to vector<8x1xf32>
    %41 = vector.broadcast %40 : vector<8x1xf32> to vector<8x8xf32>
    %42 = arith.subf %38, %41 : vector<8x8xf32>
    %43 = math.exp %42 : vector<8x8xf32>
    %cst_21 = arith.constant dense<0.000000e+00> : vector<8xf32>
    %44 = vector.multi_reduction <add>, %43, %cst_21 [1] : vector<8x8xf32> to vector<8xf32>
    %45 = vector.shape_cast %44 : vector<8xf32> to vector<8x1xf32>
    %46 = tpu.reciprocal %45 {approx = true} : vector<8x1xf32> -> vector<8x1xf32>
    %47 = vector.broadcast %46 : vector<8x1xf32> to vector<8x8xf32>
    %48 = arith.mulf %43, %47 : vector<8x8xf32>
    %49 = vector.shape_cast %48 : vector<8x8xf32> to vector<8x8x1xf32>
    %50 = vector.broadcast %49 : vector<8x8x1xf32> to vector<8x8x8xf32>
    %51 = arith.mulf %50, %31 : vector<8x8x8xf32>
    %cst_22 = arith.constant dense<0.000000e+00> : vector<8x8xf32>
    %52 = vector.multi_reduction <add>, %51, %cst_22 [1] : vector<8x8x8xf32> to vector<8x8xf32>
    %c0_23 = arith.constant 0 : index
    %c0_24 = arith.constant 0 : index
    %c0_25 = arith.constant 0 : index
    %53 = vector.load %arg8[%c0_23, %c0_24, %c0_25] : memref<4x8x32xf32, #tpu.memory_space<vmem>>, vector<1x8x32xf32>
    %54 = vector.shape_cast %53 : vector<1x8x32xf32> to vector<8x32xf32>
    %cst_26 = arith.constant dense<0.000000e+00> : vector<8x32xf32>
    %55 = tpu.matmul %52, %54, %cst_26 {dimension_numbers = #tpu.dot_dimension_numbers<[1], [0], [0], [1], [0, 0, 1, 1], [], []>} : vector<8x8xf32>, vector<8x32xf32>, vector<8x32xf32> -> vector<8x32xf32>
    %56 = arith.addf %28, %55 : vector<8x32xf32>
    %57 = vector.extract_strided_slice %27 {offsets = [0, 8], sizes = [8, 8], strides = [1, 1]} : vector<8x32xf32> to vector<8x8xf32>
    %58 = vector.extract_strided_slice %18 {offsets = [0, 0, 8], sizes = [8, 8, 8], strides = [1, 1, 1]} : vector<8x8x32xf32> to vector<8x8x8xf32>
    %59 = vector.extract_strided_slice %20 {offsets = [0, 0, 8], sizes = [8, 8, 8], strides = [1, 1, 1]} : vector<8x8x32xf32> to vector<8x8x8xf32>
    %60 = vector.shape_cast %57 : vector<8x8xf32> to vector<8x1x8xf32>
    %61 = vector.broadcast %60 : vector<8x1x8xf32> to vector<8x8x8xf32>
    %62 = arith.mulf %61, %58 : vector<8x8x8xf32>
    %cst_27 = arith.constant dense<0.000000e+00> : vector<8x8xf32>
    %63 = vector.multi_reduction <add>, %62, %cst_27 [2] : vector<8x8x8xf32> to vector<8x8xf32>
    %cst_28 = arith.constant 0.353553385 : f32
    %64 = vector.broadcast %cst_28 : f32 to vector<8x8xf32>
    %65 = arith.mulf %63, %64 : vector<8x8xf32>
    %66 = arith.addf %65, %10 : vector<8x8xf32>
    %cst_29 = arith.constant dense<0xFF800000> : vector<8xf32>
    %67 = vector.multi_reduction <maximumf>, %66, %cst_29 [1] : vector<8x8xf32> to vector<8xf32>
    %68 = vector.shape_cast %67 : vector<8xf32> to vector<8x1xf32>
    %69 = vector.broadcast %68 : vector<8x1xf32> to vector<8x8xf32>
    %70 = arith.subf %66, %69 : vector<8x8xf32>
    %71 = math.exp %70 : vector<8x8xf32>
    %cst_30 = arith.constant dense<0.000000e+00> : vector<8xf32>
    %72 = vector.multi_reduction <add>, %71, %cst_30 [1] : vector<8x8xf32> to vector<8xf32>
    %73 = vector.shape_cast %72 : vector<8xf32> to vector<8x1xf32>
    %74 = tpu.reciprocal %73 {approx = true} : vector<8x1xf32> -> vector<8x1xf32>
    %75 = vector.broadcast %74 : vector<8x1xf32> to vector<8x8xf32>
    %76 = arith.mulf %71, %75 : vector<8x8xf32>
    %77 = vector.shape_cast %76 : vector<8x8xf32> to vector<8x8x1xf32>
    %78 = vector.broadcast %77 : vector<8x8x1xf32> to vector<8x8x8xf32>
    %79 = arith.mulf %78, %59 : vector<8x8x8xf32>
    %cst_31 = arith.constant dense<0.000000e+00> : vector<8x8xf32>
    %80 = vector.multi_reduction <add>, %79, %cst_31 [1] : vector<8x8x8xf32> to vector<8x8xf32>
    %c1 = arith.constant 1 : index
    %c0_32 = arith.constant 0 : index
    %c0_33 = arith.constant 0 : index
    %81 = vector.load %arg8[%c1, %c0_32, %c0_33] : memref<4x8x32xf32, #tpu.memory_space<vmem>>, vector<1x8x32xf32>
    %82 = vector.shape_cast %81 : vector<1x8x32xf32> to vector<8x32xf32>
    %cst_34 = arith.constant dense<0.000000e+00> : vector<8x32xf32>
    %83 = tpu.matmul %80, %82, %cst_34 {dimension_numbers = #tpu.dot_dimension_numbers<[1], [0], [0], [1], [0, 0, 1, 1], [], []>} : vector<8x8xf32>, vector<8x32xf32>, vector<8x32xf32> -> vector<8x32xf32>
    %84 = arith.addf %56, %83 : vector<8x32xf32>
    %85 = vector.extract_strided_slice %27 {offsets = [0, 16], sizes = [8, 8], strides = [1, 1]} : vector<8x32xf32> to vector<8x8xf32>
    %86 = vector.extract_strided_slice %18 {offsets = [0, 0, 16], sizes = [8, 8, 8], strides = [1, 1, 1]} : vector<8x8x32xf32> to vector<8x8x8xf32>
    %87 = vector.extract_strided_slice %20 {offsets = [0, 0, 16], sizes = [8, 8, 8], strides = [1, 1, 1]} : vector<8x8x32xf32> to vector<8x8x8xf32>
    %88 = vector.shape_cast %85 : vector<8x8xf32> to vector<8x1x8xf32>
    %89 = vector.broadcast %88 : vector<8x1x8xf32> to vector<8x8x8xf32>
    %90 = arith.mulf %89, %86 : vector<8x8x8xf32>
    %cst_35 = arith.constant dense<0.000000e+00> : vector<8x8xf32>
    %91 = vector.multi_reduction <add>, %90, %cst_35 [2] : vector<8x8x8xf32> to vector<8x8xf32>
    %cst_36 = arith.constant 0.353553385 : f32
    %92 = vector.broadcast %cst_36 : f32 to vector<8x8xf32>
    %93 = arith.mulf %91, %92 : vector<8x8xf32>
    %94 = arith.addf %93, %10 : vector<8x8xf32>
    %cst_37 = arith.constant dense<0xFF800000> : vector<8xf32>
    %95 = vector.multi_reduction <maximumf>, %94, %cst_37 [1] : vector<8x8xf32> to vector<8xf32>
    %96 = vector.shape_cast %95 : vector<8xf32> to vector<8x1xf32>
    %97 = vector.broadcast %96 : vector<8x1xf32> to vector<8x8xf32>
    %98 = arith.subf %94, %97 : vector<8x8xf32>
    %99 = math.exp %98 : vector<8x8xf32>
    %cst_38 = arith.constant dense<0.000000e+00> : vector<8xf32>
    %100 = vector.multi_reduction <add>, %99, %cst_38 [1] : vector<8x8xf32> to vector<8xf32>
    %101 = vector.shape_cast %100 : vector<8xf32> to vector<8x1xf32>
    %102 = tpu.reciprocal %101 {approx = true} : vector<8x1xf32> -> vector<8x1xf32>
    %103 = vector.broadcast %102 : vector<8x1xf32> to vector<8x8xf32>
    %104 = arith.mulf %99, %103 : vector<8x8xf32>
    %105 = vector.shape_cast %104 : vector<8x8xf32> to vector<8x8x1xf32>
    %106 = vector.broadcast %105 : vector<8x8x1xf32> to vector<8x8x8xf32>
    %107 = arith.mulf %106, %87 : vector<8x8x8xf32>
    %cst_39 = arith.constant dense<0.000000e+00> : vector<8x8xf32>
    %108 = vector.multi_reduction <add>, %107, %cst_39 [1] : vector<8x8x8xf32> to vector<8x8xf32>
    %c2 = arith.constant 2 : index
    %c0_40 = arith.constant 0 : index
    %c0_41 = arith.constant 0 : index
    %109 = vector.load %arg8[%c2, %c0_40, %c0_41] : memref<4x8x32xf32, #tpu.memory_space<vmem>>, vector<1x8x32xf32>
    %110 = vector.shape_cast %109 : vector<1x8x32xf32> to vector<8x32xf32>
    %cst_42 = arith.constant dense<0.000000e+00> : vector<8x32xf32>
    %111 = tpu.matmul %108, %110, %cst_42 {dimension_numbers = #tpu.dot_dimension_numbers<[1], [0], [0], [1], [0, 0, 1, 1], [], []>} : vector<8x8xf32>, vector<8x32xf32>, vector<8x32xf32> -> vector<8x32xf32>
    %112 = arith.addf %84, %111 : vector<8x32xf32>
    %113 = vector.extract_strided_slice %27 {offsets = [0, 24], sizes = [8, 8], strides = [1, 1]} : vector<8x32xf32> to vector<8x8xf32>
    %114 = vector.extract_strided_slice %18 {offsets = [0, 0, 24], sizes = [8, 8, 8], strides = [1, 1, 1]} : vector<8x8x32xf32> to vector<8x8x8xf32>
    %115 = vector.extract_strided_slice %20 {offsets = [0, 0, 24], sizes = [8, 8, 8], strides = [1, 1, 1]} : vector<8x8x32xf32> to vector<8x8x8xf32>
    %116 = vector.shape_cast %113 : vector<8x8xf32> to vector<8x1x8xf32>
    %117 = vector.broadcast %116 : vector<8x1x8xf32> to vector<8x8x8xf32>
    %118 = arith.mulf %117, %114 : vector<8x8x8xf32>
    %cst_43 = arith.constant dense<0.000000e+00> : vector<8x8xf32>
    %119 = vector.multi_reduction <add>, %118, %cst_43 [2] : vector<8x8x8xf32> to vector<8x8xf32>
    %cst_44 = arith.constant 0.353553385 : f32
    %120 = vector.broadcast %cst_44 : f32 to vector<8x8xf32>
    %121 = arith.mulf %119, %120 : vector<8x8xf32>
    %122 = arith.addf %121, %10 : vector<8x8xf32>
    %cst_45 = arith.constant dense<0xFF800000> : vector<8xf32>
    %123 = vector.multi_reduction <maximumf>, %122, %cst_45 [1] : vector<8x8xf32> to vector<8xf32>
    %124 = vector.shape_cast %123 : vector<8xf32> to vector<8x1xf32>
    %125 = vector.broadcast %124 : vector<8x1xf32> to vector<8x8xf32>
    %126 = arith.subf %122, %125 : vector<8x8xf32>
    %127 = math.exp %126 : vector<8x8xf32>
    %cst_46 = arith.constant dense<0.000000e+00> : vector<8xf32>
    %128 = vector.multi_reduction <add>, %127, %cst_46 [1] : vector<8x8xf32> to vector<8xf32>
    %129 = vector.shape_cast %128 : vector<8xf32> to vector<8x1xf32>
    %130 = tpu.reciprocal %129 {approx = true} : vector<8x1xf32> -> vector<8x1xf32>
    %131 = vector.broadcast %130 : vector<8x1xf32> to vector<8x8xf32>
    %132 = arith.mulf %127, %131 : vector<8x8xf32>
    %133 = vector.shape_cast %132 : vector<8x8xf32> to vector<8x8x1xf32>
    %134 = vector.broadcast %133 : vector<8x8x1xf32> to vector<8x8x8xf32>
    %135 = arith.mulf %134, %115 : vector<8x8x8xf32>
    %cst_47 = arith.constant dense<0.000000e+00> : vector<8x8xf32>
    %136 = vector.multi_reduction <add>, %135, %cst_47 [1] : vector<8x8x8xf32> to vector<8x8xf32>
    %c3 = arith.constant 3 : index
    %c0_48 = arith.constant 0 : index
    %c0_49 = arith.constant 0 : index
    %137 = vector.load %arg8[%c3, %c0_48, %c0_49] : memref<4x8x32xf32, #tpu.memory_space<vmem>>, vector<1x8x32xf32>
    %138 = vector.shape_cast %137 : vector<1x8x32xf32> to vector<8x32xf32>
    %cst_50 = arith.constant dense<0.000000e+00> : vector<8x32xf32>
    %139 = tpu.matmul %136, %138, %cst_50 {dimension_numbers = #tpu.dot_dimension_numbers<[1], [0], [0], [1], [0, 0, 1, 1], [], []>} : vector<8x8xf32>, vector<8x32xf32>, vector<8x32xf32> -> vector<8x32xf32>
    %140 = arith.addf %112, %139 : vector<8x32xf32>
    %c0_51 = arith.constant 0 : index
    %c0_52 = arith.constant 0 : index
    %141 = vector.load %arg9[%c0_51, %c0_52] : memref<1x32xf32, #tpu.memory_space<vmem>>, vector<1x32xf32>
    %142 = vector.broadcast %141 : vector<1x32xf32> to vector<8x32xf32>
    %143 = arith.addf %140, %142 : vector<8x32xf32>
    %144 = arith.addf %22, %143 : vector<8x32xf32>
    %c0_53 = arith.constant 0 : index
    %c0_54 = arith.constant 0 : index
    %145 = vector.load %arg10[%c0_53, %c0_54] : memref<1x32xf32, #tpu.memory_space<vmem>>, vector<1x32xf32>
    %c0_55 = arith.constant 0 : index
    %c0_56 = arith.constant 0 : index
    %146 = vector.load %arg11[%c0_55, %c0_56] : memref<1x32xf32, #tpu.memory_space<vmem>>, vector<1x32xf32>
    %cst_57 = arith.constant dense<0.000000e+00> : vector<8xf32>
    %147 = vector.multi_reduction <add>, %144, %cst_57 [1] : vector<8x32xf32> to vector<8xf32>
    %148 = vector.shape_cast %147 : vector<8xf32> to vector<8x1xf32>
    %cst_58 = arith.constant 3.200000e+01 : f32
    %149 = vector.broadcast %cst_58 : f32 to vector<8x1xf32>
    %150 = arith.divf %148, %149 : vector<8x1xf32>
    %151 = vector.broadcast %150 : vector<8x1xf32> to vector<8x32xf32>
    %152 = arith.subf %144, %151 : vector<8x32xf32>
    %153 = arith.mulf %152, %152 : vector<8x32xf32>
    %cst_59 = arith.constant dense<0.000000e+00> : vector<8xf32>
    %154 = vector.multi_reduction <add>, %153, %cst_59 [1] : vector<8x32xf32> to vector<8xf32>
    %155 = vector.shape_cast %154 : vector<8xf32> to vector<8x1xf32>
    %cst_60 = arith.constant 3.200000e+01 : f32
    %156 = vector.broadcast %cst_60 : f32 to vector<8x1xf32>
    %157 = arith.divf %155, %156 : vector<8x1xf32>
    %158 = vector.broadcast %150 : vector<8x1xf32> to vector<8x32xf32>
    %159 = arith.subf %144, %158 : vector<8x32xf32>
    %cst_61 = arith.constant 9.99999974E-6 : f32
    %160 = vector.broadcast %cst_61 : f32 to vector<8x1xf32>
    %161 = arith.addf %157, %160 : vector<8x1xf32>
    %162 = math.rsqrt %161 : vector<8x1xf32>
    %163 = vector.broadcast %162 : vector<8x1xf32> to vector<8x32xf32>
    %164 = arith.mulf %159, %163 : vector<8x32xf32>
    %165 = vector.broadcast %145 : vector<1x32xf32> to vector<8x32xf32>
    %166 = arith.mulf %164, %165 : vector<8x32xf32>
    %167 = vector.broadcast %146 : vector<1x32xf32> to vector<8x32xf32>
    %168 = arith.addf %166, %167 : vector<8x32xf32>
    %c0_62 = arith.constant 0 : index
    %c0_63 = arith.constant 0 : index
    %169 = vector.load %arg14[%c0_62, %c0_63] : memref<32x64xf32, #tpu.memory_space<vmem>>, vector<32x64xf32>
    %cst_64 = arith.constant dense<0.000000e+00> : vector<8x64xf32>
    %170 = tpu.matmul %168, %169, %cst_64 {dimension_numbers = #tpu.dot_dimension_numbers<[1], [0], [0], [1], [0, 0, 1, 1], [], []>} : vector<8x32xf32>, vector<32x64xf32>, vector<8x64xf32> -> vector<8x64xf32>
    %c0_65 = arith.constant 0 : index
    %c0_66 = arith.constant 0 : index
    %171 = vector.load %arg15[%c0_65, %c0_66] : memref<1x64xf32, #tpu.memory_space<vmem>>, vector<1x64xf32>
    %172 = vector.broadcast %171 : vector<1x64xf32> to vector<8x64xf32>
    %173 = arith.addf %170, %172 : vector<8x64xf32>
    %174 = arith.mulf %173, %173 : vector<8x64xf32>
    %175 = arith.mulf %173, %174 : vector<8x64xf32>
    %cst_67 = arith.constant 4.471500e-02 : f32
    %176 = vector.broadcast %cst_67 : f32 to vector<8x64xf32>
    %177 = arith.mulf %176, %175 : vector<8x64xf32>
    %178 = arith.addf %173, %177 : vector<8x64xf32>
    %cst_68 = arith.constant 0.797884583 : f32
    %179 = vector.broadcast %cst_68 : f32 to vector<8x64xf32>
    %180 = arith.mulf %179, %178 : vector<8x64xf32>
    %181 = math.tanh %180 : vector<8x64xf32>
    %cst_69 = arith.constant 1.000000e+00 : f32
    %182 = vector.broadcast %cst_69 : f32 to vector<8x64xf32>
    %183 = arith.addf %182, %181 : vector<8x64xf32>
    %cst_70 = arith.constant 5.000000e-01 : f32
    %184 = vector.broadcast %cst_70 : f32 to vector<8x64xf32>
    %185 = arith.mulf %184, %183 : vector<8x64xf32>
    %186 = arith.mulf %173, %185 : vector<8x64xf32>
    %c0_71 = arith.constant 0 : index
    %c0_72 = arith.constant 0 : index
    %187 = vector.load %arg16[%c0_71, %c0_72] : memref<64x32xf32, #tpu.memory_space<vmem>>, vector<64x32xf32>
    %cst_73 = arith.constant dense<0.000000e+00> : vector<8x32xf32>
    %188 = tpu.matmul %186, %187, %cst_73 {dimension_numbers = #tpu.dot_dimension_numbers<[1], [0], [0], [1], [0, 0, 1, 1], [], []>} : vector<8x64xf32>, vector<64x32xf32>, vector<8x32xf32> -> vector<8x32xf32>
    %c0_74 = arith.constant 0 : index
    %c0_75 = arith.constant 0 : index
    %189 = vector.load %arg17[%c0_74, %c0_75] : memref<1x32xf32, #tpu.memory_space<vmem>>, vector<1x32xf32>
    %190 = vector.broadcast %189 : vector<1x32xf32> to vector<8x32xf32>
    %191 = arith.addf %188, %190 : vector<8x32xf32>
    %192 = arith.addf %168, %191 : vector<8x32xf32>
    %c0_76 = arith.constant 0 : index
    %c0_77 = arith.constant 0 : index
    %193 = vector.load %arg12[%c0_76, %c0_77] : memref<1x32xf32, #tpu.memory_space<vmem>>, vector<1x32xf32>
    %c0_78 = arith.constant 0 : index
    %c0_79 = arith.constant 0 : index
    %194 = vector.load %arg13[%c0_78, %c0_79] : memref<1x32xf32, #tpu.memory_space<vmem>>, vector<1x32xf32>
    %cst_80 = arith.constant dense<0.000000e+00> : vector<8xf32>
    %195 = vector.multi_reduction <add>, %192, %cst_80 [1] : vector<8x32xf32> to vector<8xf32>
    %196 = vector.shape_cast %195 : vector<8xf32> to vector<8x1xf32>
    %cst_81 = arith.constant 3.200000e+01 : f32
    %197 = vector.broadcast %cst_81 : f32 to vector<8x1xf32>
    %198 = arith.divf %196, %197 : vector<8x1xf32>
    %199 = vector.broadcast %198 : vector<8x1xf32> to vector<8x32xf32>
    %200 = arith.subf %192, %199 : vector<8x32xf32>
    %201 = arith.mulf %200, %200 : vector<8x32xf32>
    %cst_82 = arith.constant dense<0.000000e+00> : vector<8xf32>
    %202 = vector.multi_reduction <add>, %201, %cst_82 [1] : vector<8x32xf32> to vector<8xf32>
    %203 = vector.shape_cast %202 : vector<8xf32> to vector<8x1xf32>
    %cst_83 = arith.constant 3.200000e+01 : f32
    %204 = vector.broadcast %cst_83 : f32 to vector<8x1xf32>
    %205 = arith.divf %203, %204 : vector<8x1xf32>
    %206 = vector.broadcast %198 : vector<8x1xf32> to vector<8x32xf32>
    %207 = arith.subf %192, %206 : vector<8x32xf32>
    %cst_84 = arith.constant 9.99999974E-6 : f32
    %208 = vector.broadcast %cst_84 : f32 to vector<8x1xf32>
    %209 = arith.addf %205, %208 : vector<8x1xf32>
    %210 = math.rsqrt %209 : vector<8x1xf32>
    %211 = vector.broadcast %210 : vector<8x1xf32> to vector<8x32xf32>
    %212 = arith.mulf %207, %211 : vector<8x32xf32>
    %213 = vector.broadcast %193 : vector<1x32xf32> to vector<8x32xf32>
    %214 = arith.mulf %212, %213 : vector<8x32xf32>
    %215 = vector.broadcast %194 : vector<1x32xf32> to vector<8x32xf32>
    %216 = arith.addf %214, %215 : vector<8x32xf32>
    %c0_85 = arith.constant 0 : index
    %c0_86 = arith.constant 0 : index
    %217 = vector.load %arg18[%c0_85, %c0_86] : memref<32x128xf32, #tpu.memory_space<vmem>>, vector<32x128xf32>
    %cst_87 = arith.constant dense<0.000000e+00> : vector<8x128xf32>
    %218 = tpu.matmul %216, %217, %cst_87 {dimension_numbers = #tpu.dot_dimension_numbers<[1], [0], [0], [1], [0, 0, 1, 1], [], []>} : vector<8x32xf32>, vector<32x128xf32>, vector<8x128xf32> -> vector<8x128xf32>
    %c0_88 = arith.constant 0 : index
    %c0_89 = arith.constant 0 : index
    %219 = vector.load %arg19[%c0_88, %c0_89] : memref<1x128xf32, #tpu.memory_space<vmem>>, vector<1x128xf32>
    %220 = vector.broadcast %219 : vector<1x128xf32> to vector<8x128xf32>
    %221 = arith.addf %218, %220 : vector<8x128xf32>
    %c0_90 = arith.constant 0 : index
    %c0_91 = arith.constant 0 : index
    %222 = vector.load %arg20[%c0_90, %c0_91] : memref<8x128xf32, #tpu.memory_space<vmem>>, vector<8x128xf32>
    tpu.vector_store %arg20[%c0_90, %c0_91], %221 {strides = array<i32>} : memref<8x128xf32, #tpu.memory_space<vmem>>, vector<8x128xf32>,
    return
  }
  func.func @transform_0(%arg0: i32) -> (i32, i32, i32) {
    %c0_i32 = arith.constant 0 : i32
    %c0_i32_0 = arith.constant 0 : i32
    %c0_i32_1 = arith.constant 0 : i32
    return %arg0, %c0_i32, %c0_i32_0 : i32, i32, i32
  }
  func.func @transform_1(%arg0: i32) -> (i32, i32) {
    %c0_i32 = arith.constant 0 : i32
    %c0_i32_0 = arith.constant 0 : i32
    return %arg0, %c0_i32 : i32, i32
  }
  func.func @transform_2(%arg0: i32) -> (i32, i32) {
    %c0_i32 = arith.constant 0 : i32
    %c0_i32_0 = arith.constant 0 : i32
    %c0_i32_1 = arith.constant 0 : i32
    return %c0_i32, %c0_i32_0 : i32, i32
  }
  func.func @transform_3(%arg0: i32) -> (i32, i32) {
    %c0_i32 = arith.constant 0 : i32
    %c0_i32_0 = arith.constant 0 : i32
    %c0_i32_1 = arith.constant 0 : i32
    return %c0_i32, %c0_i32_0 : i32, i32
  }
  func.func @transform_4(%arg0: i32) -> (i32, i32) {
    %c0_i32 = arith.constant 0 : i32
    %c0_i32_0 = arith.constant 0 : i32
    %c0_i32_1 = arith.constant 0 : i32
    return %c0_i32, %c0_i32_0 : i32, i32
  }
  func.func @transform_5(%arg0: i32) -> (i32, i32) {
    %c0_i32 = arith.constant 0 : i32
    %c0_i32_0 = arith.constant 0 : i32
    %c0_i32_1 = arith.constant 0 : i32
    return %c0_i32, %c0_i32_0 : i32, i32
  }
  func.func @transform_6(%arg0: i32) -> (i32, i32) {
    %c0_i32 = arith.constant 0 : i32
    %c0_i32_0 = arith.constant 0 : i32
    %c0_i32_1 = arith.constant 0 : i32
    return %c0_i32, %c0_i32_0 : i32, i32
  }
  func.func @transform_7(%arg0: i32) -> (i32, i32, i32) {
    %c0_i32 = arith.constant 0 : i32
    %c0_i32_0 = arith.constant 0 : i32
    %c0_i32_1 = arith.constant 0 : i32
    %c0_i32_2 = arith.constant 0 : i32
    return %c0_i32, %c0_i32_0, %c0_i32_1 : i32, i32, i32
  }
  func.func @transform_8(%arg0: i32) -> (i32, i32) {
    %c0_i32 = arith.constant 0 : i32
    %c0_i32_0 = arith.constant 0 : i32
    %c0_i32_1 = arith.constant 0 : i32
    return %c0_i32, %c0_i32_0 : i32, i32
  }
  func.func @transform_9(%arg0: i32) -> (i32, i32) {
    %c0_i32 = arith.constant 0 : i32
    %c0_i32_0 = arith.constant 0 : i32
    %c0_i32_1 = arith.constant 0 : i32
    return %c0_i32, %c0_i32_0 : i32, i32
  }
  func.func @transform_10(%arg0: i32) -> (i32, i32) {
    %c0_i32 = arith.constant 0 : i32
    %c0_i32_0 = arith.constant 0 : i32
    %c0_i32_1 = arith.constant 0 : i32
    return %c0_i32, %c0_i32_0 : i32, i32
  }
  func.func @transform_11(%arg0: i32) -> (i32, i32) {
    %c0_i32 = arith.constant 0 : i32
    %c0_i32_0 = arith.constant 0 : i32
    %c0_i32_1 = arith.constant 0 : i32
    return %c0_i32, %c0_i32_0 : i32, i32
  }
  func.func @transform_12(%arg0: i32) -> (i32, i32) {
    %c0_i32 = arith.constant 0 : i32
    %c0_i32_0 = arith.constant 0 : i32
    %c0_i32_1 = arith.constant 0 : i32
    return %c0_i32, %c0_i32_0 : i32, i32
  }
  func.func @transform_13(%arg0: i32) -> (i32, i32) {
    %c0_i32 = arith.constant 0 : i32
    %c0_i32_0 = arith.constant 0 : i32
    %c0_i32_1 = arith.constant 0 : i32
    return %c0_i32, %c0_i32_0 : i32, i32
  }
  func.func @transform_14(%arg0: i32) -> (i32, i32) {
    %c0_i32 = arith.constant 0 : i32
    %c0_i32_0 = arith.constant 0 : i32
    %c0_i32_1 = arith.constant 0 : i32
    return %c0_i32, %c0_i32_0 : i32, i32
  }
  func.func @transform_15(%arg0: i32) -> (i32, i32) {
    %c0_i32 = arith.constant 0 : i32
    %c0_i32_0 = arith.constant 0 : i32
    %c0_i32_1 = arith.constant 0 : i32
    return %c0_i32, %c0_i32_0 : i32, i32
  }
  func.func @transform_16(%arg0: i32) -> (i32, i32) {
    %c0_i32 = arith.constant 0 : i32
    %c0_i32_0 = arith.constant 0 : i32
    %c0_i32_1 = arith.constant 0 : i32
    return %c0_i32, %c0_i32_0 : i32, i32
  }
  func.func @transform_17(%arg0: i32) -> (i32, i32) {
    %c0_i32 = arith.constant 0 : i32
    %c0_i32_0 = arith.constant 0 : i32
    %c0_i32_1 = arith.constant 0 : i32
    return %c0_i32, %c0_i32_0 : i32, i32
  }
  func.func @transform_18(%arg0: i32) -> (i32, i32) {
    %c0_i32 = arith.constant 0 : i32
    %c0_i32_0 = arith.constant 0 : i32
    %c0_i32_1 = arith.constant 0 : i32
    return %c0_i32, %c0_i32_0 : i32, i32
  }
  func.func @transform_19(%arg0: i32) -> (i32, i32) {
    %c0_i32 = arith.constant 0 : i32
    %c0_i32_0 = arith.constant 0 : i32
    return %arg0, %c0_i32 : i32, i32
  }
}

</mosaic_0001>

<bundles_post_ra>
// kernel: classification_forward.1
= control target key start
LH: loop header
LB: loop body
LE: loop exit
PB: predicated region body
PF: predicated region fallthrough
CT: control target
= control target key end

     0   :  { %s3603_s21 = smov 1   ;;  %v4905_v10 = vmov 0.0|0.0   ;;  %vm3605_vm0 = vmmov 0   ;;  %v4907_v17 = vmov 0.0   ;;  %vm255_vm1 = vcmask 1041409   ;;  %s3607_s27 = smov 127   ;;  %s4882_s2 = inlined_call_operand.vmem [shape: f32[8,32], index: 2, kind: input, shape index: {}]   ;;  %s4883_s5 = inlined_call_operand.vmem [shape: f32[32,64], index: 5, kind: input, shape index: {}]   ;;  %s4884_s3 = inlined_call_operand.vmem [shape: f32[32,32], index: 3, kind: input, shape index: {}]   ;;  %s4885_s0 = inlined_call_operand.vmem [shape: f32[8,8,33], index: 0, kind: input, shape index: {}]   ;;  %s4886_s1 = inlined_call_operand.vmem [shape: f32[8,8], index: 1, kind: input, shape index: {}]   ;;  %s4887_s4 = inlined_call_operand.vmem [shape: f32[1,32], index: 4, kind: input, shape index: {}]   ;;  %s4888_s6 = inlined_call_operand.vmem [shape: f32[1,64], index: 6, kind: input, shape index: {}]   ;;  %s4889_s7 = inlined_call_operand.vmem [shape: f32[4,8,32], index: 7, kind: input, shape index: {}]   ;;  %s4890_s8 = inlined_call_operand.vmem [shape: f32[1,32], index: 8, kind: input, shape index: {}]   ;;  %s4891_s9 = inlined_call_operand.vmem [shape: f32[1,32], index: 9, kind: input, shape index: {}]   ;;  %s4892_s10 = inlined_call_operand.vmem [shape: f32[1,32], index: 10, kind: input, shape index: {}]   ;;  %s4893_s13 = inlined_call_operand.vmem [shape: f32[32,64], index: 13, kind: input, shape index: {}]   ;;  %s4894_s15 = inlined_call_operand.vmem [shape: f32[64,32], index: 15, kind: input, shape index: {}]   ;;  %s4895_s14 = inlined_call_operand.vmem [shape: f32[1,64], index: 14, kind: input, shape index: {}]   ;;  %s4896_s16 = inlined_call_operand.vmem [shape: f32[1,32], index: 16, kind: input, shape index: {}]   ;;  %s4897_s11 = inlined_call_operand.vmem [shape: f32[1,32], index: 11, kind: input, shape index: {}]   ;;  %s4898_s12 = inlined_call_operand.vmem [shape: f32[1,32], index: 12, kind: input, shape index: {}]   ;;  %s4899_s17 = inlined_call_operand.vmem [shape: f32[32,128], index: 17, kind: input, shape index: {}]   ;;  %s4900_s18 = inlined_call_operand.vmem [shape: f32[1,128], index: 18, kind: input, shape index: {}]   ;;  %s4901_s19 = inlined_call_operand.vmem [shape: f32[8,128], index: 19, kind: output, shape index: {}]  }
   0x1   :  { %4937 = sst [smem:[#allocation21_spill]] %s4882_s2  ;;  %3479 = vmatprep.subr.bf16.mxu1 %v4905_v10  ;;  %3407 = vmatprep.mubr.msk.f32.mxu1 %vm3605_vm0, %v4907_v17  ;;  %vm258_vm2 = vcmask 1042434   ;;  %vm261_vm3 = vcmask 1043459   ;;  %vm264_vm4 = vcmask 1044484   ;;  %vm267_vm5 = vcmask 1045509   ;;  %v83_v47 = vld [vmem:[%s4886_s1] sm:$0xff] }
   0x2   :  { %4938 = sst [smem:[#allocation22_spill]] %s4883_s5  ;;  %s4941_s20 = sld [smem:[#allocation21_spill]]  ;;  %vm270_vm6 = vcmask 1046534   ;;  %vm273_vm7 = vcmask 1047559   ;;  %v4909_v46 = vlaneseq  ;;  %v84_v48 = vsub.f32 1.0, %v83_v47 }
   0x3   :  { %4939 = sst [smem:[#allocation23_spill]] %s4884_s3  ;;  %s4942_s3 = sld [smem:[#allocation22_spill]]  ;;  %vm121_vm8 = vcmask 261120   ;;  %vm447_vm9 = vcmask 64512   ;;  %vm868_vm10 = vcmask 326912   ;;  %vm1311_vm11 = vcmask 392512  }
   0x4   :  { %4940 = sst [smem:[#allocation24_spill]] %s4885_s0  ;;  %s4943_s2 = sld [smem:[#allocation23_spill]]  ;;  %v3819_v49 = vshrl.u32 %v4909_v46, 7  ;;  %v85_v50 = vmul.f32 -1e+09, %v84_v48  ;;  %vm1925_vm12 = vcmask 458112  }
   0x5   :  { %s4944_s0 = sld [smem:[#allocation24_spill]]  ;;  %vm2451_vm13 = vcmask 523712   ;;  %s3614_s25 = smov 88   ;;  %vm2930_vm14 = vcmask 523264  }
   0x6   :  { %v3824_v51 = vsub.s32 0, %v3819_v49  ;;  %v3827_v52 = vsub.s32 2, %v3819_v49  ;;  %v3834_v55 = vsub.s32 3, %v3819_v49  ;;  %s3615_s26 = smov 80  }
   0x8   :  { %v70_v0 = vld [vmem:[%s4941_s20] sm:$0xff]  ;;  %v484_v53 = vrot.slane %v85_v50, %v3824_v51  ;;  %v498_v54 = vrot.slane %v85_v50, %v3827_v52  ;;  %v505_v56 = vrot.slane %v85_v50, %v3834_v55  ;;  %s3611_s20 = smov 104  }
   0x9   :  { %72 = vrot.lane.b32.xlu0 %v70_v0, %s3603_s21  ;;  %v86_v1 = vld [vmem:[%s4942_s3] sm:$0xff]  ;;  %v87_v2 = vld [vmem:[%s4942_s3 + $0x8] sm:$0xff]  ;;  %v88_v3 = vld [vmem:[%s4942_s3 + $0x10] sm:$0xff] }
   0xa   :  { %v3471_v4 = vpack.c.bf16 %v87_v2, %v86_v1  ;;  %v89_v5 = vld [vmem:[%s4942_s3 + $0x18] sm:$0xff]  ;;  %v243_v7 = vld [vmem:[%s4943_s2] sm:$0xff]  ;;  %v244_v8 = vld [vmem:[%s4943_s2 + $0x8] sm:$0xff]  ;;  %v3855_v2 = vsub.s32 4, %v3819_v49  ;;  %s3613_s3 = smov 96  }
   0xb   :  { %v3475_v6 = vpack.c.bf16 %v89_v5, %v88_v3  ;;  %v3480_v9 = vpack.c.bf16 %v244_v8, %v243_v7  ;;  %v245_v11 = vld [vmem:[%s4943_s2 + $0x10] sm:$0xff]  ;;  %v246_v12 = vld [vmem:[%s4943_s2 + $0x18] sm:$0xff]  ;;  %v63_v14 = vld [vmem:[%s4944_s0 + $0x8] sm:$0xff]  ;;  %v3867_v8 = vsub.s32 7, %v3819_v49 }
   0xc   :  { %3472 = vmatprep.subr.bf16.mxu0 %v3471_v4  ;;  %v3483_v13 = vpack.c.bf16 %v246_v12, %v245_v11  ;;  %v62_v15 = vld [vmem:[%s4944_s0] sm:$0xff]  ;;  %v64_v16 = vld [vmem:[%s4944_s0 + $0x10] sm:$0xff]  ;;  %v65_v19 = vld [vmem:[%s4944_s0 + $0x18] sm:$0xff]  ;;  %v512_v3 = vrot.slane %v85_v50, %v3855_v2  ;;  %v3871_v11 = vsub.s32 1, %v3819_v49 }
   0xd   :  { %3474 = vmatpush3.bf16.msra.mxu0 %v3471_v4  ;;  %3481 = vmatpush3.bf16.msra.mxu1 %v3480_v9  ;;  %v66_v18 = vld [vmem:[%s4944_s0 + $0x20] sm:$0xff]  ;;  %v67_v21 = vld [vmem:[%s4944_s0 + $0x28] sm:$0xff]  ;;  %v68_v25 = vld [vmem:[%s4944_s0 + $0x30] sm:$0xff]  ;;  %v3859_v4 = vsub.s32 5, %v3819_v49  ;;  %v533_v9 = vrot.slane %v85_v50, %v3867_v8 }
   0xe   :  { %3476 = vmatprep.subr.bf16.mxu0 %v3475_v6  ;;  %3482 = vmatprep.subr.bf16.mxu1 %v4905_v10  ;;  %v69_v27 = vld [vmem:[%s4944_s0 + $0x38] sm:$0xff]  ;;  %v491_v12 = vrot.slane %v85_v50, %v3871_v11  ;;  %s3616_s0 = smov 72  }
   0xf   :  { %v519_v5 = vrot.slane %v85_v50, %v3859_v4 }
  0x11   :  { %3478 = vmatpush3.bf16.msra.mxu0 %v3475_v6  ;;  %3484 = vmatpush3.bf16.msra.mxu1 %v3483_v13  ;;  %v3863_v6 = vsub.s32 6, %v3819_v49  ;;  %v3608_v13 = vmov 1966171168  }
  0x12   :  { %3410 = vmatprep.subr.mxu1 %v4907_v17  ;;  %3425 = vmatprep.subr.mxu0 %v4907_v17 }
  0x13   :  { %v526_v7 = vrot.slane %v85_v50, %v3863_v6 }
  0x7b   :  { %v73_v20 = vpop.permute.xlu0 %72 }
  0x7c   :  { %v3769_v22 = vadd.f32 %v73_v20, %v63_v14  ;;  %v3771_v23 = vadd.f32 %v73_v20, %v62_v15  ;;  %v3773_v24 = vadd.f32 %v73_v20, %v64_v16  ;;  %v3778_v26 = vadd.f32 %v73_v20, %v66_v18 }
  0x7d   :  { %v3783_v28 = vadd.f32 %v73_v20, %v65_v19  ;;  %v3791_v31 = vadd.f32 %v73_v20, %v67_v21  ;;  %v3793_v32 = vadd.f32 %v73_v20, %v68_v25  ;;  %v3797_v34 = vadd.f32 %v73_v20, %v69_v27  ;;  %v3315_v19 = vld [vmem:[%s4887_s4] ss:$0 sm:$0xff]  ;;  %s3609_s4 = smov 120  }
  0x7e   :  { %4945 = vst [vmem:[#allocation2_spill] sm:$0xff] %v3769_v22  ;;  %4946 = vst [vmem:[#allocation3_spill] sm:$0xff] %v3771_v23  ;;  %107 = vrot.lane.b32.xlu1 %v3769_v22, %s3607_s27  ;;  %v254_v29 = vrot.slane %v3769_v22, 7  ;;  %105 = vrot.lane.b32.xlu0 %v3771_v23, %s3607_s27  ;;  %v257_v30 = vrot.slane %v3773_v24, 6  ;;  %v263_v36 = vrot.slane %v3778_v26, 4  ;;  %v352_v14 = vunpack.c.l.s4 %v3608_v13 }
  0x7f   :  { %4947 = vst [vmem:[#allocation4_spill] sm:$0xff] %v3773_v24  ;;  %4948 = vst [vmem:[#allocation5_spill] sm:$0xff] %v3778_v26  ;;  %v260_v35 = vrot.slane %v3783_v28, 5  ;;  %v266_v39 = vrot.slane %v3791_v31, 3  ;;  %v269_v41 = vrot.slane %v3793_v32, 2  ;;  %v272_v43 = vrot.slane %v3797_v34, 1 }
  0x80   :  { %4949 = vst [vmem:[#allocation6_spill] sm:$0xff] %v3783_v28  ;;  %4950 = vst [vmem:[#allocation7_spill] sm:$0xff] %v3791_v31  ;;  %v256_v33 = vsel %vm255_vm1, %v254_v29, %v3771_v23  ;;  %v353_v18 = vunpack.c.0.s8 %v352_v14 }
  0x81   :  { %4951 = vst [vmem:[#allocation8_spill] sm:$0xff] %v3793_v32  ;;  %4952 = vst [vmem:[#allocation9_spill] sm:$0xff] %v3797_v34  ;;  %v259_v37 = vsel %vm258_vm2, %v257_v30, %v256_v33  ;;  %v3306_v33 = vld [vmem:[%s4888_s6] ss:$0 sm:$0xff]  ;;  %s3610_s6 = smov 112  }
  0x82   :  { %109 = vrot.lane.b32.xlu0 %v3773_v24, %s3607_s27  ;;  %v262_v38 = vsel %vm261_vm3, %v260_v35, %v259_v37  ;;  %v356_v20 = vsub.s32 %v353_v18, %v3819_v49 }
  0x83   :  { %v265_v40 = vsel %vm264_vm4, %v263_v36, %v262_v38 }
  0x84   :  { %v268_v42 = vsel %vm267_vm5, %v266_v39, %v265_v40 }
  0x85   :  { %v271_v44 = vsel %vm270_vm6, %v269_v41, %v268_v42 }
  0x86   :  { %113 = vrot.lane.b32.xlu0 %v3778_v26, %s3607_s27  ;;  %v274_v45 = vsel %vm273_vm7, %v272_v43, %v271_v44 }
  0x87   :  { %275 = vrot.lane.b32.xlu1 %v274_v45, %s3607_s27 }
  0x8a   :  { %117 = vrot.lane.b32.xlu0 %v3793_v32, %s3607_s27 }
  0x8b   :  { %111 = vrot.lane.b32.xlu1 %v3783_v28, %s3607_s27 }
  0x8e   :  { %486 = vbcast.lane.b32.xlu0 %v484_v53, 256 }
  0x8f   :  { %115 = vrot.lane.b32.xlu1 %v3791_v31, %s3607_s27 }
  0x92   :  { %500 = vbcast.lane.b32.xlu0 %v498_v54, 256 }
  0x93   :  { %119 = vrot.lane.b32.xlu1 %v3797_v34, %s3607_s27 }
  0x96   :  { %507 = vbcast.lane.b32.xlu0 %v505_v56, 256 }
  0x97   :  { %493 = vbcast.lane.b32.xlu1 %v491_v12, 256 }
  0x9a   :  { %514 = vbcast.lane.b32.xlu0 %v512_v3, 256 }
  0x9e   :  { %521 = vbcast.lane.b32.xlu0 %v519_v5, 256 }
  0xa2   :  { %528 = vbcast.lane.b32.xlu0 %v526_v7, 256 }
  0xa6   :  { %535 = vbcast.lane.b32.xlu0 %v533_v9, 256 }
  0xf0   :  { %v108_v57 = vpop.permute.xlu1 %107  ;;  %v106_v58 = vpop.permute.xlu0 %105 }
  0xf1   :  { %3387 = vmatprep.mubr.msk.f32.mxu0 %vm121_vm8, %v106_v58 }
  0xf2   :  { %3388 = vmatmul.mubr.msk.f32.vlgmr.msra.gmra.mrb[0].mxu0 %vm121_vm8, %v108_v57 }
  0xf4   :  { %v110_v59 = vpop.permute.xlu0 %109 }
  0xf5   :  { %3390 = vmatprep.mubr.msk.f32.mxu0 %vm121_vm8, %v110_v59 }
  0xf8   :  { %v114_v61 = vpop.permute.xlu0 %113 }
  0xf9   :  { %v276_v60 = vpop.permute.xlu1 %275 }
  0xfa   :  { %3408 = vmatmul.mubr.msk.f32.vlgmr.msra.gmra.mrb[0].mxu1 %vm121_vm8, %v276_v60 }
  0xfb   :  { %3412 = vmatprep.mubr.msk.f32.mxu1 %vm3605_vm0, %v4907_v17 }
  0xfc   :  { %v118_v0 = vpop.permute.xlu0 %117 }
  0xfd   :  { %v112_v62 = vpop.permute.xlu1 %111 }
  0xfe   :  { %3391 = vmatmul.mubr.msk.f32.gmra.mrb[2].mxu0 %vm121_vm8, %v112_v62 }
  0xff   :  { %3393 = vmatprep.mubr.msk.f32.mxu0 %vm121_vm8, %v114_v61 }
 0x101   :  { %v116_v63 = vpop.permute.xlu1 %115 }
 0x102   :  { %3394 = vmatmul.mubr.msk.f32.gmra.mrb[4].mxu0 %vm121_vm8, %v116_v63 }
 0x103   :  { %3396 = vmatprep.mubr.msk.f32.mxu0 %vm121_vm8, %v118_v0 }
 0x105   :  { %v120_v1 = vpop.permute.xlu1 %119 }
 0x106   :  { %3397 = vmatmul.mubr.msk.f32.gmra.mrb[6].mxu0 %vm121_vm8, %v120_v1 }
 0x107   :  { %3427 = vmatprep.mubr.msk.f32.mxu0 %vm3605_vm0, %v4907_v17 }
 0x1c5   :  { %v3389_v15 = vpop.f32.mrb[0].mxu0 }
 0x1c6   :  { %v204_v16 = vpop.f32.mrb[1].mxu0  ;;  %v3884_v45 = vadd.f32 %v3389_v15, %v3306_v33 }
 0x1c7   :  { %v3886_v47 = vadd.f32 %v3306_v33, %v204_v16 }
 0x1c8   :  { %4954 = vst [vmem:[#allocation11_spill] sm:$0xff] %v3884_v45 }
 0x1c9   :  { %4955 = vst [vmem:[#allocation12_spill] sm:$0xff] %v3886_v47 }
 0x1cd   :  { %v345_v21 = vpop.f32.mrb[0].mxu1 }
 0x1ce   :  { %v346_v25 = vadd.f32 %v3315_v19, %v345_v21  ;;  %v3409_v27 = vpop.f32.mrb[1].mxu1 }
 0x1d0   :  { %v350_v29 = vcombine.high %v346_v25, %v346_v25  ;;  %v357_v30 = vrot.slane %v346_v25, %v356_v20 }
 0x1d1   :  { %v3392_v35 = vpop.f32.mrb[2].mxu0 }
 0x1d2   :  { %v364_v36 = vrot.slane %v350_v29, %v356_v20  ;;  %v365_v37 = vcombine.high %v357_v30, %v357_v30  ;;  %v373_v38 = vrot.slane %v357_v30, %v356_v20  ;;  %v3881_v39 = vadd.f32 %v3392_v35, %v3306_v33  ;;  %v214_v40 = vpop.f32.mrb[3].mxu0 }
 0x1d3   :  { %v3904_v1 = vadd.f32 %v3306_v33, %v214_v40 }
 0x1d4   :  { %4953 = vst [vmem:[#allocation10_spill] sm:$0xff] %v3881_v39  ;;  %v366_v41 = vcombine.high %v364_v36, %v364_v36  ;;  %v387_v42 = vrot.slane %v365_v37, %v356_v20  ;;  %v402_v43 = vrot.slane %v373_v38, %v3824_v51  ;;  %v395_v62 = vcombine.high %v373_v38, %v373_v38 }
 0x1d5   :  { %v3395_v44 = vpop.f32.mrb[4].mxu0  ;;  %v380_v63 = vrot.slane %v364_v36, %v356_v20  ;;  %4959 = vst [vmem:[#allocation16_spill] sm:$0xff] %v3904_v1 }
 0x1d6   :  { %v3888_v48 = vrot.slane %v366_v41, %v356_v20  ;;  %v406_v50 = vrot.slane %v387_v42, %v3824_v51  ;;  %v224_v53 = vpop.f32.mrb[5].mxu0  ;;  %v3891_v54 = vadd.f32 %v3395_v44, %v3306_v33  ;;  %v439_v56 = vmul.f32 %v402_v43, %v3886_v47 }
 0x1d7   :  { %v410_v0 = vrot.slane %v395_v62, %v3824_v51  ;;  %v418_v3 = vrot.slane %v380_v63, %v3824_v51  ;;  %v3909_v5 = vadd.f32 %v3306_v33, %v224_v53  ;;  %v397_v16 = vcombine.high %v387_v42, %v387_v42 }
 0x1d8   :  { %4956 = vst [vmem:[#allocation13_spill] sm:$0xff] %v3891_v54  ;;  %v440_v57 = vmul.f32 %v406_v50, %v3884_v45  ;;  %934 = vrot.lane.b32.xlu0 %v439_v56, %s3609_s4  ;;  %v448_v12 = vsel %vm447_vm9, %v439_v56, 0.0  ;;  %v396_v18 = vcombine.high %v380_v63, %v380_v63  ;;  %v422_v27 = vrot.slane %v3888_v48, %v3824_v51 }
 0x1d9   :  { %v3398_v58 = vpop.f32.mrb[6].mxu0  ;;  %4960 = vst [vmem:[#allocation17_spill] sm:$0xff] %v3909_v5  ;;  %v441_v7 = vmul.f32 %v410_v0, %v3904_v1  ;;  %v443_v9 = vmul.f32 %v418_v3, %v3909_v5  ;;  %v414_v19 = vrot.slane %v397_v16, %v3824_v51  ;;  %v398_v37 = vcombine.high %v3888_v48, %v3888_v48 }
 0x1da   :  { %v3896_v59 = vadd.f32 %v3398_v58, %v3306_v33  ;;  %936 = vrot.lane.b32.xlu1 %v440_v57, %s3609_s4  ;;  %v234_v60 = vpop.f32.mrb[7].mxu0  ;;  %v451_v13 = vsel %vm447_vm9, %v440_v57, 0.0  ;;  %v426_v20 = vrot.slane %v396_v18, %v3824_v51  ;;  %v444_v29 = vmul.f32 %v422_v27, %v3891_v54 }
 0x1db   :  { %v3899_v61 = vadd.f32 %v3306_v33, %v234_v60  ;;  %v454_v14 = vsel %vm447_vm9, %v441_v7, 0.0  ;;  %v460_v15 = vsel %vm447_vm9, %v443_v9, 0.0  ;;  %v442_v25 = vmul.f32 %v414_v19, %v3881_v39  ;;  %v3940_v33 = vpop.permute.xlu0 %486 }
 0x1dc   :  { %4957 = vst [vmem:[#allocation14_spill] sm:$0xff] %v3896_v59  ;;  %1548 = vrot.lane.b32.xlu0 %v439_v56, %s3610_s6  ;;  %v463_v30 = vsel %vm447_vm9, %v444_v29, 0.0  ;;  %v430_v41 = vrot.slane %v398_v37, %v3824_v51  ;;  %v3612_v48 = vmov 0  }
 0x1dd   :  { %4958 = vst [vmem:[#allocation15_spill] sm:$0xff] %v3899_v61  ;;  %v445_v21 = vmul.f32 %v426_v20, %v3899_v61  ;;  %v457_v36 = vsel %vm447_vm9, %v442_v25, 0.0  ;;  %3524 = vset.pattern.permute.xlu1 %v3612_v48  ;;  %3523 = vset.pattern.permute.xlu0 %v3612_v48 }
 0x1de   :  { %1550 = vrot.lane.b32.xlu1 %v440_v57, %s3610_s6  ;;  %v446_v43 = vmul.f32 %v430_v41, %v3896_v59 }
 0x1df   :  { %v3942_v35 = vpop.permute.xlu0 %500  ;;  %v466_v38 = vsel %vm447_vm9, %v445_v21, 0.0 }
 0x1e0   :  { %2074 = vrot.lane.b32.xlu0 %v439_v56, %s3611_s20  ;;  %v3963_v56 = vpop.permute.xlu1 %493  ;;  %v469_v18 = vsel %vm447_vm9, %v446_v43, 0.0 }
 0x1e2   :  { %2076 = vrot.lane.b32.xlu1 %v440_v57, %s3611_s20 }
 0x1e3   :  { %v3948_v40 = vpop.permute.xlu0 %507 }
 0x1e6   :  { %2078 = vrot.lane.b32.xlu1 %v441_v7, %s3611_s20 }
 0x1e7   :  { %v3951_v42 = vpop.permute.xlu0 %514 }
 0x1ea   :  { %2082 = vrot.lane.b32.xlu1 %v443_v9, %s3611_s20 }
 0x1eb   :  { %v3955_v44 = vpop.permute.xlu0 %521 }
 0x1ef   :  { %v3958_v50 = vpop.permute.xlu0 %528 }
 0x1f3   :  { %v3961_v53 = vpop.permute.xlu0 %535 }
 0x1ff   :  { %449 = vadd.xlane.f32.xlu0 %v448_v12 }
 0x20e   :  { %452 = vadd.xlane.f32.xlu1 %v451_v13 }
 0x212   :  { %455 = vadd.xlane.f32.xlu1 %v454_v14 }
 0x215   :  { %938 = vrot.lane.b32.xlu0 %v441_v7, %s3609_s4 }
 0x216   :  { %461 = vadd.xlane.f32.xlu1 %v460_v15 }
 0x219   :  { %942 = vrot.lane.b32.xlu0 %v443_v9, %s3609_s4 }
 0x21d   :  { %1552 = vrot.lane.b32.xlu0 %v441_v7, %s3610_s6 }
 0x221   :  { %1556 = vrot.lane.b32.xlu0 %v443_v9, %s3610_s6 }
 0x225   :  { %946 = vrot.lane.b32.xlu0 %v445_v21, %s3609_s4 }
 0x227   :  { %940 = vrot.lane.b32.xlu1 %v442_v25, %s3609_s4 }
 0x229   :  { %1558 = vrot.lane.b32.xlu0 %v444_v29, %s3610_s6 }
 0x22b   :  { %944 = vrot.lane.b32.xlu1 %v444_v29, %s3609_s4 }
 0x22d   :  { %1560 = vrot.lane.b32.xlu0 %v445_v21, %s3610_s6 }
 0x22f   :  { %1554 = vrot.lane.b32.xlu1 %v442_v25, %s3610_s6 }
 0x231   :  { %2086 = vrot.lane.b32.xlu0 %v445_v21, %s3611_s20 }
 0x233   :  { %2080 = vrot.lane.b32.xlu1 %v442_v25, %s3611_s20 }
 0x237   :  { %2084 = vrot.lane.b32.xlu1 %v444_v29, %s3611_s20 }
 0x24a   :  { %v935_v57 = vpop.permute.xlu0 %934 }
 0x24b   :  { %v958_v63 = vsel %vm447_vm9, %v935_v57, 0.0 }
 0x24c   :  { %v937_v58 = vpop.permute.xlu1 %936 }
 0x24e   :  { %v1549_v60 = vpop.permute.xlu0 %1548 }
 0x24f   :  { %v1572_v25 = vsel %vm447_vm9, %v1549_v60, 0.0 }
 0x250   :  { %464 = vadd.xlane.f32.xlu0 %v463_v30  ;;  %v1551_v62 = vpop.permute.xlu1 %1550 }
 0x251   :  { %v1575_v16 = vsel %vm447_vm9, %v1551_v62, 0.0 }
 0x252   :  { %v2075_v0 = vpop.permute.xlu0 %2074 }
 0x254   :  { %v2077_v3 = vpop.permute.xlu1 %2076 }
 0x255   :  { %v2101_v29 = vsel %vm447_vm9, %v2077_v3, 0.0 }
 0x258   :  { %v2079_v9 = vpop.permute.xlu1 %2078 }
 0x25b   :  { %458 = vadd.xlane.f32.xlu1 %v457_v36  ;;  %v2098_v36 = vsel %vm447_vm9, %v2075_v0, 0.0 }
 0x25c   :  { %v2083_v15 = vpop.permute.xlu1 %2082 }
 0x25d   :  { %v2110_v48 = vsel %vm447_vm9, %v2083_v15, 0.0 }
 0x25f   :  { %467 = vadd.xlane.f32.xlu1 %v466_v38  ;;  %v2104_v38 = vsel %vm447_vm9, %v2079_v9, 0.0 }
 0x266   :  { %1562 = vrot.lane.b32.xlu0 %v446_v43, %s3610_s6 }
 0x270   :  { %948 = vrot.lane.b32.xlu1 %v446_v43, %s3609_s4 }
 0x274   :  { %2088 = vrot.lane.b32.xlu1 %v446_v43, %s3611_s20  ;;  %v961_v43 = vsel %vm447_vm9, %v937_v58, 0.0 }
 0x285   :  { %959 = vadd.xlane.f32.xlu0 %v958_v63 }
 0x28c   :  { %v3966_v7 = vpop.xlane.xlu0 %449 }
 0x290   :  { %v939_v12 = vpop.permute.xlu0 %938 }
 0x291   :  { %v964_v13 = vsel %vm447_vm9, %v939_v12, 0.0 }
 0x292   :  { %965 = vadd.xlane.f32.xlu0 %v964_v13 }
 0x294   :  { %v943_v14 = vpop.permute.xlu0 %942 }
 0x295   :  { %v970_v60 = vsel %vm447_vm9, %v943_v14, 0.0 }
 0x296   :  { %1576 = vadd.xlane.f32.xlu0 %v1575_v16 }
 0x298   :  { %470 = vadd.xlane.f32.xlu1 %v469_v18  ;;  %v1553_v19 = vpop.permute.xlu0 %1552 }
 0x299   :  { %v1578_v20 = vsel %vm447_vm9, %v1553_v19, 0.0 }
 0x29a   :  { %1579 = vadd.xlane.f32.xlu0 %v1578_v20 }
 0x29b   :  { %v3972_v21 = vpop.xlane.xlu1 %452 }
 0x29c   :  { %1573 = vadd.xlane.f32.xlu1 %v1572_v25  ;;  %v1557_v27 = vpop.permute.xlu0 %1556 }
 0x29d   :  { %v1584_v3 = vsel %vm447_vm9, %v1557_v27, 0.0 }
 0x29e   :  { %2102 = vadd.xlane.f32.xlu0 %v2101_v29 }
 0x29f   :  { %v456_v30 = vpop.xlane.xlu1 %455 }
 0x2a0   :  { %2099 = vadd.xlane.f32.xlu1 %v2098_v36  ;;  %v947_v37 = vpop.permute.xlu0 %946 }
 0x2a1   :  { %v976_v14 = vsel %vm447_vm9, %v947_v37, 0.0 }
 0x2a2   :  { %2105 = vadd.xlane.f32.xlu0 %v2104_v38 }
 0x2a3   :  { %v462_v41 = vpop.xlane.xlu1 %461 }
 0x2a4   :  { %962 = vadd.xlane.f32.xlu1 %v961_v43  ;;  %v1559_v62 = vpop.permute.xlu0 %1558 }
 0x2a5   :  { %v1587_v12 = vsel %vm447_vm9, %v1559_v62, 0.0 }
 0x2a6   :  { %2111 = vadd.xlane.f32.xlu0 %v2110_v48 }
 0x2a7   :  { %v941_v57 = vpop.permute.xlu1 %940 }
 0x2a8   :  { %971 = vadd.xlane.f32.xlu1 %v970_v60  ;;  %v967_v63 = vsel %vm447_vm9, %v941_v57, 0.0  ;;  %v1561_v58 = vpop.permute.xlu0 %1560 }
 0x2a9   :  { %v1590_v15 = vsel %vm447_vm9, %v1561_v58, 0.0 }
 0x2aa   :  { %968 = vadd.xlane.f32.xlu0 %v967_v63 }
 0x2ab   :  { %v945_v0 = vpop.permute.xlu1 %944 }
 0x2ac   :  { %1585 = vadd.xlane.f32.xlu1 %v1584_v3  ;;  %v973_v9 = vsel %vm447_vm9, %v945_v0, 0.0  ;;  %v2087_v16 = vpop.permute.xlu0 %2086  ;;  %v472_v3 = vmul.f32 0.35355338, %v3966_v7 }
 0x2ad   :  { %v2116_v20 = vsel %vm447_vm9, %v2087_v16, 0.0 }
 0x2ae   :  { %974 = vadd.xlane.f32.xlu0 %v973_v9  ;;  %v3999_v58 = vadd.f32 %v3940_v33, %v472_v3 }
 0x2af   :  { %v1555_v13 = vpop.permute.xlu1 %1554 }
 0x2b0   :  { %1588 = vadd.xlane.f32.xlu1 %v1587_v12  ;;  %v1581_v19 = vsel %vm447_vm9, %v1555_v13, 0.0  ;;  %v473_v12 = vmul.f32 0.35355338, %v3972_v21 }
 0x2b2   :  { %977 = vadd.xlane.f32.xlu0 %v976_v14  ;;  %v4005_v13 = vadd.f32 %v3963_v56, %v473_v12  ;;  %v474_v14 = vmul.f32 0.35355338, %v456_v30 }
 0x2b3   :  { %v2081_v18 = vpop.permute.xlu1 %2080 }
 0x2b4   :  { %1591 = vadd.xlane.f32.xlu1 %v1590_v15  ;;  %v2107_v25 = vsel %vm447_vm9, %v2081_v18, 0.0  ;;  %v4009_v7 = vadd.f32 %v3942_v35, %v474_v14  ;;  %v476_v15 = vmul.f32 0.35355338, %v462_v41 }
 0x2b6   :  { %1582 = vadd.xlane.f32.xlu0 %v1581_v19  ;;  %v4013_v16 = vadd.f32 %v3951_v42, %v476_v15 }
 0x2b7   :  { %v2085_v27 = vpop.permute.xlu1 %2084 }
 0x2b8   :  { %2117 = vadd.xlane.f32.xlu1 %v2116_v20  ;;  %v2113_v29 = vsel %vm447_vm9, %v2085_v27, 0.0 }
 0x2ba   :  { %2108 = vadd.xlane.f32.xlu0 %v2107_v25 }
 0x2be   :  { %2114 = vadd.xlane.f32.xlu0 %v2113_v29 }
 0x2dd   :  { %v465_v36 = vpop.xlane.xlu0 %464 }
 0x2de   :  { %v477_v0 = vmul.f32 0.35355338, %v465_v36 }
 0x2e0   :  { %v3996_v9 = vadd.f32 %v3955_v44, %v477_v0 }
 0x2e1   :  { %v1563_v37 = vpop.permute.xlu0 %1562 }
 0x2e2   :  { %v1593_v38 = vsel %vm447_vm9, %v1563_v37, 0.0 }
 0x2e3   :  { %1594 = vadd.xlane.f32.xlu1 %v1593_v38 }
 0x2e8   :  { %v459_v43 = vpop.xlane.xlu1 %458 }
 0x2e9   :  { %v475_v21 = vmul.f32 0.35355338, %v459_v43 }
 0x2eb   :  { %v4017_v18 = vadd.f32 %v3948_v40, %v475_v21 }
 0x2ec   :  { %v468_v48 = vpop.xlane.xlu1 %467 }
 0x2ed   :  { %v478_v19 = vmul.f32 0.35355338, %v468_v48 }
 0x2ef   :  { %v4021_v30 = vadd.f32 %v3958_v50, %v478_v19 }
 0x2f0   :  { %v949_v57 = vpop.permute.xlu1 %948 }
 0x2f1   :  { %v979_v60 = vsel %vm447_vm9, %v949_v57, 0.0 }
 0x2f2   :  { %980 = vadd.xlane.f32.xlu0 %v979_v60 }
 0x2f4   :  { %v2089_v62 = vpop.permute.xlu1 %2088 }
 0x2f5   :  { %v2119_v63 = vsel %vm447_vm9, %v2089_v62, 0.0 }
 0x2f6   :  { %2120 = vadd.xlane.f32.xlu1 %v2119_v63 }
 0x307   :  { %577 = vperm.xlu1 %3524, %v3996_v9  }
 0x308   :  { %562 = vperm.xlu0 %3523, %v3999_v58  }
 0x30c   :  { %565 = vperm.xlu0 %3523, %v4005_v13  }
 0x310   :  { %568 = vperm.xlu0 %3523, %v4009_v7  }
 0x312   :  { %v960_v41 = vpop.xlane.xlu0 %959 }
 0x313   :  { %v982_v43 = vmul.f32 0.35355338, %v960_v41 }
 0x314   :  { %574 = vperm.xlu0 %3523, %v4013_v16  }
 0x315   :  { %v4037_v0 = vadd.f32 %v982_v43, %v3940_v33 }
 0x318   :  { %571 = vperm.xlu0 %3523, %v4017_v18  }
 0x31c   :  { %580 = vperm.xlu0 %3523, %v4021_v30  }
 0x31f   :  { %v966_v20 = vpop.xlane.xlu0 %965 }
 0x320   :  { %v984_v25 = vmul.f32 0.35355338, %v966_v20 }
 0x322   :  { %v4025_v27 = vadd.f32 %v984_v25, %v3942_v35 }
 0x323   :  { %v1577_v29 = vpop.xlane.xlu0 %1576 }
 0x324   :  { %v1597_v37 = vmul.f32 0.35355338, %v1577_v29  ;;  %1013 = vperm.xlu1 %3524, %v4025_v27  }
 0x325   :  { %v471_v36 = vpop.xlane.xlu1 %470 }
 0x326   :  { %v479_v38 = vmul.f32 0.35355338, %v471_v36  ;;  %v4029_v48 = vadd.f32 %v1597_v37, %v3963_v56 }
 0x327   :  { %v1580_v60 = vpop.xlane.xlu0 %1579 }
 0x328   :  { %v4032_v57 = vadd.f32 %v3961_v53, %v479_v38  ;;  %v1598_v63 = vmul.f32 0.35355338, %v1580_v60  ;;  %1624 = vperm.xlu1 %3524, %v4029_v48  }
 0x329   :  { %v1574_v62 = vpop.xlane.xlu1 %1573 }
 0x32a   :  { %583 = vperm.xlu0 %3523, %v4032_v57   ;;  %v4040_v3 = vadd.f32 %v1598_v63, %v3942_v35  ;;  %v1596_v12 = vmul.f32 0.35355338, %v1574_v62 }
 0x32b   :  { %v2103_v14 = vpop.xlane.xlu0 %2102 }
 0x32c   :  { %v2123_v21 = vmul.f32 0.35355338, %v2103_v14  ;;  %1627 = vperm.xlu1 %3524, %v4040_v3   ;;  %v4045_v19 = vadd.f32 %v1596_v12, %v3940_v33 }
 0x32d   :  { %v2100_v15 = vpop.xlane.xlu1 %2099 }
 0x32e   :  { %1007 = vperm.xlu0 %3523, %v4037_v0   ;;  %v4048_v41 = vadd.f32 %v2123_v21, %v3963_v56  ;;  %v2122_v20 = vmul.f32 0.35355338, %v2100_v15 }
 0x32f   :  { %v2106_v25 = vpop.xlane.xlu0 %2105 }
 0x330   :  { %v2124_v36 = vmul.f32 0.35355338, %v2106_v25  ;;  %2150 = vperm.xlu1 %3524, %v4048_v41   ;;  %v4053_v37 = vadd.f32 %v2122_v20, %v3940_v33 }
 0x331   :  { %v963_v29 = vpop.xlane.xlu1 %962 }
 0x332   :  { %1621 = vperm.xlu0 %3523, %v4045_v19   ;;  %v4056_v38 = vadd.f32 %v2124_v36, %v3942_v35  ;;  %v983_v43 = vmul.f32 0.35355338, %v963_v29 }
 0x333   :  { %v2112_v60 = vpop.xlane.xlu0 %2111 }
 0x334   :  { %2153 = vperm.xlu1 %3524, %v4056_v38   ;;  %v4061_v63 = vadd.f32 %v983_v43, %v3963_v56  ;;  %v2126_v32 = vmul.f32 0.35355338, %v2112_v60 }
 0x335   :  { %v972_v62 = vpop.xlane.xlu1 %971 }
 0x336   :  { %2147 = vperm.xlu0 %3523, %v4053_v37   ;;  %v986_v12 = vmul.f32 0.35355338, %v972_v62 }
 0x337   :  { %v969_v14 = vpop.xlane.xlu0 %968 }
 0x338   :  { %v4065_v33 = vadd.f32 %v986_v12, %v3951_v42  ;;  %v985_v29 = vmul.f32 0.35355338, %v969_v14 }
 0x339   :  { %v1586_v15 = vpop.xlane.xlu1 %1585 }
 0x33a   :  { %1010 = vperm.xlu0 %3523, %v4061_v63   ;;  %v1600_v35 = vmul.f32 0.35355338, %v1586_v15  ;;  %v4077_v12 = vadd.f32 %v985_v29, %v3948_v40 }
 0x33b   :  { %v975_v21 = vpop.xlane.xlu0 %974 }
 0x33c   :  { %v987_v20 = vmul.f32 0.35355338, %v975_v21  ;;  %v4069_v36 = vadd.f32 %v1600_v35, %v3951_v42 }
 0x33d   :  { %v1589_v25 = vpop.xlane.xlu1 %1588 }
 0x33e   :  { %1019 = vperm.xlu0 %3523, %v4065_v33   ;;  %v4072_v56 = vadd.f32 %v987_v20, %v3955_v44  ;;  %v1601_v15 = vmul.f32 0.35355338, %v1589_v25 }
 0x33f   :  { %v978_v43 = vpop.xlane.xlu0 %977 }
 0x340   :  { %v988_v62 = vmul.f32 0.35355338, %v978_v43  ;;  %1022 = vperm.xlu1 %3524, %v4072_v56   ;;  %v4085_v20 = vadd.f32 %v1601_v15, %v3955_v44 }
 0x341   :  { %v1592_v14 = vpop.xlane.xlu1 %1591 }
 0x342   :  { %1633 = vperm.xlu0 %3523, %v4069_v36   ;;  %v4080_v21 = vadd.f32 %v988_v62, %v3958_v50  ;;  %v1602_v43 = vmul.f32 0.35355338, %v1592_v14 }
 0x343   :  { %v1583_v10 = vpop.xlane.xlu0 %1582 }
 0x344   :  { %v1599_v35 = vmul.f32 0.35355338, %v1583_v10  ;;  %1025 = vperm.xlu1 %3524, %v4080_v21   ;;  %v4093_v25 = vadd.f32 %v1602_v43, %v3958_v50 }
 0x345   :  { %v2118_v62 = vpop.xlane.xlu1 %2117 }
 0x346   :  { %1016 = vperm.xlu0 %3523, %v4077_v12   ;;  %v4088_v17 = vadd.f32 %v1599_v35, %v3948_v40  ;;  %v2128_v35 = vmul.f32 0.35355338, %v2118_v62  ;;  %v4113_v62 = vadd.f32 %v2126_v32, %v3951_v42  ;;  %v4964_v42 = vlaneseq }
 0x347   :  { %v2109_v29 = vpop.xlane.xlu0 %2108 }
 0x348   :  { %v2125_v46 = vmul.f32 0.35355338, %v2109_v29  ;;  %1630 = vperm.xlu1 %3524, %v4088_v17   ;;  %v4105_v34 = vadd.f32 %v2128_v35, %v3958_v50  ;;  %4961 = vst [vmem:[#allocation18_spill] sm:$0xff] %v4113_v62 }
 0x34a   :  { %1636 = vperm.xlu0 %3523, %v4085_v20   ;;  %v4096_v10 = vadd.f32 %v2125_v46, %v3948_v40 }
 0x34b   :  { %v2115_v43 = vpop.xlane.xlu0 %2114 }
 0x34c   :  { %2156 = vperm.xlu1 %3524, %v4096_v10  }
 0x34e   :  { %1639 = vperm.xlu0 %3523, %v4093_v25  }
 0x370   :  { %v1595_v15 = vpop.xlane.xlu1 %1594 }
 0x371   :  { %v1603_v14 = vmul.f32 0.35355338, %v1595_v15  ;;  %v2127_v15 = vmul.f32 0.35355338, %v2115_v43  ;;  %v586_v43 = vand.u32 127, %v4964_v42 }
 0x373   :  { %v4101_v29 = vadd.f32 %v1603_v14, %v3961_v53  ;;  %v4117_v50 = vadd.f32 %v2127_v15, %v3955_v44  ;;  %v4126_v28 = vsub.s32 %v586_v43, %v3819_v49 }
 0x375   :  { %1642 = vperm.xlu0 %3523, %v4101_v29   ;;  %4962 = vst [vmem:[#allocation19_spill] sm:$0xff] %v4117_v50 }
 0x379   :  { %2165 = vperm.xlu0 %3523, %v4105_v34  }
 0x37f   :  { %v981_v46 = vpop.xlane.xlu0 %980 }
 0x380   :  { %v989_v40 = vmul.f32 0.35355338, %v981_v46 }
 0x382   :  { %v4109_v31 = vadd.f32 %v989_v40, %v3961_v53 }
 0x383   :  { %v2121_v14 = vpop.xlane.xlu1 %2120 }
 0x384   :  { %1028 = vperm.xlu1 %3524, %v4109_v31   ;;  %v2129_v35 = vmul.f32 0.35355338, %v2121_v14 }
 0x386   :  { %v4121_v46 = vadd.f32 %v2129_v35, %v3961_v53 }
 0x387   :  { %v563_v26 = vpop.permute.xlu0 %562  ;;  %v578_v42 = vpop.permute.xlu1 %577 }
 0x388   :  { %2159 = vperm.xlu1 %3524, %v4113_v62   ;;  %4963 = vst [vmem:[#allocation20_spill] sm:$0xff] %v4121_v46  ;;  %v590_v14 = vrot.slane %v563_v26, %v4126_v28 }
 0x38b   :  { %v566_v60 = vpop.permute.xlu0 %565 }
 0x38c   :  { %2162 = vperm.xlu1 %3524, %v4117_v50   ;;  %v594_v44 = vrot.slane %v566_v60, %v4126_v28  ;;  %v610_v60 = vrot.slane %v578_v42, %v4126_v28 }
 0x38e   :  { %v619_v53 = vsel %vm255_vm1, %v594_v44, %v590_v14 }
 0x38f   :  { %v569_v40 = vpop.permute.xlu0 %568 }
 0x390   :  { %2168 = vperm.xlu1 %3524, %v4121_v46   ;;  %v598_v15 = vrot.slane %v569_v40, %v4126_v28 }
 0x392   :  { %v620_v35 = vsel %vm258_vm2, %v598_v15, %v619_v53 }
 0x393   :  { %v575_v32 = vpop.permute.xlu0 %574 }
 0x394   :  { %v606_v49 = vrot.slane %v575_v32, %v4126_v28 }
 0x397   :  { %v572_v23 = vpop.permute.xlu0 %571 }
 0x398   :  { %v602_v22 = vrot.slane %v572_v23, %v4126_v28 }
 0x39a   :  { %v621_v59 = vsel %vm261_vm3, %v602_v22, %v620_v35 }
 0x39b   :  { %v581_v24 = vpop.permute.xlu0 %580  ;;  %v622_v61 = vsel %vm264_vm4, %v606_v49, %v621_v59 }
 0x39c   :  { %v614_v40 = vrot.slane %v581_v24, %v4126_v28  ;;  %v623_v23 = vsel %vm267_vm5, %v610_v60, %v622_v61 }
 0x39e   :  { %v624_v44 = vsel %vm270_vm6, %v614_v40, %v623_v23 }
 0x3a3   :  { %v1014_v32 = vpop.permute.xlu1 %1013 }
 0x3a4   :  { %v1041_v1 = vrot.slane %v1014_v32, %v4126_v28 }
 0x3a7   :  { %v1625_v35 = vpop.permute.xlu1 %1624 }
 0x3a8   :  { %v1651_v45 = vrot.slane %v1625_v35, %v4126_v28 }
 0x3a9   :  { %v584_v43 = vpop.permute.xlu0 %583 }
 0x3aa   :  { %v618_v26 = vrot.slane %v584_v43, %v4126_v28 }
 0x3ab   :  { %v1628_v49 = vpop.permute.xlu1 %1627 }
 0x3ac   :  { %v625_v15 = vsel %vm273_vm7, %v618_v26, %v624_v44  ;;  %v1655_v62 = vrot.slane %v1628_v49, %v4126_v28 }
 0x3ad   :  { %v627_v22 = vsel %vm447_vm9, %v625_v15, -inf  ;;  %v1008_v14 = vpop.permute.xlu0 %1007 }
 0x3ae   :  { %v1033_v26 = vrot.slane %v1008_v14, %v4126_v28 }
 0x3af   :  { %v2151_v5 = vpop.permute.xlu1 %2150 }
 0x3b1   :  { %v1622_v53 = vpop.permute.xlu0 %1621 }
 0x3b2   :  { %v1647_v44 = vrot.slane %v1622_v53, %v4126_v28 }
 0x3b3   :  { %v2154_v39 = vpop.permute.xlu1 %2153 }
 0x3b4   :  { %628 = vmax.xlane.f32.xlu1 %v627_v22  ;;  %v1676_v50 = vsel %vm255_vm1, %v1651_v45, %v1647_v44 }
 0x3b5   :  { %v2148_v59 = vpop.permute.xlu0 %2147  ;;  %v1677_v32 = vsel %vm258_vm2, %v1655_v62, %v1676_v50 }
 0x3b6   :  { %v2173_v62 = vrot.slane %v2148_v59, %v4126_v28 }
 0x3b9   :  { %v1011_v42 = vpop.permute.xlu0 %1010 }
 0x3ba   :  { %v1037_v40 = vrot.slane %v1011_v42, %v4126_v28 }
 0x3bc   :  { %v1062_v15 = vsel %vm255_vm1, %v1037_v40, %v1033_v26 }
 0x3bd   :  { %v1020_v24 = vpop.permute.xlu0 %1019  ;;  %v1063_v46 = vsel %vm258_vm2, %v1041_v1, %v1062_v15 }
 0x3be   :  { %v1049_v53 = vrot.slane %v1020_v24, %v4126_v28 }
 0x3bf   :  { %v1023_v54 = vpop.permute.xlu1 %1022 }
 0x3c0   :  { %v1053_v35 = vrot.slane %v1023_v54, %v4126_v28 }
 0x3c1   :  { %v1634_v43 = vpop.permute.xlu0 %1633 }
 0x3c2   :  { %v1663_v45 = vrot.slane %v1634_v43, %v4126_v28 }
 0x3c3   :  { %v1026_v60 = vpop.permute.xlu1 %1025 }
 0x3c4   :  { %v1057_v49 = vrot.slane %v1026_v60, %v4126_v28 }
 0x3c5   :  { %v1017_v61 = vpop.permute.xlu0 %1016 }
 0x3c6   :  { %v1045_v22 = vrot.slane %v1017_v61, %v4126_v28 }
 0x3c7   :  { %v1631_v47 = vpop.permute.xlu1 %1630 }
 0x3c8   :  { %v1064_v42 = vsel %vm261_vm3, %v1045_v22, %v1063_v46  ;;  %v1659_v14 = vrot.slane %v1631_v47, %v4126_v28 }
 0x3c9   :  { %v1637_v23 = vpop.permute.xlu0 %1636  ;;  %v1065_v61 = vsel %vm264_vm4, %v1049_v53, %v1064_v42  ;;  %v2177_v42 = vrot.slane %v2151_v5, %v4126_v28 }
 0x3ca   :  { %v1678_v1 = vsel %vm261_vm3, %v1659_v14, %v1677_v32  ;;  %v1667_v46 = vrot.slane %v1637_v23, %v4126_v28  ;;  %v1066_v47 = vsel %vm267_vm5, %v1053_v35, %v1065_v61  ;;  %v2181_v35 = vrot.slane %v2154_v39, %v4126_v28 }
 0x3cb   :  { %v2157_v26 = vpop.permute.xlu1 %2156  ;;  %v1679_v24 = vsel %vm264_vm4, %v1663_v45, %v1678_v1  ;;  %v1067_v43 = vsel %vm270_vm6, %v1057_v49, %v1066_v47  ;;  %v2202_v61 = vsel %vm255_vm1, %v2177_v42, %v2173_v62 }
 0x3cc   :  { %v1680_v23 = vsel %vm267_vm5, %v1667_v46, %v1679_v24  ;;  %v2185_v59 = vrot.slane %v2157_v26, %v4126_v28  ;;  %v2203_v1 = vsel %vm258_vm2, %v2181_v35, %v2202_v61 }
 0x3cd   :  { %v1640_v40 = vpop.permute.xlu0 %1639 }
 0x3ce   :  { %v1671_v15 = vrot.slane %v1640_v40, %v4126_v28  ;;  %v2204_v46 = vsel %vm261_vm3, %v2185_v59, %v2203_v1 }
 0x3d0   :  { %v1681_v40 = vsel %vm270_vm6, %v1671_v15, %v1680_v23 }
 0x3f4   :  { %v1643_v44 = vpop.permute.xlu0 %1642 }
 0x3f5   :  { %v1675_v54 = vrot.slane %v1643_v44, %v4126_v28 }
 0x3f7   :  { %v1682_v32 = vsel %vm273_vm7, %v1675_v54, %v1681_v40 }
 0x3f8   :  { %v1684_v44 = vsel %vm447_vm9, %v1682_v32, -inf  ;;  %v2166_v47 = vpop.permute.xlu0 %2165 }
 0x3f9   :  { %v2197_v15 = vrot.slane %v2166_v47, %v4126_v28 }
 0x403   :  { %v1029_v22 = vpop.permute.xlu1 %1028 }
 0x404   :  { %v1061_v50 = vrot.slane %v1029_v22, %v4126_v28 }
 0x406   :  { %v1068_v14 = vsel %vm273_vm7, %v1061_v50, %v1067_v43 }
 0x407   :  { %v2160_v60 = vpop.permute.xlu1 %2159  ;;  %v1070_v53 = vsel %vm447_vm9, %v1068_v14, -inf }
 0x408   :  { %1071 = vmax.xlane.f32.xlu0 %v1070_v53  ;;  %v2189_v5 = vrot.slane %v2160_v60, %v4126_v28 }
 0x40a   :  { %v2205_v26 = vsel %vm264_vm4, %v2189_v5, %v2204_v46 }
 0x40b   :  { %v2163_v45 = vpop.permute.xlu1 %2162 }
 0x40c   :  { %v2193_v49 = vrot.slane %v2163_v45, %v4126_v28  ;;  %1685 = vmax.xlane.f32.xlu0 %v1684_v44 }
 0x40e   :  { %v2206_v24 = vsel %vm267_vm5, %v2193_v49, %v2205_v26 }
 0x40f   :  { %v2169_v39 = vpop.permute.xlu1 %2168  ;;  %v2207_v62 = vsel %vm270_vm6, %v2197_v15, %v2206_v24 }
 0x410   :  { %v2201_v22 = vrot.slane %v2169_v39, %v4126_v28 }
 0x412   :  { %v2208_v54 = vsel %vm273_vm7, %v2201_v22, %v2207_v62 }
 0x413   :  { %v2210_v50 = vsel %vm447_vm9, %v2208_v54, -inf }
 0x414   :  { %2211 = vmax.xlane.f32.xlu0 %v2210_v50 }
 0x441   :  { %v629_v43 = vpop.xlane.xlu1 %628 }
 0x442   :  { %v634_v42 = vrot.slane %v629_v43, %v3824_v51  ;;  %v638_v23 = vrot.slane %v629_v43, %v3871_v11  ;;  %v642_v14 = vrot.slane %v629_v43, %v3827_v52  ;;  %v654_v60 = vrot.slane %v629_v43, %v3859_v4 }
 0x443   :  { %v646_v59 = vrot.slane %v629_v43, %v3834_v55  ;;  %v650_v45 = vrot.slane %v629_v43, %v3855_v2  ;;  %v662_v47 = vrot.slane %v629_v43, %v3867_v8 }
 0x444   :  { %v671_v53 = vsub.f32 %v3999_v58, %v634_v42  ;;  %v672_v40 = vsub.f32 %v4005_v13, %v638_v23  ;;  %v673_v61 = vsub.f32 %v4009_v7, %v642_v14  ;;  %v676_v32 = vsub.f32 %v3996_v9, %v654_v60 }
 0x445   :  { %v674_v44 = vsub.f32 %v4017_v18, %v646_v59  ;;  %v658_v58 = vrot.slane %v629_v43, %v3863_v6  ;;  %v675_v13 = vsub.f32 %v4013_v16, %v650_v45  ;;  %v678_v18 = vsub.f32 %v4032_v57, %v662_v47 }
 0x446   :  { %v679_v35 = vmul.f32 1.442695, %v671_v53  ;;  %v681_v5 = vmul.f32 1.442695, %v672_v40  ;;  %v683_v1 = vmul.f32 1.442695, %v673_v61 }
 0x447   :  { %v689_v46 = vmul.f32 1.442695, %v676_v32  ;;  %v685_v7 = vmul.f32 1.442695, %v674_v44  ;;  %v677_v9 = vsub.f32 %v4021_v30, %v658_v58  ;;  %v687_v49 = vmul.f32 1.442695, %v675_v13 }
 0x448   :  { %3525 = vpow2.f32 %v679_v35  ;;  %v693_v30 = vmul.f32 1.442695, %v678_v18 }
 0x449   :  { %3527 = vpow2.f32 %v681_v5  ;;  %v691_v16 = vmul.f32 1.442695, %v677_v9 }
 0x44a   :  { %3529 = vpow2.f32 %v683_v1 }
 0x44b   :  { %3531 = vpow2.f32 %v689_v46 }
 0x44c   :  { %3533 = vpow2.f32 %v685_v7 }
 0x44d   :  { %3535 = vpow2.f32 %v687_v49 }
 0x44e   :  { %3537 = vpow2.f32 %v691_v16 }
 0x44f   :  { %3539 = vpow2.f32 %v693_v30 }
 0x452   :  { %v4207_v26 = vpop.eup %3525 }
 0x453   :  { %v4209_v24 = vpop.eup %3527  ;;  %704 = vperm.xlu1 %3524, %v4207_v26  }
 0x454   :  { %707 = vperm.xlu0 %3523, %v4209_v24   ;;  %v4214_v15 = vpop.eup %3529 }
 0x455   :  { %v4216_v39 = vpop.eup %3531 }
 0x456   :  { %v4220_v22 = vpop.eup %3533 }
 0x457   :  { %719 = vperm.xlu1 %3524, %v4216_v39   ;;  %v4223_v62 = vpop.eup %3535 }
 0x458   :  { %710 = vperm.xlu0 %3523, %v4214_v15   ;;  %v4226_v57 = vpop.eup %3537 }
 0x459   :  { %v4229_v54 = vpop.eup %3539 }
 0x45c   :  { %713 = vperm.xlu0 %3523, %v4220_v22  }
 0x460   :  { %716 = vperm.xlu0 %3523, %v4223_v62  }
 0x464   :  { %722 = vperm.xlu0 %3523, %v4226_v57  }
 0x468   :  { %725 = vperm.xlu0 %3523, %v4229_v54  }
 0x495   :  { %v1072_v50 = vpop.xlane.xlu0 %1071 }
 0x496   :  { %v1077_v43 = vrot.slane %v1072_v50, %v3824_v51  ;;  %v1081_v42 = vrot.slane %v1072_v50, %v3871_v11  ;;  %v1085_v23 = vrot.slane %v1072_v50, %v3827_v52  ;;  %v1093_v14 = vrot.slane %v1072_v50, %v3855_v2 }
 0x497   :  { %v1089_v60 = vrot.slane %v1072_v50, %v3834_v55  ;;  %v1097_v45 = vrot.slane %v1072_v50, %v3859_v4  ;;  %v1105_v47 = vrot.slane %v1072_v50, %v3867_v8 }
 0x498   :  { %v1114_v53 = vsub.f32 %v4037_v0, %v1077_v43  ;;  %v1115_v40 = vsub.f32 %v4061_v63, %v1081_v42  ;;  %v1116_v61 = vsub.f32 %v4025_v27, %v1085_v23  ;;  %v1118_v59 = vsub.f32 %v4065_v33, %v1093_v14 }
 0x499   :  { %v4241_v32 = vpop.xlane.xlu0 %1685  ;;  %v1117_v44 = vsub.f32 %v4077_v12, %v1089_v60  ;;  %v1101_v27 = vrot.slane %v1072_v50, %v3863_v6  ;;  %v1119_v33 = vsub.f32 %v4072_v56, %v1097_v45  ;;  %v1121_v30 = vsub.f32 %v4109_v31, %v1105_v47 }
 0x49a   :  { %v1122_v35 = vmul.f32 1.442695, %v1114_v53  ;;  %v1124_v5 = vmul.f32 1.442695, %v1115_v40  ;;  %v1691_v1 = vrot.slane %v4241_v32, %v3824_v51  ;;  %v1126_v46 = vmul.f32 1.442695, %v1116_v61 }
 0x49b   :  { %v1130_v0 = vmul.f32 1.442695, %v1118_v59  ;;  %v1128_v58 = vmul.f32 1.442695, %v1117_v44  ;;  %v1120_v12 = vsub.f32 %v4080_v21, %v1101_v27  ;;  %v1132_v9 = vmul.f32 1.442695, %v1119_v33 }
 0x49c   :  { %3541 = vpow2.f32 %v1122_v35  ;;  %v1728_v63 = vsub.f32 %v4045_v19, %v1691_v1  ;;  %v1707_v49 = vrot.slane %v4241_v32, %v3855_v2  ;;  %v1695_v21 = vrot.slane %v4241_v32, %v3871_v11 }
 0x49d   :  { %3543 = vpow2.f32 %v1124_v5  ;;  %v1134_v50 = vmul.f32 1.442695, %v1120_v12  ;;  %v1711_v43 = vrot.slane %v4241_v32, %v3859_v4  ;;  %v1136_v31 = vmul.f32 1.442695, %v1121_v30 }
 0x49e   :  { %3545 = vpow2.f32 %v1126_v46  ;;  %v1736_v13 = vmul.f32 1.442695, %v1728_v63  ;;  %v1732_v42 = vsub.f32 %v4069_v36, %v1707_v49  ;;  %v1699_v60 = vrot.slane %v4241_v32, %v3827_v52 }
 0x49f   :  { %3547 = vpow2.f32 %v1130_v0  ;;  %v1729_v53 = vsub.f32 %v4029_v48, %v1695_v21  ;;  %v1715_v40 = vrot.slane %v4241_v32, %v3863_v6  ;;  %v1733_v36 = vsub.f32 %v4085_v20, %v1711_v43 }
 0x4a0   :  { %3549 = vpow2.f32 %v1128_v58  ;;  %v1744_v61 = vmul.f32 1.442695, %v1732_v42  ;;  %v1703_v5 = vrot.slane %v4241_v32, %v3834_v55  ;;  %v1730_v48 = vsub.f32 %v4040_v3, %v1699_v60  ;;  %v4965_v60 = vld [vmem:[#allocation18_spill] sm:$0xff] }
 0x4a1   :  { %v4250_v7 = vpop.xlane.xlu0 %2211  ;;  %3551 = vpow2.f32 %v1736_v13  ;;  %v1738_v1 = vmul.f32 1.442695, %v1729_v53  ;;  %v1719_v20 = vrot.slane %v4241_v32, %v3867_v8  ;;  %v1734_v45 = vsub.f32 %v4093_v25, %v1715_v40 }
 0x4a2   :  { %v2217_v19 = vrot.slane %v4250_v7, %v3824_v51  ;;  %3553 = vpow2.f32 %v1132_v9  ;;  %v1746_v44 = vmul.f32 1.442695, %v1733_v36  ;;  %v1731_v0 = vsub.f32 %v4088_v17, %v1703_v5  ;;  %v4966_v5 = vld [vmem:[#allocation19_spill] sm:$0xff] }
 0x4a3   :  { %3555 = vpow2.f32 %v1134_v50  ;;  %v1740_v63 = vmul.f32 1.442695, %v1730_v48  ;;  %v2221_v3 = vrot.slane %v4250_v7, %v3871_v11  ;;  %v1735_v27 = vsub.f32 %v4101_v29, %v1719_v20 }
 0x4a4   :  { %v2254_v18 = vsub.f32 %v4053_v37, %v2217_v19  ;;  %v1748_v32 = vmul.f32 1.442695, %v1734_v45  ;;  %v2241_v25 = vrot.slane %v4250_v7, %v3863_v6  ;;  %v1742_v17 = vmul.f32 1.442695, %v1731_v0 }
 0x4a5   :  { %v2255_v13 = vsub.f32 %v4048_v41, %v2221_v3  ;;  %v1750_v47 = vmul.f32 1.442695, %v1735_v27  ;;  %v2225_v29 = vrot.slane %v4250_v7, %v3827_v52  ;;  %v2229_v41 = vrot.slane %v4250_v7, %v3834_v55 }
 0x4a6   :  { %v4258_v56 = vpop.eup %3541  ;;  %v2262_v23 = vmul.f32 1.442695, %v2254_v18  ;;  %v2260_v12 = vsub.f32 %v4105_v34, %v2241_v25  ;;  %v2233_v21 = vrot.slane %v4250_v7, %v3855_v2 }
 0x4a7   :  { %v4261_v16 = vpop.eup %3543  ;;  %1147 = vperm.xlu1 %3524, %v4258_v56   ;;  %v2264_v19 = vmul.f32 1.442695, %v2255_v13  ;;  %v2256_v18 = vsub.f32 %v4056_v38, %v2225_v29  ;;  %v2257_v43 = vsub.f32 %v4096_v10, %v2229_v41 }
 0x4a8   :  { %1150 = vperm.xlu0 %3523, %v4261_v16   ;;  %v4271_v37 = vpop.eup %3545  ;;  %3557 = vpow2.f32 %v2262_v23  ;;  %v2274_v30 = vmul.f32 1.442695, %v2260_v12  ;;  %v2258_v53 = vsub.f32 %v4965_v60, %v2233_v21 }
 0x4a9   :  { %v4273_v14 = vpop.eup %3547  ;;  %3559 = vpow2.f32 %v1136_v31  ;;  %v2266_v42 = vmul.f32 1.442695, %v2256_v18  ;;  %v2237_v31 = vrot.slane %v4250_v7, %v3859_v4  ;;  %v2268_v40 = vmul.f32 1.442695, %v2257_v43 }
 0x4aa   :  { %v4283_v59 = vpop.eup %3549  ;;  %3561 = vpow2.f32 %v1744_v61  ;;  %v2245_v61 = vrot.slane %v4250_v7, %v3867_v8 }
 0x4ab   :  { %1153 = vperm.xlu1 %3524, %v4271_v37   ;;  %v4285_v35 = vpop.eup %3551  ;;  %3563 = vpow2.f32 %v1738_v1  ;;  %v2259_v48 = vsub.f32 %v4966_v5, %v2237_v31  ;;  %v2270_v1 = vmul.f32 1.442695, %v2258_v53 }
 0x4ac   :  { %1159 = vperm.xlu0 %3523, %v4273_v14   ;;  %v4295_v46 = vpop.eup %3553  ;;  %3565 = vpow2.f32 %v1746_v44  ;;  %v4967_v44 = vld [vmem:[#allocation20_spill] sm:$0xff] }
 0x4ad   :  { %v4304_v33 = vpop.eup %3555  ;;  %3567 = vpow2.f32 %v1740_v63  ;;  %v2261_v0 = vsub.f32 %v4967_v44, %v2245_v61  ;;  %v2272_v63 = vmul.f32 1.442695, %v2259_v48 }
 0x4ae   :  { %3569 = vpow2.f32 %v1748_v32 }
 0x4af   :  { %1156 = vperm.xlu1 %3524, %v4283_v59   ;;  %3571 = vpow2.f32 %v1742_v17  ;;  %v2276_v7 = vmul.f32 1.442695, %v2261_v0 }
 0x4b0   :  { %1761 = vperm.xlu0 %3523, %v4285_v35   ;;  %3573 = vpow2.f32 %v1750_v47 }
 0x4b1   :  { %3575 = vpow2.f32 %v2264_v19 }
 0x4b2   :  { %v4306_v58 = vpop.eup %3557  ;;  %3577 = vpow2.f32 %v2274_v30 }
 0x4b3   :  { %1162 = vperm.xlu1 %3524, %v4295_v46   ;;  %v4314_v9 = vpop.eup %3559  ;;  %3579 = vpow2.f32 %v2266_v42 }
 0x4b4   :  { %2287 = vperm.xlu0 %3523, %v4306_v58   ;;  %v4316_v49 = vpop.eup %3561  ;;  %3581 = vpow2.f32 %v2268_v40 }
 0x4b5   :  { %v4323_v50 = vpop.eup %3563  ;;  %3583 = vpow2.f32 %v2270_v1 }
 0x4b6   :  { %v4325_v34 = vpop.eup %3565  ;;  %3585 = vpow2.f32 %v2272_v63 }
 0x4b7   :  { %1165 = vperm.xlu1 %3524, %v4304_v33   ;;  %v4332_v23 = vpop.eup %3567  ;;  %3587 = vpow2.f32 %v2276_v7 }
 0x4b8   :  { %1773 = vperm.xlu0 %3523, %v4316_v49   ;;  %v4334_v38 = vpop.eup %3569 }
 0x4b9   :  { %v4341_v36 = vpop.eup %3571 }
 0x4ba   :  { %v4343_v10 = vpop.eup %3573 }
 0x4bb   :  { %1168 = vperm.xlu1 %3524, %v4314_v9   ;;  %v4350_v20 = vpop.eup %3575 }
 0x4bc   :  { %1776 = vperm.xlu0 %3523, %v4325_v34   ;;  %v4352_v45 = vpop.eup %3577 }
 0x4bd   :  { %v4357_v3 = vpop.eup %3579 }
 0x4be   :  { %v4360_v27 = vpop.eup %3581 }
 0x4bf   :  { %1764 = vperm.xlu1 %3524, %v4323_v50   ;;  %v4363_v32 = vpop.eup %3583 }
 0x4c0   :  { %1779 = vperm.xlu0 %3523, %v4334_v38   ;;  %v4366_v25 = vpop.eup %3585 }
 0x4c1   :  { %v4369_v13 = vpop.eup %3587 }
 0x4c3   :  { %1767 = vperm.xlu1 %3524, %v4332_v23  }
 0x4c4   :  { %1782 = vperm.xlu0 %3523, %v4343_v10  }
 0x4c7   :  { %1770 = vperm.xlu1 %3524, %v4341_v36  }
 0x4c8   :  { %2305 = vperm.xlu0 %3523, %v4352_v45  }
 0x4cb   :  { %2290 = vperm.xlu1 %3524, %v4350_v20  }
 0x4cf   :  { %2293 = vperm.xlu1 %3524, %v4357_v3  }
 0x4d2   :  { %v705_v19 = vpop.permute.xlu1 %704 }
 0x4d3   :  { %2296 = vperm.xlu1 %3524, %v4360_v27   ;;  %v708_v17 = vpop.permute.xlu0 %707  ;;  %v730_v30 = vrot.slane %v705_v19, %v4126_v28 }
 0x4d4   :  { %v734_v18 = vrot.slane %v708_v17, %v4126_v28 }
 0x4d6   :  { %v759_v31 = vsel %vm255_vm1, %v734_v18, %v730_v30  ;;  %v720_v53 = vpop.permute.xlu1 %719 }
 0x4d7   :  { %2299 = vperm.xlu1 %3524, %v4363_v32   ;;  %v711_v47 = vpop.permute.xlu0 %710  ;;  %v750_v1 = vrot.slane %v720_v53, %v4126_v28 }
 0x4d8   :  { %v738_v21 = vrot.slane %v711_v47, %v4126_v28 }
 0x4da   :  { %v760_v60 = vsel %vm258_vm2, %v738_v21, %v759_v31 }
 0x4db   :  { %2302 = vperm.xlu1 %3524, %v4366_v25   ;;  %v714_v29 = vpop.permute.xlu0 %713 }
 0x4dc   :  { %v742_v43 = vrot.slane %v714_v29, %v4126_v28 }
 0x4de   :  { %v761_v61 = vsel %vm261_vm3, %v742_v43, %v760_v60 }
 0x4df   :  { %2308 = vperm.xlu1 %3524, %v4369_v13   ;;  %v717_v12 = vpop.permute.xlu0 %716 }
 0x4e0   :  { %v746_v42 = vrot.slane %v717_v12, %v4126_v28 }
 0x4e2   :  { %v762_v5 = vsel %vm264_vm4, %v746_v42, %v761_v61 }
 0x4e3   :  { %v723_v41 = vpop.permute.xlu0 %722  ;;  %v763_v0 = vsel %vm267_vm5, %v750_v1, %v762_v5 }
 0x4e4   :  { %v754_v48 = vrot.slane %v723_v41, %v4126_v28 }
 0x4e6   :  { %v764_v63 = vsel %vm270_vm6, %v754_v48, %v763_v0 }
 0x4e7   :  { %v726_v40 = vpop.permute.xlu0 %725 }
 0x4e8   :  { %v758_v44 = vrot.slane %v726_v40, %v4126_v28 }
 0x4ea   :  { %v765_v7 = vsel %vm273_vm7, %v758_v44, %v764_v63 }
 0x4eb   :  { %v767_v17 = vsel %vm447_vm9, %v765_v7, 0.0 }
 0x503   :  { %768 = vadd.xlane.f32.xlu1 %v767_v17 }
 0x526   :  { %v1148_v47 = vpop.permute.xlu1 %1147 }
 0x527   :  { %v1151_v29 = vpop.permute.xlu0 %1150  ;;  %v1173_v21 = vrot.slane %v1148_v47, %v4126_v28 }
 0x528   :  { %v1177_v41 = vrot.slane %v1151_v29, %v4126_v28 }
 0x52a   :  { %v1154_v12 = vpop.permute.xlu1 %1153  ;;  %v1202_v60 = vsel %vm255_vm1, %v1177_v41, %v1173_v21 }
 0x52b   :  { %v1160_v19 = vpop.permute.xlu0 %1159  ;;  %v1181_v43 = vrot.slane %v1154_v12, %v4126_v28 }
 0x52c   :  { %v1189_v1 = vrot.slane %v1160_v19, %v4126_v28 }
 0x52d   :  { %v1203_v53 = vsel %vm258_vm2, %v1181_v43, %v1202_v60 }
 0x52e   :  { %v1157_v18 = vpop.permute.xlu1 %1156 }
 0x52f   :  { %v1762_v30 = vpop.permute.xlu0 %1761  ;;  %v1185_v31 = vrot.slane %v1157_v18, %v4126_v28 }
 0x530   :  { %v1787_v60 = vrot.slane %v1762_v30, %v4126_v28 }
 0x531   :  { %v1204_v5 = vsel %vm261_vm3, %v1185_v31, %v1203_v53 }
 0x532   :  { %v1163_v42 = vpop.permute.xlu1 %1162  ;;  %v1205_v0 = vsel %vm264_vm4, %v1189_v1, %v1204_v5 }
 0x533   :  { %v2288_v40 = vpop.permute.xlu0 %2287  ;;  %v1193_v48 = vrot.slane %v1163_v42, %v4126_v28 }
 0x535   :  { %v1206_v17 = vsel %vm267_vm5, %v1193_v48, %v1205_v0 }
 0x536   :  { %v1166_v61 = vpop.permute.xlu1 %1165 }
 0x537   :  { %v1197_v44 = vrot.slane %v1166_v61, %v4126_v28  ;;  %v1774_v63 = vpop.permute.xlu0 %1773 }
 0x538   :  { %v1803_v48 = vrot.slane %v1774_v63, %v4126_v28 }
 0x539   :  { %v1207_v29 = vsel %vm270_vm6, %v1197_v44, %v1206_v17 }
 0x53a   :  { %v1169_v7 = vpop.permute.xlu1 %1168 }
 0x53b   :  { %v1201_v47 = vrot.slane %v1169_v7, %v4126_v28  ;;  %v1777_v18 = vpop.permute.xlu0 %1776 }
 0x53c   :  { %v1807_v0 = vrot.slane %v1777_v18, %v4126_v28 }
 0x53d   :  { %v1208_v12 = vsel %vm273_vm7, %v1201_v47, %v1207_v29 }
 0x53e   :  { %v1765_v41 = vpop.permute.xlu1 %1764  ;;  %v1210_v21 = vsel %vm447_vm9, %v1208_v12, 0.0 }
 0x53f   :  { %1211 = vadd.xlane.f32.xlu0 %v1210_v21  ;;  %v1780_v19 = vpop.permute.xlu0 %1779  ;;  %v1791_v42 = vrot.slane %v1765_v41, %v4126_v28 }
 0x540   :  { %v1811_v17 = vrot.slane %v1780_v19, %v4126_v28 }
 0x541   :  { %v1816_v61 = vsel %vm255_vm1, %v1791_v42, %v1787_v60  ;;  %v2313_v60 = vrot.slane %v2288_v40, %v4126_v28 }
 0x542   :  { %v1768_v43 = vpop.permute.xlu1 %1767 }
 0x543   :  { %v1795_v31 = vrot.slane %v1768_v43, %v4126_v28  ;;  %v1783_v1 = vpop.permute.xlu0 %1782 }
 0x544   :  { %v1815_v30 = vrot.slane %v1783_v1, %v4126_v28 }
 0x545   :  { %v1817_v44 = vsel %vm258_vm2, %v1795_v31, %v1816_v61 }
 0x546   :  { %v1771_v53 = vpop.permute.xlu1 %1770 }
 0x547   :  { %v1799_v5 = vrot.slane %v1771_v53, %v4126_v28 }
 0x549   :  { %v1818_v7 = vsel %vm261_vm3, %v1799_v5, %v1817_v44  ;;  %v2306_v44 = vpop.permute.xlu0 %2305 }
 0x54a   :  { %v1819_v47 = vsel %vm264_vm4, %v1803_v48, %v1818_v7  ;;  %v2291_v29 = vpop.permute.xlu1 %2290  ;;  %v2337_v40 = vrot.slane %v2306_v44, %v4126_v28 }
 0x54b   :  { %v1820_v12 = vsel %vm267_vm5, %v1807_v0, %v1819_v47  ;;  %v2317_v42 = vrot.slane %v2291_v29, %v4126_v28 }
 0x54c   :  { %v1821_v41 = vsel %vm270_vm6, %v1811_v17, %v1820_v12 }
 0x54d   :  { %v1822_v63 = vsel %vm273_vm7, %v1815_v30, %v1821_v41  ;;  %v2342_v5 = vsel %vm255_vm1, %v2317_v42, %v2313_v60 }
 0x54e   :  { %v2294_v21 = vpop.permute.xlu1 %2293  ;;  %v1824_v43 = vsel %vm447_vm9, %v1822_v63, 0.0 }
 0x54f   :  { %1825 = vadd.xlane.f32.xlu0 %v1824_v43  ;;  %v2321_v19 = vrot.slane %v2294_v21, %v4126_v28 }
 0x551   :  { %v2343_v48 = vsel %vm258_vm2, %v2321_v19, %v2342_v5 }
 0x552   :  { %v2297_v18 = vpop.permute.xlu1 %2296 }
 0x553   :  { %v2325_v53 = vrot.slane %v2297_v18, %v4126_v28 }
 0x555   :  { %v2344_v0 = vsel %vm261_vm3, %v2325_v53, %v2343_v48 }
 0x556   :  { %v2300_v31 = vpop.permute.xlu1 %2299 }
 0x557   :  { %v2329_v61 = vrot.slane %v2300_v31, %v4126_v28 }
 0x559   :  { %v2345_v17 = vsel %vm264_vm4, %v2329_v61, %v2344_v0 }
 0x55a   :  { %v2303_v1 = vpop.permute.xlu1 %2302 }
 0x55b   :  { %v2333_v7 = vrot.slane %v2303_v1, %v4126_v28 }
 0x55d   :  { %v2346_v47 = vsel %vm267_vm5, %v2333_v7, %v2345_v17 }
 0x55e   :  { %v2309_v29 = vpop.permute.xlu1 %2308  ;;  %v2347_v12 = vsel %vm270_vm6, %v2337_v40, %v2346_v47 }
 0x55f   :  { %v2341_v30 = vrot.slane %v2309_v29, %v4126_v28 }
 0x561   :  { %v2348_v41 = vsel %vm273_vm7, %v2341_v30, %v2347_v12 }
 0x562   :  { %v2350_v63 = vsel %vm447_vm9, %v2348_v41, 0.0 }
 0x563   :  { %2351 = vadd.xlane.f32.xlu0 %v2350_v63 }
 0x590   :  { %v769_v21 = vpop.xlane.xlu1 %768 }
 0x591   :  { %3589 = vrcp.f32 %v769_v21 }
 0x59b   :  { %v3590_v43 = vpop.eup %3589 }
 0x59c   :  { %v779_v18 = vrot.slane %v3590_v43, %v3871_v11  ;;  %v775_v42 = vrot.slane %v3590_v43, %v3824_v51  ;;  %v783_v28 = vrot.slane %v3590_v43, %v3827_v52  ;;  %v795_v60 = vrot.slane %v3590_v43, %v3859_v4 }
 0x59d   :  { %v787_v5 = vrot.slane %v3590_v43, %v3834_v55  ;;  %v799_v1 = vrot.slane %v3590_v43, %v3863_v6 }
 0x59e   :  { %v813_v19 = vmul.f32 %v4209_v24, %v779_v18  ;;  %v812_v31 = vmul.f32 %v4207_v26, %v775_v42  ;;  %v814_v53 = vmul.f32 %v4214_v15, %v783_v28  ;;  %v817_v61 = vmul.f32 %v4216_v39, %v795_v60 }
 0x59f   :  { %v815_v48 = vmul.f32 %v4220_v22, %v787_v5  ;;  %v791_v24 = vrot.slane %v3590_v43, %v3855_v2  ;;  %v818_v44 = vmul.f32 %v4226_v57, %v799_v1  ;;  %v803_v15 = vrot.slane %v3590_v43, %v3867_v8 }
 0x5a0   :  { %827 = vperm.xlu0 %3523, %v813_v19   ;;  %822 = vperm.xlu1 %3524, %v812_v31  }
 0x5a1   :  { %v816_v26 = vmul.f32 %v4223_v62, %v791_v24  ;;  %v819_v39 = vmul.f32 %v4229_v54, %v803_v15  ;;  %v4968_v15 = vld [vmem:[#allocation11_spill] sm:$0xff] }
 0x5a4   :  { %832 = vperm.xlu0 %3523, %v814_v53   ;;  %847 = vperm.xlu1 %3524, %v817_v61  }
 0x5a8   :  { %837 = vperm.xlu0 %3523, %v815_v48  }
 0x5ac   :  { %842 = vperm.xlu0 %3523, %v816_v26  }
 0x5b0   :  { %852 = vperm.xlu0 %3523, %v818_v44  }
 0x5b4   :  { %857 = vperm.xlu0 %3523, %v819_v39  }
 0x5cc   :  { %v1212_v0 = vpop.xlane.xlu0 %1211 }
 0x5cd   :  { %3591 = vrcp.f32 %v1212_v0 }
 0x5d7   :  { %v3592_v7 = vpop.eup %3591 }
 0x5d8   :  { %v1222_v22 = vrot.slane %v3592_v7, %v3871_v11  ;;  %v1218_v17 = vrot.slane %v3592_v7, %v3824_v51  ;;  %v1234_v40 = vrot.slane %v3592_v7, %v3855_v2  ;;  %v1226_v57 = vrot.slane %v3592_v7, %v3827_v52 }
 0x5d9   :  { %v1230_v12 = vrot.slane %v3592_v7, %v3834_v55  ;;  %v1242_v63 = vrot.slane %v3592_v7, %v3863_v6  ;;  %v1246_v18 = vrot.slane %v3592_v7, %v3867_v8 }
 0x5da   :  { %v1256_v62 = vmul.f32 %v4261_v16, %v1222_v22  ;;  %v1255_v47 = vmul.f32 %v4258_v56, %v1218_v17  ;;  %v1259_v54 = vmul.f32 %v4273_v14, %v1234_v40  ;;  %v1257_v30 = vmul.f32 %v4271_v37, %v1226_v57 }
 0x5db   :  { %v1258_v16 = vmul.f32 %v4283_v59, %v1230_v12  ;;  %v1238_v56 = vrot.slane %v3592_v7, %v3859_v4  ;;  %v1261_v37 = vmul.f32 %v4304_v33, %v1242_v63  ;;  %v1262_v59 = vmul.f32 %v4314_v9, %v1246_v18 }
 0x5dc   :  { %v1826_v29 = vpop.xlane.xlu0 %1825  ;;  %1270 = vperm.xlu0 %3523, %v1256_v62   ;;  %1265 = vperm.xlu1 %3524, %v1255_v47  }
 0x5dd   :  { %3593 = vrcp.f32 %v1826_v29  ;;  %v1260_v41 = vmul.f32 %v4295_v46, %v1238_v56 }
 0x5e0   :  { %1285 = vperm.xlu0 %3523, %v1259_v54   ;;  %1275 = vperm.xlu1 %3524, %v1257_v30  }
 0x5e4   :  { %1280 = vperm.xlu1 %3524, %v1258_v16   ;;  %v4972_v16 = vld [vmem:[#allocation10_spill] sm:$0xff] }
 0x5e7   :  { %v3594_v21 = vpop.eup %3593 }
 0x5e8   :  { %1290 = vperm.xlu1 %3524, %v1260_v41   ;;  %v1832_v43 = vrot.slane %v3594_v21, %v3824_v51  ;;  %v1836_v42 = vrot.slane %v3594_v21, %v3871_v11  ;;  %v1840_v31 = vrot.slane %v3594_v21, %v3827_v52  ;;  %v1844_v33 = vrot.slane %v3594_v21, %v3834_v55 }
 0x5e9   :  { %v1848_v5 = vrot.slane %v3594_v21, %v3855_v2  ;;  %v1852_v24 = vrot.slane %v3594_v21, %v3859_v4  ;;  %v1860_v26 = vrot.slane %v3594_v21, %v3867_v8 }
 0x5ea   :  { %v1869_v14 = vmul.f32 %v4285_v35, %v1832_v43  ;;  %v1870_v46 = vmul.f32 %v4323_v50, %v1836_v42  ;;  %v1871_v35 = vmul.f32 %v4332_v23, %v1840_v31  ;;  %v1872_v28 = vmul.f32 %v4341_v36, %v1844_v33  ;;  %v4973_v42 = vld [vmem:[#allocation17_spill] sm:$0xff] }
 0x5eb   :  { %v1873_v23 = vmul.f32 %v4316_v49, %v1848_v5 }
 0x5ec   :  { %1879 = vperm.xlu0 %3523, %v1869_v14   ;;  %1295 = vperm.xlu1 %3524, %v1261_v37  }
 0x5f0   :  { %v2352_v19 = vpop.xlane.xlu0 %2351  ;;  %1300 = vperm.xlu1 %3524, %v1262_v59  }
 0x5f1   :  { %3595 = vrcp.f32 %v2352_v19 }
 0x5f4   :  { %1884 = vperm.xlu1 %3524, %v1870_v46  }
 0x5f8   :  { %1889 = vperm.xlu1 %3524, %v1871_v35  }
 0x5fb   :  { %v3596_v60 = vpop.eup %3595 }
 0x5fc   :  { %1894 = vperm.xlu1 %3524, %v1872_v28   ;;  %v2358_v9 = vrot.slane %v3596_v60, %v3824_v51  ;;  %v2362_v53 = vrot.slane %v3596_v60, %v3871_v11  ;;  %v2366_v48 = vrot.slane %v3596_v60, %v3827_v52  ;;  %v2370_v51 = vrot.slane %v3596_v60, %v3834_v55 }
 0x5fd   :  { %v1874_v11 = vmul.f32 %v4325_v34, %v1852_v24  ;;  %v2374_v52 = vrot.slane %v3596_v60, %v3855_v2  ;;  %v2378_v55 = vrot.slane %v3596_v60, %v3859_v4  ;;  %v1876_v34 = vmul.f32 %v4343_v10, %v1860_v26  ;;  %v4969_v10 = vld [vmem:[#allocation12_spill] sm:$0xff] }
 0x5fe   :  { %v2395_v61 = vmul.f32 %v4306_v58, %v2358_v9  ;;  %v2396_v50 = vmul.f32 %v4350_v20, %v2362_v53  ;;  %v2397_v36 = vmul.f32 %v4357_v3, %v2366_v48  ;;  %v2398_v58 = vmul.f32 %v4360_v27, %v2370_v51 }
 0x5ff   :  { %v1856_v20 = vrot.slane %v3594_v21, %v3863_v6  ;;  %v2399_v3 = vmul.f32 %v4363_v32, %v2374_v52  ;;  %v2400_v27 = vmul.f32 %v4366_v25, %v2378_v55  ;;  %v2382_v1 = vrot.slane %v3596_v60, %v3863_v6 }
 0x600   :  { %2405 = vperm.xlu0 %3523, %v2395_v61   ;;  %2410 = vperm.xlu1 %3524, %v2396_v50   ;;  %v2386_v2 = vrot.slane %v3596_v60, %v3867_v8  ;;  %v4974_v50 = vld [vmem:[#allocation15_spill] sm:$0xff] }
 0x601   :  { %v1875_v49 = vmul.f32 %v4334_v38, %v1856_v20  ;;  %v2401_v38 = vmul.f32 %v4352_v45, %v2382_v1  ;;  %v4970_v45 = vld [vmem:[#allocation16_spill] sm:$0xff] }
 0x602   :  { %v2402_v32 = vmul.f32 %v4369_v13, %v2386_v2  ;;  %v4971_v13 = vld [vmem:[#allocation13_spill] sm:$0xff] }
 0x604   :  { %1899 = vperm.xlu0 %3523, %v1873_v23   ;;  %2415 = vperm.xlu1 %3524, %v2397_v36  }
 0x608   :  { %1904 = vperm.xlu0 %3523, %v1874_v11   ;;  %2420 = vperm.xlu1 %3524, %v2398_v58  }
 0x60c   :  { %1909 = vperm.xlu0 %3523, %v1875_v49   ;;  %2425 = vperm.xlu1 %3524, %v2399_v3   ;;  %v4975_v3 = vld [vmem:[#allocation14_spill] sm:$0xff] }
 0x610   :  { %1914 = vperm.xlu0 %3523, %v1876_v34   ;;  %2430 = vperm.xlu1 %3524, %v2400_v27  }
 0x614   :  { %2435 = vperm.xlu0 %3523, %v2401_v38   ;;  %2440 = vperm.xlu1 %3524, %v2402_v32  }
 0x61f   :  { %v828_v4 = vpop.permute.xlu0 %827  ;;  %v823_v44 = vpop.permute.xlu1 %822 }
 0x620   :  { %v861_v39 = vmul.f32 %v828_v4, %v4968_v15  ;;  %v860_v0 = vmul.f32 %v823_v44, %v4969_v10 }
 0x622   :  { %v876_v25 = vsel %vm868_vm10, %v861_v39, 0.0  ;;  %v869_v6 = vsel %vm868_vm10, %v860_v0, 0.0  ;;  %v3317_v0 = vld [vmem:[%s4889_s7 + $0x8] sm:$0xff] }
 0x623   :  { %v877_v8 = vrot.slane %v876_v25, 4  ;;  %v870_v7 = vrot.slane %v869_v6, 4  ;;  %v833_v22 = vpop.permute.xlu0 %832  ;;  %v848_v17 = vpop.permute.xlu1 %847  ;;  %3411 = vmatpush3.msra.mxu1 %v3317_v0 }
 0x624   :  { %v862_v62 = vmul.f32 %v833_v22, %v4970_v45  ;;  %v865_v47 = vmul.f32 %v848_v17, %v4971_v13  ;;  %v4976_v22 = vmov 0.0  }
 0x625   :  { %v878_v40 = vadd.f32 %v877_v8, %v876_v25  ;;  %v871_v57 = vadd.f32 %v870_v7, %v869_v6  ;;  %3415 = vmatprep.subr.mxu1 %v4976_v22 }
 0x626   :  { %v883_v29 = vsel %vm868_vm10, %v862_v62, 0.0  ;;  %v904_v12 = vsel %vm868_vm10, %v865_v47, 0.0 }
 0x627   :  { %v884_v54 = vrot.slane %v883_v29, 4  ;;  %v838_v30 = vpop.permute.xlu0 %837  ;;  %v879_v63 = vrot.slane %v878_v40, 2  ;;  %v872_v21 = vrot.slane %v871_v57, 2  ;;  %v905_v14 = vrot.slane %v904_v12, 4 }
 0x628   :  { %v863_v56 = vmul.f32 %v838_v30, %v4972_v16 }
 0x629   :  { %v885_v41 = vadd.f32 %v884_v54, %v883_v29  ;;  %v880_v46 = vadd.f32 %v879_v63, %v878_v40  ;;  %v873_v31 = vadd.f32 %v872_v21, %v871_v57  ;;  %v906_v28 = vadd.f32 %v905_v14, %v904_v12 }
 0x62a   :  { %v890_v43 = vsel %vm868_vm10, %v863_v56, 0.0 }
 0x62b   :  { %v843_v37 = vpop.permute.xlu0 %842  ;;  %v886_v18 = vrot.slane %v885_v41, 2  ;;  %v891_v59 = vrot.slane %v890_v43, 4  ;;  %v881_v23 = vrot.slane %v880_v46, 1  ;;  %v874_v36 = vrot.slane %v873_v31, 1 }
 0x62c   :  { %v864_v19 = vmul.f32 %v843_v37, %v4973_v42  ;;  %v907_v11 = vrot.slane %v906_v28, 2 }
 0x62d   :  { %v892_v35 = vadd.f32 %v891_v59, %v890_v43  ;;  %v887_v53 = vadd.f32 %v886_v18, %v885_v41  ;;  %v882_v1 = vadd.f32 %v881_v23, %v880_v46  ;;  %v875_v2 = vadd.f32 %v874_v36, %v873_v31 }
 0x62e   :  { %v897_v33 = vsel %vm868_vm10, %v864_v19, 0.0  ;;  %v908_v32 = vadd.f32 %v907_v11, %v906_v28 }
 0x62f   :  { %v898_v60 = vrot.slane %v897_v33, 4  ;;  %v853_v9 = vpop.permute.xlu0 %852  ;;  %v893_v61 = vrot.slane %v892_v35, 2  ;;  %v888_v49 = vrot.slane %v887_v53, 1  ;;  %v1467_v62 = vsel %vm255_vm1, %v882_v1, %v875_v2 }
 0x630   :  { %v866_v5 = vmul.f32 %v853_v9, %v4974_v50  ;;  %v909_v47 = vrot.slane %v908_v32, 1 }
 0x631   :  { %v899_v48 = vadd.f32 %v898_v60, %v897_v33  ;;  %v894_v24 = vadd.f32 %v893_v61, %v892_v35  ;;  %v889_v25 = vadd.f32 %v888_v49, %v887_v53 }
 0x632   :  { %v911_v51 = vsel %vm868_vm10, %v866_v5, 0.0  ;;  %v910_v41 = vadd.f32 %v909_v47, %v908_v32 }
 0x633   :  { %v900_v58 = vrot.slane %v899_v48, 2  ;;  %v912_v20 = vrot.slane %v911_v51, 4  ;;  %v858_v52 = vpop.permute.xlu0 %857  ;;  %v895_v55 = vrot.slane %v894_v24, 1  ;;  %v1468_v29 = vsel %vm258_vm2, %v889_v25, %v1467_v62 }
 0x634   :  { %v867_v26 = vmul.f32 %v858_v52, %v4975_v3 }
 0x635   :  { %v901_v34 = vadd.f32 %v900_v58, %v899_v48  ;;  %v913_v27 = vadd.f32 %v912_v20, %v911_v51  ;;  %v896_v6 = vadd.f32 %v895_v55, %v894_v24 }
 0x636   :  { %v918_v38 = vsel %vm868_vm10, %v867_v26, 0.0 }
 0x637   :  { %v902_v4 = vrot.slane %v901_v34, 1  ;;  %v914_v44 = vrot.slane %v913_v27, 2  ;;  %v919_v39 = vrot.slane %v918_v38, 4  ;;  %v1469_v54 = vsel %vm261_vm3, %v896_v6, %v1468_v29 }
 0x639   :  { %v915_v8 = vadd.f32 %v914_v44, %v913_v27  ;;  %v920_v7 = vadd.f32 %v919_v39, %v918_v38  ;;  %v903_v17 = vadd.f32 %v902_v4, %v901_v34 }
 0x63b   :  { %v916_v40 = vrot.slane %v915_v8, 1  ;;  %v921_v57 = vrot.slane %v920_v7, 2  ;;  %v1470_v56 = vsel %vm264_vm4, %v903_v17, %v1469_v54 }
 0x63c   :  { %v1471_v43 = vsel %vm267_vm5, %v910_v41, %v1470_v56 }
 0x63d   :  { %v922_v30 = vadd.f32 %v921_v57, %v920_v7  ;;  %v917_v12 = vadd.f32 %v916_v40, %v915_v8 }
 0x63f   :  { %v923_v63 = vrot.slane %v922_v30, 1  ;;  %v1472_v14 = vsel %vm270_vm6, %v917_v12, %v1471_v43 }
 0x641   :  { %v924_v21 = vadd.f32 %v923_v63, %v922_v30 }
 0x643   :  { %v1473_v37 = vsel %vm273_vm7, %v924_v21, %v1472_v14 }
 0x644   :  { %1474 = vrot.lane.b32.xlu1 %v1473_v37, %s3613_s3 }
 0x65b   :  { %v1271_v18 = vpop.permute.xlu0 %1270  ;;  %v1266_v59 = vpop.permute.xlu1 %1265 }
 0x65c   :  { %v1304_v19 = vmul.f32 %v1271_v18, %v4968_v15  ;;  %v1303_v46 = vmul.f32 %v1266_v59, %v4969_v10 }
 0x65e   :  { %v1319_v31 = vsel %vm1311_vm11, %v1304_v19, 0.0  ;;  %v1312_v35 = vsel %vm1311_vm11, %v1303_v46, 0.0 }
 0x65f   :  { %v1320_v33 = vrot.slane %v1319_v31, 4  ;;  %v1313_v28 = vrot.slane %v1312_v35, 4  ;;  %v1286_v60 = vpop.permute.xlu0 %1285  ;;  %v1276_v9 = vpop.permute.xlu1 %1275 }
 0x660   :  { %v1307_v53 = vmul.f32 %v1286_v60, %v4973_v42  ;;  %v1305_v61 = vmul.f32 %v1276_v9, %v4970_v45 }
 0x661   :  { %v1321_v48 = vadd.f32 %v1320_v33, %v1319_v31  ;;  %v1314_v23 = vadd.f32 %v1313_v28, %v1312_v35 }
 0x662   :  { %v1326_v5 = vsel %vm1311_vm11, %v1305_v61, 0.0  ;;  %v1340_v36 = vsel %vm1311_vm11, %v1307_v53, 0.0 }
 0x663   :  { %v1327_v24 = vrot.slane %v1326_v5, 4  ;;  %v1281_v51 = vpop.permute.xlu1 %1280  ;;  %v1341_v20 = vrot.slane %v1340_v36, 4  ;;  %v1322_v49 = vrot.slane %v1321_v48, 2  ;;  %v1315_v26 = vrot.slane %v1314_v23, 2 }
 0x664   :  { %v1306_v11 = vmul.f32 %v1281_v51, %v4972_v16 }
 0x665   :  { %v1328_v58 = vadd.f32 %v1327_v24, %v1326_v5  ;;  %v1342_v2 = vadd.f32 %v1341_v20, %v1340_v36  ;;  %v1323_v4 = vadd.f32 %v1322_v49, %v1321_v48  ;;  %v1316_v44 = vadd.f32 %v1315_v26, %v1314_v23  ;;  %v3322_v20 = vld [vmem:[%s4889_s7 + $0x18] sm:$0xff] }
 0x666   :  { %v1333_v52 = vsel %vm1311_vm11, %v1306_v11, 0.0  ;;  %3426 = vmatpush3.msra.mxu0 %v3322_v20 }
 0x667   :  { %v1291_v55 = vpop.permute.xlu1 %1290  ;;  %v1329_v34 = vrot.slane %v1328_v58, 2  ;;  %v1334_v27 = vrot.slane %v1333_v52, 4  ;;  %v1343_v17 = vrot.slane %v1342_v2, 2  ;;  %v1324_v40 = vrot.slane %v1323_v4, 1 }
 0x668   :  { %v1308_v1 = vmul.f32 %v1291_v55, %v4971_v13  ;;  %v1317_v57 = vrot.slane %v1316_v44, 1 }
 0x669   :  { %v1335_v38 = vadd.f32 %v1334_v27, %v1333_v52  ;;  %v1330_v25 = vadd.f32 %v1329_v34, %v1328_v58  ;;  %v1344_v14 = vadd.f32 %v1343_v17, %v1342_v2  ;;  %v1325_v59 = vadd.f32 %v1324_v40, %v1323_v4 }
 0x66a   :  { %v1347_v32 = vsel %vm1311_vm11, %v1308_v1, 0.0  ;;  %v1318_v19 = vadd.f32 %v1317_v57, %v1316_v44  ;;  %v4977_v1 = vmov 0.0|0.0  }
 0x66b   :  { %v1348_v39 = vrot.slane %v1347_v32, 4  ;;  %v1296_v0 = vpop.permute.xlu1 %1295  ;;  %v1336_v6 = vrot.slane %v1335_v38, 2  ;;  %v1880_v54 = vpop.permute.xlu0 %1879  ;;  %v1331_v56 = vrot.slane %v1330_v25, 1  ;;  %v1345_v5 = vrot.slane %v1344_v14, 1  ;;  %3491 = vmatprep.subr.bf16.mxu0 %v4977_v1 }
 0x66c   :  { %v1309_v8 = vmul.f32 %v1296_v0, %v4974_v50  ;;  %v1917_v37 = vmul.f32 %v1880_v54, %v4969_v10  ;;  %v1378_v36 = vsel %vm255_vm1, %v1325_v59, %v1318_v19 }
 0x66d   :  { %v1349_v7 = vadd.f32 %v1348_v39, %v1347_v32  ;;  %v1337_v62 = vadd.f32 %v1336_v6, %v1335_v38  ;;  %v1332_v33 = vadd.f32 %v1331_v56, %v1330_v25  ;;  %v1346_v2 = vadd.f32 %v1345_v5, %v1344_v14 }
 0x66e   :  { %v1354_v47 = vsel %vm1311_vm11, %v1309_v8, 0.0  ;;  %v1926_v48 = vsel %vm1925_vm12, %v1917_v37, 0.0 }
 0x66f   :  { %v1350_v29 = vrot.slane %v1349_v7, 2  ;;  %v1355_v30 = vrot.slane %v1354_v47, 4  ;;  %v1301_v12 = vpop.permute.xlu1 %1300  ;;  %v1338_v63 = vrot.slane %v1337_v62, 1  ;;  %v1379_v52 = vsel %vm258_vm2, %v1332_v33, %v1378_v36 }
 0x670   :  { %v1310_v41 = vmul.f32 %v1301_v12, %v4975_v3  ;;  %v1927_v34 = vrot.slane %v1926_v48, 4 }
 0x671   :  { %v1351_v21 = vadd.f32 %v1350_v29, %v1349_v7  ;;  %v1356_v43 = vadd.f32 %v1355_v30, %v1354_v47  ;;  %v1339_v60 = vadd.f32 %v1338_v63, %v1337_v62 }
 0x672   :  { %v1361_v18 = vsel %vm1311_vm11, %v1310_v41, 0.0  ;;  %v1928_v8 = vadd.f32 %v1927_v34, %v1926_v48 }
 0x673   :  { %v1357_v46 = vrot.slane %v1356_v43, 2  ;;  %v1362_v31 = vrot.slane %v1361_v18, 4  ;;  %v1885_v35 = vpop.permute.xlu1 %1884  ;;  %v1352_v9 = vrot.slane %v1351_v21, 1  ;;  %v1380_v26 = vsel %vm261_vm3, %v1339_v60, %v1379_v52 }
 0x674   :  { %v1918_v28 = vmul.f32 %v1885_v35, %v4968_v15  ;;  %v1381_v6 = vsel %vm264_vm4, %v1346_v2, %v1380_v26  ;;  %v1929_v63 = vrot.slane %v1928_v8, 2 }
 0x675   :  { %v1358_v53 = vadd.f32 %v1357_v46, %v1356_v43  ;;  %v1363_v61 = vadd.f32 %v1362_v31, %v1361_v18  ;;  %v1353_v55 = vadd.f32 %v1352_v9, %v1351_v21 }
 0x676   :  { %v1933_v23 = vsel %vm1925_vm12, %v1918_v28, 0.0 }
 0x677   :  { %v1359_v24 = vrot.slane %v1358_v53, 1  ;;  %v1364_v51 = vrot.slane %v1363_v61, 2  ;;  %v1934_v11 = vrot.slane %v1933_v23, 4  ;;  %v1890_v58 = vpop.permute.xlu1 %1889  ;;  %v1382_v62 = vsel %vm267_vm5, %v1353_v55, %v1381_v6 }
 0x678   :  { %v1919_v49 = vmul.f32 %v1890_v58, %v4970_v45 }
 0x679   :  { %v1365_v27 = vadd.f32 %v1364_v51, %v1363_v61  ;;  %v1360_v38 = vadd.f32 %v1359_v24, %v1358_v53  ;;  %v1935_v44 = vadd.f32 %v1934_v11, %v1933_v23 }
 0x67a   :  { %v1940_v32 = vsel %vm1925_vm12, %v1919_v49, 0.0 }
 0x67b   :  { %v1366_v4 = vrot.slane %v1365_v27, 1  ;;  %v1941_v39 = vrot.slane %v1940_v32, 4  ;;  %v1895_v0 = vpop.permute.xlu1 %1894  ;;  %v1383_v40 = vsel %vm270_vm6, %v1360_v38, %v1382_v62  ;;  %v1936_v57 = vrot.slane %v1935_v44, 2 }
 0x67c   :  { %v1920_v25 = vmul.f32 %v1895_v0, %v4972_v16 }
 0x67d   :  { %v1367_v7 = vadd.f32 %v1366_v4, %v1365_v27  ;;  %v1942_v17 = vadd.f32 %v1941_v39, %v1940_v32  ;;  %v1937_v14 = vadd.f32 %v1936_v57, %v1935_v44 }
 0x67e   :  { %v1947_v47 = vsel %vm1925_vm12, %v1920_v25, 0.0 }
 0x67f   :  { %v1948_v29 = vrot.slane %v1947_v47, 4  ;;  %v2406_v54 = vpop.permute.xlu0 %2405  ;;  %v2411_v30 = vpop.permute.xlu1 %2410  ;;  %v1384_v12 = vsel %vm273_vm7, %v1367_v7, %v1383_v40  ;;  %v1943_v21 = vrot.slane %v1942_v17, 2  ;;  %v1938_v53 = vrot.slane %v1937_v14, 1 }
 0x680   :  { %v2443_v56 = vmul.f32 %v2406_v54, %v4969_v10  ;;  %v2444_v41 = vmul.f32 %v2411_v30, %v4968_v15  ;;  %1385 = vrot.lane.b32.xlu0 %v1384_v12, %s3614_s25  ;;  %v1930_v10 = vadd.f32 %v1929_v63, %v1928_v8 }
 0x681   :  { %v1949_v43 = vadd.f32 %v1948_v29, %v1947_v47  ;;  %v1944_v33 = vadd.f32 %v1943_v21, %v1942_v17  ;;  %v1939_v55 = vadd.f32 %v1938_v53, %v1937_v14 }
 0x682   :  { %v2452_v18 = vsel %vm2451_vm13, %v2443_v56, 0.0  ;;  %v2459_v59 = vsel %vm2451_vm13, %v2444_v41, 0.0  ;;  %v1931_v11 = vrot.slane %v1930_v10, 1 }
 0x683   :  { %v1950_v37 = vrot.slane %v1949_v43, 2  ;;  %v1900_v19 = vpop.permute.xlu0 %1899  ;;  %v2416_v46 = vpop.permute.xlu1 %2415  ;;  %v2453_v15 = vrot.slane %v2452_v18, 4  ;;  %v2460_v28 = vrot.slane %v2459_v59, 4 }
 0x684   :  { %v1921_v31 = vmul.f32 %v1900_v19, %v4973_v42  ;;  %v2445_v35 = vmul.f32 %v2416_v46, %v4970_v45  ;;  %v1945_v45 = vrot.slane %v1944_v33, 1 }
 0x685   :  { %v1951_v61 = vadd.f32 %v1950_v37, %v1949_v43  ;;  %v2454_v20 = vadd.f32 %v2453_v15, %v2452_v18  ;;  %v2461_v52 = vadd.f32 %v2460_v28, %v2459_v59 }
 0x686   :  { %v1954_v60 = vsel %vm1925_vm12, %v1921_v31, 0.0  ;;  %v2466_v9 = vsel %vm2451_vm13, %v2445_v35, 0.0  ;;  %v1946_v0 = vadd.f32 %v1945_v45, %v1944_v33 }
 0x687   :  { %v1955_v5 = vrot.slane %v1954_v60, 4  ;;  %v1905_v48 = vpop.permute.xlu0 %1904  ;;  %v2421_v23 = vpop.permute.xlu1 %2420  ;;  %v2467_v36 = vrot.slane %v2466_v9, 4  ;;  %v1952_v34 = vrot.slane %v1951_v61, 1  ;;  %v2455_v8 = vrot.slane %v2454_v20, 2 }
 0x688   :  { %v1922_v24 = vmul.f32 %v1905_v48, %v4971_v13  ;;  %v2446_v51 = vmul.f32 %v2421_v23, %v4972_v16  ;;  %v1932_v16 = vadd.f32 %v1931_v11, %v1930_v10  ;;  %v2462_v7 = vrot.slane %v2461_v52, 2 }
 0x689   :  { %v1956_v58 = vadd.f32 %v1955_v5, %v1954_v60  ;;  %v2468_v4 = vadd.f32 %v2467_v36, %v2466_v9  ;;  %v1953_v47 = vadd.f32 %v1952_v34, %v1951_v61  ;;  %v2456_v37 = vadd.f32 %v2455_v8, %v2454_v20 }
 0x68a   :  { %v1961_v49 = vsel %vm1925_vm12, %v1922_v24, 0.0  ;;  %v2473_v26 = vsel %vm2451_vm13, %v2446_v51, 0.0  ;;  %v1992_v12 = vsel %vm255_vm1, %v1939_v55, %v1932_v16  ;;  %v2463_v31 = vadd.f32 %v2462_v7, %v2461_v52 }
 0x68b   :  { %v1962_v27 = vrot.slane %v1961_v49, 4  ;;  %v1910_v2 = vpop.permute.xlu0 %1909  ;;  %v2426_v38 = vpop.permute.xlu1 %2425  ;;  %v1957_v32 = vrot.slane %v1956_v58, 2  ;;  %v2474_v44 = vrot.slane %v2473_v26, 4  ;;  %v2469_v41 = vrot.slane %v2468_v4, 2 }
 0x68c   :  { %v1923_v39 = vmul.f32 %v1910_v2, %v4974_v50  ;;  %v2447_v6 = vmul.f32 %v2426_v38, %v4973_v42  ;;  %v1993_v21 = vsel %vm258_vm2, %v1946_v0, %v1992_v12  ;;  %v2457_v36 = vrot.slane %v2456_v37, 1 }
 0x68d   :  { %v1963_v25 = vadd.f32 %v1962_v27, %v1961_v49  ;;  %v2475_v17 = vadd.f32 %v2474_v44, %v2473_v26  ;;  %v1958_v56 = vadd.f32 %v1957_v32, %v1956_v58  ;;  %v1994_v46 = vsel %vm261_vm3, %v1953_v47, %v1993_v21 }
 0x68e   :  { %v1968_v62 = vsel %vm1925_vm12, %v1923_v39, 0.0  ;;  %v2480_v29 = vsel %vm2451_vm13, %v2447_v6, 0.0  ;;  %v2470_v28 = vadd.f32 %v2469_v41, %v2468_v4  ;;  %v2464_v52 = vrot.slane %v2463_v31, 1 }
 0x68f   :  { %v1964_v40 = vrot.slane %v1963_v25, 2  ;;  %v1969_v57 = vrot.slane %v1968_v62, 4  ;;  %v1915_v54 = vpop.permute.xlu0 %1914  ;;  %v2431_v30 = vpop.permute.xlu1 %2430  ;;  %v2481_v63 = vrot.slane %v2480_v29, 4  ;;  %v2476_v42 = vrot.slane %v2475_v17, 2 }
 0x690   :  { %v1924_v14 = vmul.f32 %v1915_v54, %v4975_v3  ;;  %v2448_v19 = vmul.f32 %v2431_v30, %v4971_v13  ;;  %v1959_v15 = vrot.slane %v1958_v56, 1  ;;  %v2471_v49 = vrot.slane %v2470_v28, 1 }
 0x691   :  { %v1970_v43 = vadd.f32 %v1969_v57, %v1968_v62  ;;  %v1965_v18 = vadd.f32 %v1964_v40, %v1963_v25  ;;  %v2482_v59 = vadd.f32 %v2481_v63, %v2480_v29  ;;  %v2477_v61 = vadd.f32 %v2476_v42, %v2475_v17 }
 0x692   :  { %v1975_v10 = vsel %vm1925_vm12, %v1924_v14, 0.0  ;;  %v2487_v48 = vsel %vm2451_vm13, %v2448_v19, 0.0  ;;  %v1960_v34 = vadd.f32 %v1959_v15, %v1958_v56  ;;  %v2458_v39 = vadd.f32 %v2457_v36, %v2456_v37  ;;  %v925_v15 = vld [vmem:[%s4889_s7] sm:$0xff] }
 0x693   :  { %v1971_v35 = vrot.slane %v1970_v43, 2  ;;  %v2436_v33 = vpop.permute.xlu0 %2435  ;;  %v2483_v60 = vrot.slane %v2482_v59, 2  ;;  %v1976_v9 = vrot.slane %v1975_v10, 4  ;;  %v2441_v53 = vpop.permute.xlu1 %2440  ;;  %v1966_v13 = vrot.slane %v1965_v18, 1 }
 0x694   :  { %v2449_v23 = vmul.f32 %v2436_v33, %v4974_v50  ;;  %v2488_v51 = vrot.slane %v2487_v48, 4  ;;  %v2450_v20 = vmul.f32 %v2441_v53, %v4975_v3  ;;  %v2478_v27 = vrot.slane %v2477_v61, 1 }
 0x695   :  { %v1972_v5 = vadd.f32 %v1971_v35, %v1970_v43  ;;  %v1977_v24 = vadd.f32 %v1976_v9, %v1975_v10  ;;  %v2484_v45 = vadd.f32 %v2483_v60, %v2482_v59  ;;  %v1967_v50 = vadd.f32 %v1966_v13, %v1965_v18  ;;  %v3320_v60 = vld [vmem:[%s4889_s7 + $0x10] sm:$0xff] }
 0x696   :  { %v2494_v58 = vsel %vm2451_vm13, %v2449_v23, 0.0  ;;  %v2489_v55 = vadd.f32 %v2488_v51, %v2487_v48  ;;  %v2501_v38 = vsel %vm2451_vm13, %v2450_v20, 0.0  ;;  %v2465_v6 = vadd.f32 %v2464_v52, %v2463_v31 }
 0x697   :  { %v1973_v11 = vrot.slane %v1972_v5, 1  ;;  %v1978_v26 = vrot.slane %v1977_v24, 2  ;;  %v2495_v2 = vrot.slane %v2494_v58, 4  ;;  %v2502_v44 = vrot.slane %v2501_v38, 4 }
 0x698   :  { %v2490_v4 = vrot.slane %v2489_v55, 2  ;;  %v2485_v0 = vrot.slane %v2484_v45, 1  ;;  %v2472_v17 = vadd.f32 %v2471_v49, %v2470_v28  ;;  %v2479_v62 = vadd.f32 %v2478_v27, %v2477_v61 }
 0x699   :  { %v1979_v32 = vadd.f32 %v1978_v26, %v1977_v24  ;;  %v1974_v16 = vadd.f32 %v1973_v11, %v1972_v5  ;;  %v2496_v25 = vadd.f32 %v2495_v2, %v2494_v58  ;;  %v2503_v7 = vadd.f32 %v2502_v44, %v2501_v38  ;;  %v3324_v58 = vld [vmem:[%s4890_s8] ss:$0 sm:$0xff]  ;;  %v4978_v44 = vld [vmem:[#allocation4_spill] sm:$0xff] }
 0x69a   :  { %v2491_v3 = vadd.f32 %v2490_v4, %v2489_v55  ;;  %v1995_v40 = vsel %vm264_vm4, %v1960_v34, %v1994_v46  ;;  %v2486_v12 = vadd.f32 %v2485_v0, %v2484_v45  ;;  %v2518_v63 = vsel %vm255_vm1, %v2465_v6, %v2458_v39  ;;  %v4979_v0 = vld [vmem:[#allocation2_spill] sm:$0xff] }
 0x69b   :  { %v1980_v8 = vrot.slane %v1979_v32, 1  ;;  %v2497_v47 = vrot.slane %v2496_v25, 2  ;;  %v2504_v54 = vrot.slane %v2503_v7, 2  ;;  %v1996_v30 = vsel %vm267_vm5, %v1967_v50, %v1995_v40 }
 0x69c   :  { %v2492_v29 = vrot.slane %v2491_v3, 1  ;;  %v1997_v41 = vsel %vm270_vm6, %v1974_v16, %v1996_v30  ;;  %v2519_v14 = vsel %vm258_vm2, %v2472_v17, %v2518_v63  ;;  %v4981_v17 = vld [vmem:[#allocation6_spill] sm:$0xff] }
 0x69d   :  { %v1981_v57 = vadd.f32 %v1980_v8, %v1979_v32  ;;  %v2498_v56 = vadd.f32 %v2497_v47, %v2496_v25  ;;  %v2505_v42 = vadd.f32 %v2504_v54, %v2503_v7  ;;  %v2520_v18 = vsel %vm261_vm3, %v2479_v62, %v2519_v14  ;;  %v4980_v8 = vld [vmem:[#allocation3_spill] sm:$0xff]  ;;  %v4982_v54 = vld [vmem:[#allocation5_spill] sm:$0xff] }
 0x69e   :  { %v2493_v21 = vadd.f32 %v2492_v29, %v2491_v3  ;;  %v2521_v46 = vsel %vm264_vm4, %v2486_v12, %v2520_v18  ;;  %v4984_v18 = vld [vmem:[#allocation8_spill] sm:$0xff] }
 0x69f   :  { %v1998_v43 = vsel %vm273_vm7, %v1981_v57, %v1997_v41  ;;  %v2499_v37 = vrot.slane %v2498_v56, 1  ;;  %v2506_v59 = vrot.slane %v2505_v42, 1 }
 0x6a0   :  { %1999 = vrot.lane.b32.xlu0 %v1998_v43, %s3615_s26  ;;  %v2522_v35 = vsel %vm267_vm5, %v2493_v21, %v2521_v46  ;;  %v4983_v21 = vld [vmem:[#allocation7_spill] sm:$0xff] }
 0x6a1   :  { %v2500_v19 = vadd.f32 %v2499_v37, %v2498_v56  ;;  %v2507_v31 = vadd.f32 %v2506_v59, %v2505_v42 }
 0x6a3   :  { %v2523_v10 = vsel %vm270_vm6, %v2500_v19, %v2522_v35  ;;  %v4985_v35 = vld [vmem:[#allocation9_spill] sm:$0xff] }
 0x6a4   :  { %v2524_v33 = vsel %vm273_vm7, %v2507_v31, %v2523_v10 }
 0x6a5   :  { %2525 = vrot.lane.b32.xlu1 %v2524_v33, %s3616_s0 }
 0x6b6   :  { %v1475_v9 = vpop.permute.xlu1 %1474 }
 0x6f2   :  { %v1386_v28 = vpop.permute.xlu0 %1385 }
 0x6f3   :  { %3413 = vmatmul.mubr.msk.f32.vlgmr.msra.gmra.mrb[2].mxu1 %vm447_vm9, %v1386_v28 }
 0x6f4   :  { %3416 = vmatpush3.msra.mxu1 %v925_v15  ;;  %3417 = vmatprep.mubr.msk.f32.mxu1 %vm3605_vm0, %v4976_v22 }
 0x6f5   :  { %3420 = vmatprep.subr.mxu1 %v4976_v22 }
 0x6f7   :  { %3418 = vmatmul.mubr.msk.f32.vlgmr.msra.gmra.mrb[4].mxu1 %vm447_vm9, %v1475_v9 }
 0x6f8   :  { %3421 = vmatpush3.msra.mxu1 %v3320_v60  ;;  %3422 = vmatprep.mubr.msk.f32.mxu1 %vm3605_vm0, %v4976_v22 }
 0x6f9   :  { %3485 = vmatprep.subr.bf16.mxu1 %v4977_v1 }
 0x712   :  { %v2000_v53 = vpop.permute.xlu0 %1999 }
 0x713   :  { %3423 = vmatmul.mubr.msk.f32.vlgmr.msra.gmra.mrb[6].mxu1 %vm447_vm9, %v2000_v53 }
 0x714   :  { %3438 = vmatprep.mubr.msk.f32.mxu1 %vm3605_vm0, %v4976_v22 }
 0x717   :  { %v2526_v61 = vpop.permute.xlu1 %2525 }
 0x718   :  { %3428 = vmatmul.mubr.msk.f32.vlgmr.msra.gmra.mrb[8].mxu0 %vm447_vm9, %v2526_v61 }
 0x719   :  { %3457 = vmatprep.mubr.msk.f32.mxu0 %vm3605_vm0, %v4976_v22 }
 0x7c6   :  { %v1455_v5 = vpop.f32.mrb[2].mxu1 }
 0x7c7   :  { %v3414_v48 = vpop.f32.mrb[3].mxu1 }
 0x7ca   :  { %v1544_v23 = vpop.f32.mrb[4].mxu1 }
 0x7cb   :  { %v1545_v36 = vadd.f32 %v1544_v23, %v1455_v5  ;;  %v3419_v13 = vpop.f32.mrb[5].mxu1 }
 0x7e6   :  { %v2069_v24 = vpop.f32.mrb[6].mxu1 }
 0x7e7   :  { %v2073_v51 = vadd.f32 %v2069_v24, %v1545_v36  ;;  %v3424_v11 = vpop.f32.mrb[7].mxu1 }
 0x7eb   :  { %v2595_v45 = vpop.f32.mrb[8].mxu0 }
 0x7ec   :  { %v2599_v20 = vadd.f32 %v2595_v45, %v2073_v51  ;;  %v3429_v52 = vpop.f32.mrb[9].mxu0 }
 0x7ee   :  { %v2607_v49 = vadd.f32 %v3324_v58, %v2599_v20 }
 0x7f0   :  { %2616 = vrot.lane.b32.xlu0 %v2607_v49, %s3603_s21  ;;  %v2610_v26 = vrot.slane %v2607_v49, 2  ;;  %v2609_v55 = vrot.slane %v2607_v49, 1  ;;  %v2611_v34 = vrot.slane %v2607_v49, 3  ;;  %v2612_v27 = vrot.slane %v2607_v49, 4 }
 0x7f1   :  { %v2613_v2 = vrot.slane %v2607_v49, 5  ;;  %v2614_v38 = vrot.slane %v2607_v49, 6  ;;  %v2615_v50 = vrot.slane %v2607_v49, 7 }
 0x7f2   :  { %2620 = vrot.lane.b32.xlu1 %v2610_v26, %s3603_s21 }
 0x7f4   :  { %2618 = vrot.lane.b32.xlu0 %v2609_v55, %s3603_s21 }
 0x7f6   :  { %2622 = vrot.lane.b32.xlu1 %v2611_v34, %s3603_s21 }
 0x7f8   :  { %2624 = vrot.lane.b32.xlu0 %v2612_v27, %s3603_s21 }
 0x7fa   :  { %2626 = vrot.lane.b32.xlu1 %v2613_v2, %s3603_s21 }
 0x7fc   :  { %2628 = vrot.lane.b32.xlu0 %v2614_v38, %s3603_s21  ;;  %v3325_v38 = vld [vmem:[%s4891_s9] ss:$0 sm:$0xff] }
 0x7fe   :  { %2630 = vrot.lane.b32.xlu1 %v2615_v50, %s3603_s21 }
 0x862   :  { %v2617_v32 = vpop.permute.xlu0 %2616 }
 0x863   :  { %v2640_v3 = vadd.f32 %v2617_v32, %v4980_v8 }
 0x864   :  { %v2621_v4 = vpop.permute.xlu1 %2620 }
 0x865   :  { %v2642_v39 = vadd.f32 %v2621_v4, %v4978_v44 }
 0x866   :  { %v2619_v16 = vpop.permute.xlu0 %2618 }
 0x867   :  { %v2641_v25 = vadd.f32 %v2619_v16, %v4979_v0  ;;  %v2660_v47 = vrot.slane %v2642_v39, 6 }
 0x868   :  { %v2623_v6 = vpop.permute.xlu1 %2622 }
 0x869   :  { %v2658_v7 = vrot.slane %v2641_v25, 7  ;;  %v2643_v62 = vadd.f32 %v2623_v6, %v4981_v17 }
 0x86a   :  { %v2625_v40 = vpop.permute.xlu0 %2624 }
 0x86b   :  { %v2659_v57 = vsel %vm255_vm1, %v2658_v7, %v2640_v3  ;;  %v2662_v29 = vrot.slane %v2643_v62, 5  ;;  %v2644_v30 = vadd.f32 %v2625_v40, %v4982_v54 }
 0x86c   :  { %v2661_v12 = vsel %vm258_vm2, %v2660_v47, %v2659_v57  ;;  %v2627_v56 = vpop.permute.xlu1 %2626 }
 0x86d   :  { %v2663_v41 = vsel %vm261_vm3, %v2662_v29, %v2661_v12  ;;  %v2664_v63 = vrot.slane %v2644_v30, 4  ;;  %v2645_v42 = vadd.f32 %v2627_v56, %v4983_v21  ;;  %v3326_v56 = vld [vmem:[%s4892_s10] ss:$0 sm:$0xff]  ;;  %v2801_v21 = vld [vmem:[%s4893_s13 + $0x10] sm:$0xff] }
 0x86e   :  { %v2629_v43 = vpop.permute.xlu0 %2628 }
 0x86f   :  { %v2665_v14 = vsel %vm264_vm4, %v2664_v63, %v2663_v41  ;;  %v2666_v37 = vrot.slane %v2645_v42, 3  ;;  %v2646_v59 = vadd.f32 %v2629_v43, %v4984_v18  ;;  %v2799_v41 = vld [vmem:[%s4893_s13] sm:$0xff]  ;;  %v2800_v63 = vld [vmem:[%s4893_s13 + $0x8] sm:$0xff]  ;;  %v2802_v43 = vld [vmem:[%s4893_s13 + $0x18] sm:$0xff] }
 0x870   :  { %v2631_v19 = vpop.permute.xlu1 %2630 }
 0x871   :  { %v2667_v46 = vsel %vm267_vm5, %v2666_v37, %v2665_v14  ;;  %v2668_v31 = vrot.slane %v2646_v59, 2  ;;  %v2647_v10 = vadd.f32 %v2631_v19, %v4985_v35  ;;  %v3489_v14 = vpack.c.bf16 %v2802_v43, %v2801_v21  ;;  %v2920_v21 = vld [vmem:[%s4894_s15 + $0x28] sm:$0xff]  ;;  %v2921_v43 = vld [vmem:[%s4894_s15 + $0x30] sm:$0xff] }
 0x873   :  { %v2670_v33 = vrot.slane %v2647_v10, 1  ;;  %v2669_v15 = vsel %vm270_vm6, %v2668_v31, %v2667_v46 }
 0x875   :  { %v2671_v28 = vsel %vm273_vm7, %v2670_v33, %v2669_v15 }
 0x876   :  { %2672 = vrot.lane.b32.xlu0 %v2671_v28, %s3607_s27 }
 0x8e8   :  { %v2673_v60 = vpop.permute.xlu0 %2672 }
 0x8e9   :  { %v2675_v9 = vsel %vm121_vm8, %v2673_v60, 0.0 }
 0x8ea   :  { %2676 = vadd.xlane.f32.xlu1 %v2675_v9 }
 0x8fb   :  { %2772 = vrot.lane.b32.xlu1 %v3325_v38, %s3603_s21 }
 0x977   :  { %v2677_v53 = vpop.xlane.xlu1 %2676 }
 0x978   :  { %v2679_v61 = vmul.f32 0.03125, %v2677_v53 }
 0x97a   :  { %v2681_v5 = vrot.slane %v2679_v61, 1  ;;  %v2682_v48 = vrot.slane %v2679_v61, 2  ;;  %v2683_v23 = vrot.slane %v2679_v61, 3  ;;  %v2684_v36 = vrot.slane %v2679_v61, 4 }
 0x97b   :  { %v2685_v13 = vrot.slane %v2679_v61, 5  ;;  %v2686_v24 = vrot.slane %v2679_v61, 6  ;;  %v2687_v51 = vrot.slane %v2679_v61, 7  ;;  %v2696_v11 = vsub.f32 %v2640_v3, %v2679_v61  ;;  %v2773_v33 = vpop.permute.xlu1 %2772 }
 0x97c   :  { %v4648_v45 = vsub.f32 %v2641_v25, %v2681_v5  ;;  %v4650_v58 = vsub.f32 %v2642_v39, %v2682_v48  ;;  %v4652_v20 = vsub.f32 %v2643_v62, %v2683_v23  ;;  %v4654_v52 = vsub.f32 %v2644_v30, %v2684_v36 }
 0x97d   :  { %v4656_v49 = vsub.f32 %v2645_v42, %v2685_v13  ;;  %v4658_v26 = vsub.f32 %v2646_v59, %v2686_v24  ;;  %v4660_v55 = vsub.f32 %v2647_v10, %v2687_v51  ;;  %v2704_v32 = vmul.f32 %v2696_v11, %v2696_v11 }
 0x97e   :  { %v2705_v34 = vmul.f32 %v4648_v45, %v4648_v45  ;;  %v2706_v27 = vmul.f32 %v4650_v58, %v4650_v58  ;;  %v2707_v2 = vmul.f32 %v4652_v20, %v4652_v20  ;;  %v2708_v50 = vmul.f32 %v4654_v52, %v4654_v52 }
 0x97f   :  { %v2709_v4 = vmul.f32 %v4656_v49, %v4656_v49  ;;  %v2710_v16 = vmul.f32 %v4658_v26, %v4658_v26  ;;  %v2711_v0 = vmul.f32 %v4660_v55, %v4660_v55  ;;  %v3486_v42 = vpack.c.bf16 %v2800_v63, %v2799_v41  ;;  %v2919_v63 = vld [vmem:[%s4894_s15 + $0x20] sm:$0xff] }
 0x980   :  { %v2720_v44 = vrot.slane %v2705_v34, 7  ;;  %v2722_v39 = vrot.slane %v2706_v27, 6  ;;  %v2724_v6 = vrot.slane %v2707_v2, 5  ;;  %v2726_v3 = vrot.slane %v2708_v50, 4 }
 0x981   :  { %v2728_v17 = vrot.slane %v2709_v4, 3  ;;  %v2730_v47 = vrot.slane %v2710_v16, 2  ;;  %v2732_v57 = vrot.slane %v2711_v0, 1  ;;  %3487 = vmatpush3.bf16.msra.mxu1 %v3486_v42  ;;  %v3498_v42 = vpack.c.bf16 %v2920_v21, %v2919_v63 }
 0x982   :  { %v2721_v25 = vsel %vm255_vm1, %v2720_v44, %v2704_v32  ;;  %3488 = vmatprep.subr.bf16.mxu1 %v4977_v1 }
 0x983   :  { %v2723_v8 = vsel %vm258_vm2, %v2722_v39, %v2721_v25 }
 0x984   :  { %v2725_v7 = vsel %vm261_vm3, %v2724_v6, %v2723_v8 }
 0x985   :  { %v2727_v62 = vsel %vm264_vm4, %v2726_v3, %v2725_v7  ;;  %3490 = vmatpush3.bf16.msra.mxu1 %v3489_v14  ;;  %v2922_v14 = vld [vmem:[%s4894_s15 + $0x38] sm:$0xff] }
 0x986   :  { %v2729_v40 = vsel %vm267_vm5, %v2728_v17, %v2727_v62  ;;  %3503 = vmatprep.subr.bf16.mxu1 %v4977_v1 }
 0x987   :  { %v2731_v29 = vsel %vm270_vm6, %v2730_v47, %v2729_v40 }
 0x988   :  { %v2733_v54 = vsel %vm273_vm7, %v2732_v57, %v2731_v29 }
 0x989   :  { %2734 = vrot.lane.b32.xlu0 %v2733_v54, %s3607_s27  ;;  %v2915_v54 = vld [vmem:[%s4894_s15] sm:$0xff] }
 0x9fb   :  { %v2735_v30 = vpop.permute.xlu0 %2734 }
 0x9fc   :  { %v2737_v12 = vsel %vm121_vm8, %v2735_v30, 0.0  ;;  %v2916_v30 = vld [vmem:[%s4894_s15 + $0x8] sm:$0xff] }
 0x9fd   :  { %2738 = vadd.xlane.f32.xlu0 %v2737_v12  ;;  %v3492_v12 = vpack.c.bf16 %v2916_v30, %v2915_v54 }
 0x9ff   :  { %3493 = vmatpush3.bf16.msra.mxu0 %v3492_v12 }
 0xa00   :  { %3494 = vmatprep.subr.bf16.mxu0 %v4977_v1 }
 0xa13   :  { %2788 = vrot.lane.b32.xlu0 %v3326_v56, %s3603_s21  ;;  %v2917_v56 = vld [vmem:[%s4894_s15 + $0x10] sm:$0xff] }
 0xa8a   :  { %v2739_v37 = vpop.xlane.xlu0 %2738 }
 0xa8b   :  { %v2740_v18 = vmul.f32 0.03125, %v2739_v37  ;;  %v3501_v37 = vpack.c.bf16 %v2922_v14, %v2921_v43 }
 0xa8d   :  { %v2741_v59 = vadd.f32 1e-05, %v2740_v18  ;;  %v3327_v18 = vld [vmem:[%s4895_s14] ss:$0 sm:$0xff] }
 0xa8e   :  { %v2789_v27 = vpop.permute.xlu0 %2788 }
 0xa8f   :  { %3597 = vrsqrt.f32 %v2741_v59 }
 0xa99   :  { %v3598_v19 = vpop.eup %3597 }
 0xa9a   :  { %v2744_v46 = vrot.slane %v3598_v19, 1  ;;  %v2745_v31 = vrot.slane %v3598_v19, 2  ;;  %v2746_v35 = vrot.slane %v3598_v19, 3  ;;  %v2759_v10 = vmul.f32 %v3598_v19, %v2696_v11 }
 0xa9b   :  { %v2747_v15 = vrot.slane %v3598_v19, 4  ;;  %v2748_v28 = vrot.slane %v3598_v19, 5  ;;  %v2749_v60 = vrot.slane %v3598_v19, 6  ;;  %v2750_v9 = vrot.slane %v3598_v19, 7 }
 0xa9c   :  { %v2760_v53 = vmul.f32 %v2744_v46, %v4648_v45  ;;  %v2761_v61 = vmul.f32 %v2745_v31, %v4650_v58  ;;  %v2762_v5 = vmul.f32 %v2746_v35, %v4652_v20  ;;  %v2775_v24 = vmul.f32 %v2773_v33, %v2759_v10 }
 0xa9d   :  { %v2763_v48 = vmul.f32 %v2747_v15, %v4654_v52  ;;  %v2764_v23 = vmul.f32 %v2748_v28, %v4656_v49  ;;  %v2765_v36 = vmul.f32 %v2749_v60, %v4658_v26  ;;  %v2766_v13 = vmul.f32 %v2750_v9, %v4660_v55 }
 0xa9e   :  { %v2776_v51 = vmul.f32 %v2773_v33, %v2760_v53  ;;  %v2777_v11 = vmul.f32 %v2773_v33, %v2761_v61  ;;  %v2778_v34 = vmul.f32 %v2773_v33, %v2762_v5  ;;  %v4722_v26 = vadd.f32 %v2789_v27, %v2775_v24  ;;  %v3329_v61 = vld [vmem:[%s4896_s16] ss:$0 sm:$0xff] }
 0xa9f   :  { %v2779_v2 = vmul.f32 %v2773_v33, %v2763_v48  ;;  %v2780_v38 = vmul.f32 %v2773_v33, %v2764_v23  ;;  %v2781_v45 = vmul.f32 %v2773_v33, %v2765_v36  ;;  %v2782_v20 = vmul.f32 %v2773_v33, %v2766_v13 }
 0xaa0   :  { %v4714_v50 = vadd.f32 %v2789_v27, %v2776_v51  ;;  %v4716_v58 = vadd.f32 %v2789_v27, %v2777_v11  ;;  %v4718_v52 = vadd.f32 %v2789_v27, %v2778_v34 }
 0xaa1   :  { %v4720_v49 = vadd.f32 %v2789_v27, %v2779_v2  ;;  %v4724_v55 = vadd.f32 %v2789_v27, %v2780_v38  ;;  %v4728_v44 = vadd.f32 %v2789_v27, %v2781_v45  ;;  %v4730_v39 = vadd.f32 %v2789_v27, %v2782_v20 }
 0xaa2   :  { %v2818_v32 = vrot.slane %v4714_v50, 7  ;;  %v2820_v4 = vrot.slane %v4716_v58, 6  ;;  %v2822_v0 = vrot.slane %v4718_v52, 5 }
 0xaa3   :  { %v2824_v6 = vrot.slane %v4720_v49, 4  ;;  %v2826_v3 = vrot.slane %v4724_v55, 3  ;;  %v2828_v17 = vrot.slane %v4728_v44, 2  ;;  %v2830_v47 = vrot.slane %v4730_v39, 1 }
 0xaa4   :  { %v2819_v16 = vsel %vm255_vm1, %v2818_v32, %v4722_v26 }
 0xaa5   :  { %v2821_v25 = vsel %vm258_vm2, %v2820_v4, %v2819_v16 }
 0xaa6   :  { %v2823_v8 = vsel %vm261_vm3, %v2822_v0, %v2821_v25 }
 0xaa7   :  { %v2825_v7 = vsel %vm264_vm4, %v2824_v6, %v2823_v8 }
 0xaa8   :  { %v2827_v62 = vsel %vm267_vm5, %v2826_v3, %v2825_v7 }
 0xaa9   :  { %v2829_v40 = vsel %vm270_vm6, %v2828_v17, %v2827_v62 }
 0xaaa   :  { %v2831_v57 = vsel %vm273_vm7, %v2830_v47, %v2829_v40 }
 0xaab   :  { %2832 = vrot.lane.b32.xlu1 %v2831_v57, %s3607_s27 }
 0xb1d   :  { %v2833_v29 = vpop.permute.xlu1 %2832 }
 0xb1e   :  { %3439 = vmatmul.mubr.msk.f32.vlgmr.msra.gmra.mrb[8].mxu1 %vm121_vm8, %v2833_v29 }
 0xb1f   :  { %3468 = vmatprep.mubr.msk.f32.mxu1 %vm3605_vm0, %v4976_v22  ;;  %v2918_v22 = vld [vmem:[%s4894_s15 + $0x18] sm:$0xff] }
 0xb20   :  { %v3495_v41 = vpack.c.bf16 %v2918_v22, %v2917_v56 }
 0xb22   :  { %3496 = vmatpush3.bf16.msra.mxu0 %v3495_v41 }
 0xb23   :  { %3497 = vmatprep.subr.bf16.mxu0 %v4977_v1 }
 0xb26   :  { %3499 = vmatpush3.bf16.msra.mxu0 %v3498_v42 }
 0xb27   :  { %3500 = vmatprep.subr.bf16.mxu0 %v4977_v1 }
 0xb2a   :  { %3502 = vmatpush3.bf16.msra.mxu0 %v3501_v37 }
 0xbf1   :  { %v2902_v59 = vpop.f32.mrb[8].mxu1 }
 0xbf2   :  { %v2903_v19 = vadd.f32 %v3327_v18, %v2902_v59  ;;  %v3440_v46 = vpop.f32.mrb[9].mxu1 }
 0xbf4   :  { %v2906_v31 = vmul.f32 %v2903_v19, %v2903_v19 }
 0xbf6   :  { %v2907_v35 = vmul.f32 %v2906_v31, %v2903_v19 }
 0xbf8   :  { %v2908_v10 = vmul.f32 0.044715, %v2907_v35 }
 0xbfa   :  { %v2909_v33 = vadd.f32 %v2908_v10, %v2903_v19 }
 0xbfc   :  { %v2910_v15 = vmul.f32 0.7978846, %v2909_v33 }
 0xbfe   :  { %3599 = vtanh.f32 %v2910_v15 }
 0xc08   :  { %v3600_v28 = vpop.eup %3599 }
 0xc09   :  { %v2912_v60 = vadd.f32 1.0, %v3600_v28 }
 0xc0b   :  { %v2913_v9 = vmul.f32 0.5, %v2912_v60 }
 0xc0d   :  { %v2914_v53 = vmul.f32 %v2913_v9, %v2903_v19 }
 0xc0f   :  { %3458 = vmatmul.mubr.msk.f32.vlgmr.msra.gmra.mrb[10].mxu0 %vm2930_vm14, %v2914_v53 }
 0xce2   :  { %v3000_v5 = vpop.f32.mrb[10].mxu0 }
 0xce3   :  { %v3001_v48 = vadd.f32 %v3329_v61, %v3000_v5  ;;  %v3459_v23 = vpop.f32.mrb[11].mxu0  ;;  %v3331_v61 = vld [vmem:[%s4897_s11] ss:$0 sm:$0xff] }
 0xce5   :  { %3012 = vrot.lane.b32.xlu1 %v3001_v48, %s3603_s21  ;;  %v3006_v36 = vrot.slane %v3001_v48, 2  ;;  %v3005_v13 = vrot.slane %v3001_v48, 1  ;;  %v3007_v24 = vrot.slane %v3001_v48, 3  ;;  %v3008_v51 = vrot.slane %v3001_v48, 4 }
 0xce6   :  { %v3009_v11 = vrot.slane %v3001_v48, 5  ;;  %v3010_v34 = vrot.slane %v3001_v48, 6  ;;  %v3011_v27 = vrot.slane %v3001_v48, 7 }
 0xce7   :  { %3016 = vrot.lane.b32.xlu0 %v3006_v36, %s3603_s21 }
 0xce9   :  { %3014 = vrot.lane.b32.xlu1 %v3005_v13, %s3603_s21 }
 0xceb   :  { %3018 = vrot.lane.b32.xlu0 %v3007_v24, %s3603_s21 }
 0xced   :  { %3020 = vrot.lane.b32.xlu1 %v3008_v51, %s3603_s21 }
 0xcef   :  { %3022 = vrot.lane.b32.xlu0 %v3009_v11, %s3603_s21 }
 0xcf1   :  { %3024 = vrot.lane.b32.xlu1 %v3010_v34, %s3603_s21 }
 0xcf3   :  { %3026 = vrot.lane.b32.xlu0 %v3011_v27, %s3603_s21 }
 0xd57   :  { %v3013_v2 = vpop.permute.xlu1 %3012 }
 0xd58   :  { %v3036_v16 = vadd.f32 %v3013_v2, %v4722_v26 }
 0xd59   :  { %v3017_v38 = vpop.permute.xlu0 %3016 }
 0xd5a   :  { %v3038_v45 = vadd.f32 %v3017_v38, %v4716_v58 }
 0xd5b   :  { %v3015_v20 = vpop.permute.xlu1 %3014 }
 0xd5c   :  { %v3037_v32 = vadd.f32 %v3015_v20, %v4714_v50  ;;  %v3056_v6 = vrot.slane %v3038_v45, 6 }
 0xd5d   :  { %v3019_v4 = vpop.permute.xlu0 %3018 }
 0xd5e   :  { %v3054_v0 = vrot.slane %v3037_v32, 7  ;;  %v3039_v25 = vadd.f32 %v3019_v4, %v4718_v52 }
 0xd5f   :  { %v3021_v8 = vpop.permute.xlu1 %3020 }
 0xd60   :  { %v3055_v3 = vsel %vm255_vm1, %v3054_v0, %v3036_v16  ;;  %v3058_v7 = vrot.slane %v3039_v25, 5  ;;  %v3040_v17 = vadd.f32 %v3021_v8, %v4720_v49 }
 0xd61   :  { %v3057_v62 = vsel %vm258_vm2, %v3056_v6, %v3055_v3  ;;  %v3023_v47 = vpop.permute.xlu0 %3022  ;;  %v3332_v3 = vld [vmem:[%s4898_s12] ss:$0 sm:$0xff] }
 0xd62   :  { %v3059_v58 = vsel %vm261_vm3, %v3058_v7, %v3057_v62  ;;  %v3060_v40 = vrot.slane %v3040_v17, 4  ;;  %v3041_v50 = vadd.f32 %v3023_v47, %v4724_v55  ;;  %v3194_v7 = vld [vmem:[%s4899_s17] sm:$0xff]  ;;  %v3196_v62 = vld [vmem:[%s4899_s17 + $0x10] sm:$0xff] }
 0xd63   :  { %v3025_v57 = vpop.permute.xlu1 %3024 }
 0xd64   :  { %v3061_v26 = vsel %vm264_vm4, %v3060_v40, %v3059_v58  ;;  %v3062_v29 = vrot.slane %v3041_v50, 3  ;;  %v3042_v52 = vadd.f32 %v3025_v57, %v4728_v44  ;;  %v3197_v58 = vld [vmem:[%s4899_s17 + $0x18] sm:$0xff] }
 0xd65   :  { %v3027_v54 = vpop.permute.xlu0 %3026  ;;  %v3507_v40 = vpack.c.bf16 %v3197_v58, %v3196_v62 }
 0xd66   :  { %v3063_v30 = vsel %vm267_vm5, %v3062_v29, %v3061_v26  ;;  %v3064_v12 = vrot.slane %v3042_v52, 2  ;;  %v3043_v49 = vadd.f32 %v3027_v54, %v4730_v39 }
 0xd68   :  { %v3066_v56 = vrot.slane %v3043_v49, 1  ;;  %v3065_v22 = vsel %vm270_vm6, %v3064_v12, %v3063_v30 }
 0xd6a   :  { %v3067_v41 = vsel %vm273_vm7, %v3066_v56, %v3065_v22 }
 0xd6b   :  { %3068 = vrot.lane.b32.xlu1 %v3067_v41, %s3607_s27 }
 0xddd   :  { %v3069_v55 = vpop.permute.xlu1 %3068 }
 0xdde   :  { %v3071_v63 = vsel %vm121_vm8, %v3069_v55, 0.0 }
 0xddf   :  { %3072 = vadd.xlane.f32.xlu0 %v3071_v63 }
 0xdf5   :  { %3167 = vrot.lane.b32.xlu0 %v3331_v61, %s3603_s21 }
 0xe6c   :  { %v3073_v21 = vpop.xlane.xlu0 %3072 }
 0xe6d   :  { %v3074_v42 = vmul.f32 0.03125, %v3073_v21 }
 0xe6f   :  { %v3076_v44 = vrot.slane %v3074_v42, 1  ;;  %v3077_v43 = vrot.slane %v3074_v42, 2  ;;  %v3078_v14 = vrot.slane %v3074_v42, 3  ;;  %v3079_v37 = vrot.slane %v3074_v42, 4 }
 0xe70   :  { %v3080_v18 = vrot.slane %v3074_v42, 5  ;;  %v3081_v59 = vrot.slane %v3074_v42, 6  ;;  %v3082_v39 = vrot.slane %v3074_v42, 7  ;;  %v3091_v19 = vsub.f32 %v3036_v16, %v3074_v42 }
 0xe71   :  { %v4807_v46 = vsub.f32 %v3037_v32, %v3076_v44  ;;  %v4809_v31 = vsub.f32 %v3038_v45, %v3077_v43  ;;  %v4811_v35 = vsub.f32 %v3039_v25, %v3078_v14  ;;  %v4813_v10 = vsub.f32 %v3040_v17, %v3079_v37  ;;  %v3195_v17 = vld [vmem:[%s4899_s17 + $0x8] sm:$0xff] }
 0xe72   :  { %v4815_v33 = vsub.f32 %v3041_v50, %v3080_v18  ;;  %v4817_v15 = vsub.f32 %v3042_v52, %v3081_v59  ;;  %v3098_v28 = vsub.f32 %v3043_v49, %v3082_v39  ;;  %v3099_v48 = vmul.f32 %v3091_v19, %v3091_v19  ;;  %v3168_v49 = vpop.permute.xlu0 %3167 }
 0xe73   :  { %v3100_v60 = vmul.f32 %v4807_v46, %v4807_v46  ;;  %v3101_v9 = vmul.f32 %v4809_v31, %v4809_v31  ;;  %v3102_v53 = vmul.f32 %v4811_v35, %v4811_v35  ;;  %v3103_v5 = vmul.f32 %v4813_v10, %v4813_v10 }
 0xe74   :  { %v3104_v23 = vmul.f32 %v4815_v33, %v4815_v33  ;;  %v3105_v24 = vmul.f32 %v4817_v15, %v4817_v15  ;;  %v3106_v51 = vmul.f32 %v3098_v28, %v3098_v28  ;;  %v3504_v47 = vpack.c.bf16 %v3195_v17, %v3194_v7 }
 0xe75   :  { %v3115_v36 = vrot.slane %v3100_v60, 7  ;;  %v3117_v13 = vrot.slane %v3101_v9, 6  ;;  %v3119_v34 = vrot.slane %v3102_v53, 5  ;;  %v3121_v2 = vrot.slane %v3103_v5, 4 }
 0xe76   :  { %v3123_v45 = vrot.slane %v3104_v23, 3  ;;  %v3125_v32 = vrot.slane %v3105_v24, 2  ;;  %v3127_v16 = vrot.slane %v3106_v51, 1  ;;  %3505 = vmatpush3.bf16.msra.mxu1 %v3504_v47 }
 0xe77   :  { %v3116_v11 = vsel %vm255_vm1, %v3115_v36, %v3099_v48  ;;  %3506 = vmatprep.subr.bf16.mxu1 %v4977_v1 }
 0xe78   :  { %v3118_v27 = vsel %vm258_vm2, %v3117_v13, %v3116_v11 }
 0xe79   :  { %v3120_v38 = vsel %vm261_vm3, %v3119_v34, %v3118_v27 }
 0xe7a   :  { %v3122_v20 = vsel %vm264_vm4, %v3121_v2, %v3120_v38  ;;  %3508 = vmatpush3.bf16.msra.mxu1 %v3507_v40 }
 0xe7b   :  { %v3124_v4 = vsel %vm267_vm5, %v3123_v45, %v3122_v20 }
 0xe7c   :  { %v3126_v0 = vsel %vm270_vm6, %v3125_v32, %v3124_v4 }
 0xe7d   :  { %v3128_v25 = vsel %vm273_vm7, %v3127_v16, %v3126_v0  ;;  %v3333_v16 = vld [vmem:[%s4900_s18] ss:$0 sm:$0xff] }
 0xe7e   :  { %3129 = vrot.lane.b32.xlu1 %v3128_v25, %s3607_s27 }
 0xef0   :  { %v3130_v6 = vpop.permute.xlu1 %3129 }
 0xef1   :  { %v3132_v8 = vsel %vm121_vm8, %v3130_v6, 0.0 }
 0xef2   :  { %3133 = vadd.xlane.f32.xlu1 %v3132_v8 }
 0xf03   :  { %3183 = vrot.lane.b32.xlu1 %v3332_v3, %s3603_s21 }
 0xf7f   :  { %v3134_v50 = vpop.xlane.xlu1 %3133 }
 0xf80   :  { %v3135_v57 = vmul.f32 0.03125, %v3134_v50 }
 0xf82   :  { %v3136_v26 = vadd.f32 1e-05, %v3135_v57 }
 0xf84   :  { %3601 = vrsqrt.f32 %v3136_v26 }
 0xf8e   :  { %v3602_v29 = vpop.eup %3601 }
 0xf8f   :  { %v3139_v52 = vrot.slane %v3602_v29, 1  ;;  %v3140_v54 = vrot.slane %v3602_v29, 2  ;;  %v3141_v30 = vrot.slane %v3602_v29, 3  ;;  %v3154_v12 = vmul.f32 %v3602_v29, %v3091_v19  ;;  %v3184_v19 = vpop.permute.xlu1 %3183 }
 0xf90   :  { %v3142_v56 = vrot.slane %v3602_v29, 4  ;;  %v3143_v22 = vrot.slane %v3602_v29, 5  ;;  %v3144_v41 = vrot.slane %v3602_v29, 6  ;;  %v3145_v55 = vrot.slane %v3602_v29, 7 }
 0xf91   :  { %v3155_v63 = vmul.f32 %v3139_v52, %v4807_v46  ;;  %v3156_v21 = vmul.f32 %v3140_v54, %v4809_v31  ;;  %v3157_v1 = vmul.f32 %v3141_v30, %v4811_v35  ;;  %v3170_v37 = vmul.f32 %v3168_v49, %v3154_v12 }
 0xf92   :  { %v3158_v42 = vmul.f32 %v3142_v56, %v4813_v10  ;;  %v3159_v44 = vmul.f32 %v3143_v22, %v4815_v33  ;;  %v3160_v43 = vmul.f32 %v3144_v41, %v4817_v15  ;;  %v3161_v14 = vmul.f32 %v3145_v55, %v3098_v28 }
 0xf93   :  { %v3171_v18 = vmul.f32 %v3168_v49, %v3155_v63  ;;  %v3172_v59 = vmul.f32 %v3168_v49, %v3156_v21  ;;  %v3173_v39 = vmul.f32 %v3168_v49, %v3157_v1  ;;  %v3186_v48 = vadd.f32 %v3184_v19, %v3170_v37 }
 0xf94   :  { %v3174_v60 = vmul.f32 %v3168_v49, %v3158_v42  ;;  %v3175_v9 = vmul.f32 %v3168_v49, %v3159_v44  ;;  %v3176_v53 = vmul.f32 %v3168_v49, %v3160_v43  ;;  %v3177_v5 = vmul.f32 %v3168_v49, %v3161_v14 }
 0xf95   :  { %v3187_v46 = vadd.f32 %v3184_v19, %v3171_v18  ;;  %v3188_v61 = vadd.f32 %v3184_v19, %v3172_v59  ;;  %v3189_v31 = vadd.f32 %v3184_v19, %v3173_v39 }
 0xf96   :  { %v3190_v35 = vadd.f32 %v3184_v19, %v3174_v60  ;;  %v3191_v33 = vadd.f32 %v3184_v19, %v3175_v9  ;;  %v3192_v36 = vadd.f32 %v3184_v19, %v3176_v53  ;;  %v3193_v28 = vadd.f32 %v3184_v19, %v3177_v5 }
 0xf97   :  { %v3213_v10 = vrot.slane %v3187_v46, 7  ;;  %v3215_v23 = vrot.slane %v3188_v61, 6  ;;  %v3217_v15 = vrot.slane %v3189_v31, 5 }
 0xf98   :  { %v3219_v51 = vrot.slane %v3190_v35, 4  ;;  %v3221_v34 = vrot.slane %v3191_v33, 3  ;;  %v3223_v2 = vrot.slane %v3192_v36, 2  ;;  %v3225_v45 = vrot.slane %v3193_v28, 1 }
 0xf99   :  { %v3214_v13 = vsel %vm255_vm1, %v3213_v10, %v3186_v48 }
 0xf9a   :  { %v3216_v24 = vsel %vm258_vm2, %v3215_v23, %v3214_v13 }
 0xf9b   :  { %v3218_v11 = vsel %vm261_vm3, %v3217_v15, %v3216_v24 }
 0xf9c   :  { %v3220_v27 = vsel %vm264_vm4, %v3219_v51, %v3218_v11 }
 0xf9d   :  { %v3222_v38 = vsel %vm267_vm5, %v3221_v34, %v3220_v27 }
 0xf9e   :  { %v3224_v20 = vsel %vm270_vm6, %v3223_v2, %v3222_v38 }
 0xf9f   :  { %v3226_v32 = vsel %vm273_vm7, %v3225_v45, %v3224_v20 }
 0xfa0   :  { %3227 = vrot.lane.b32.xlu0 %v3226_v32, %s3607_s27 }
0x1012   :  { %v3228_v4 = vpop.permute.xlu0 %3227 }
0x1013   :  { %3469 = vmatmul.mubr.msk.f32.vlgmr.msra.gmra.mrb[10].mxu1 %vm121_vm8, %v3228_v4 }
0x10e6   :  { %v3297_v0 = vpop.f32.mrb[10].mxu1 }
0x10e7   :  { %v3298_v25 = vadd.f32 %v3333_v16, %v3297_v0  ;;  %v3470_v6 = vpop.f32.mrb[11].mxu1 }
0x10e9   :  { %3301 = vst [vmem:[%s4901_s19] sm:$0xff] %v3298_v25 }

</bundles_post_ra>
